<compile_context>
chip_gen: v7x
topology: tpu7x:2x2x1
jax: 0.10.0
libtpu: 0.0.40
codegen_flags: <defaults>
</compile_context>

<pallas_src>
import functools

import jax
import jax.numpy as jnp
from jax.experimental import pallas as pl
from jax.experimental.pallas import tpu as pltpu


def _prelu(v, alpha):
    return jnp.where(v >= 0, v, alpha * v)


def _gln(v, g, b, eps=1e-8):
    """GroupNorm(num_groups=1) over a full (Cch, T) tile; one-pass statistics."""
    n = v.size
    s1 = jnp.sum(v)
    s2 = jnp.sum(v * v)
    mean = s1 / n
    var = jnp.maximum(s2 / n - mean * mean, 0.0)
    inv = jax.lax.rsqrt(var + eps)
    return (v - mean) * inv * g + b


# ------------------------------------------------------------------
# Fused forward kernel (one grid step == one batch item)
# ------------------------------------------------------------------

def _make_kernel(T, K, S, C, nf, nh, kd, n_src, dilations, alphas, out_alpha):
    n_blocks = len(dilations)
    NC = n_src * C

    def kernel(frames_ref, enc_w_ref, misc_ref, in_cw_ref,
               w1_ref, blk_vec_ref, wsr_ref, out_w_ref, dec_ref, o_ref):
        # ---- encoder: Conv1d(1, C, K, stride=S, padding=S, bias=False) ----
        frames = frames_ref[0]                                    # (K, T), time on lanes
        feats = jnp.dot(enc_w_ref[...], frames,
                        preferred_element_type=jnp.float32)       # (C, T)

        misc = misc_ref[...]                                      # (RM, 4)
        in_g, in_b = misc[:C, 0:1], misc[:C, 1:2]
        in_cb = misc[:nf, 2:3]
        out_b = misc[:NC, 3:4]

        # ---- separation TCN (all intermediates stay in VMEM/vregs) ----
        h = _gln(feats, in_g, in_b)
        h = jnp.dot(in_cw_ref[...], h,
                    preferred_element_type=jnp.float32) + in_cb   # (nf, T)

        lane = jax.lax.broadcasted_iota(jnp.int32, (1, T), 1)

        skip = jnp.zeros((nf, T), jnp.float32)
        for i in range(n_blocks):                                 # static unrolled blocks
            dil = dilations[i]
            a1, a2 = alphas[i]
            vec = blk_vec_ref[i]                                  # (RV, NV)
            b1, g1, be1 = vec[:nh, 0:1], vec[:nh, 1:2], vec[:nh, 2:3]
            bd = vec[:nh, 3 + kd:4 + kd]
            g2 = vec[:nh, 4 + kd:5 + kd]
            be2 = vec[:nh, 5 + kd:6 + kd]
            bsr = vec[:2 * nf, 6 + kd:7 + kd]

            # 1x1 conv nf -> nh, PReLU, gLN
            y = jnp.dot(w1_ref[i], h, preferred_element_type=jnp.float32) + b1
            y = _prelu(y, a1)
            y = _gln(y, g1, be1)                                  # (nh, T)

            # depthwise dilated conv (groups=nh, padding=dil): lane rolls + edge masks
            acc = jnp.zeros((nh, T), jnp.float32)
            for k in range(kd):                                   # static taps
                d = (k - 1) * dil                                 # tap[t] = y[t + d]
                wk = vec[:nh, 3 + k:4 + k]
                if d == 0:
                    tap = y
                else:
                    rolled = pltpu.roll(y, shift=(-d) % T, axis=1)
                    if d > 0:
                        tap = jnp.where(lane < T - d, rolled, 0.0)
                    else:
                        tap = jnp.where(lane >= -d, rolled, 0.0)
                acc = acc + wk * tap
            acc = _prelu(acc + bd, a2)
            y2 = _gln(acc, g2, be2)

            # merged skip+residual 1x1 convs; split is a sublane slice (free)
            sr = jnp.dot(wsr_ref[i], y2,
                         preferred_element_type=jnp.float32) + bsr  # (2*nf, T)
            skip = skip + sr[:nf, :]
            if i < n_blocks - 1:
                h = h + sr[nf:, :]

        # ---- fused mask head (n_src*C lanes-of-channels on sublanes) ----
        sp = _prelu(skip, out_alpha)
        m = jax.nn.sigmoid(
            jnp.dot(out_w_ref[...], sp, preferred_element_type=jnp.float32)
            + out_b)                                              # (n_src*C, T)
        feats_all = jnp.concatenate([feats] * n_src, axis=0)      # (n_src*C, T)
        masked = m * feats_all

        # ---- fused block-diagonal ConvTranspose1d + in-kernel overlap-add ----
        dec = jnp.dot(dec_ref[...], masked,
                      preferred_element_type=jnp.float32)         # (n_src*K, T)
        dec_next = pltpu.roll(dec, shift=T - 1, axis=1)           # dec_next[:, t] = dec[:, t+1]
        parts = []
        for s in range(n_src):
            parts.append(dec_next[s * K:s * K + S, :] + dec[s * K + S:s * K + K, :])
        # lane-dense store; column T-1 is a wrap artifact dropped in the wrapper
        o_ref[0] = jnp.concatenate(parts, axis=0)                 # (n_src*S, T)

    return kernel


# ------------------------------------------------------------------
# Parameters (deterministic synthetic init) + packing for the fused kernel
# ------------------------------------------------------------------

def init_params(key, cfg):
    K = cfg["encoder_kernel_size"]
    C = cfg["encoder_dim"]
    nf, nh = cfg["separation_n_feats"], cfg["separation_n_hidden"]
    kd = cfg["separation_kernel_size"]
    n_src = cfg["n_sources"]
    nl, ns = cfg["separation_n_layers"], cfg["separation_n_stacks"]

    keys = iter(jax.random.split(key, 256))

    def w(shape, scale=0.1):
        return jax.random.normal(next(keys), shape, jnp.float32) * scale

    params = dict(
        enc_w=w((K, C)),                      # Conv1d(1, C, K) weight as (K, C)
        dec_w=w((C, K)),                      # ConvTranspose1d(C, 1, K) weight as (C, K)
        in_norm_g=jnp.ones((C,), jnp.float32),
        in_norm_b=jnp.zeros((C,), jnp.float32),
        in_conv_w=w((C, nf)),
        in_conv_b=w((nf,), 0.01),
        out_conv_w=w((nf, n_src * C)),
        out_conv_b=w((n_src * C,), 0.01),
        blocks=[],
    )
    for s_i in range(ns):
        for l_i in range(nl):
            last = (s_i == ns - 1) and (l_i == nl - 1)
            blk = dict(
                w1=w((nf, nh)), b1=w((nh,), 0.01),
                g1=jnp.ones((nh,), jnp.float32), be1=jnp.zeros((nh,), jnp.float32),
                wd=w((kd, nh)), bd=w((nh,), 0.01),
                g2=jnp.ones((nh,), jnp.float32), be2=jnp.zeros((nh,), jnp.float32),
                w_skip=w((nh, nf)), b_skip=w((nf,), 0.01),
                w_res=None if last else w((nh, nf)),
                b_res=None if last else w((nf,), 0.01),
            )
            params["blocks"].append(blk)
    return params


def pack_params(params, cfg):
    """Repack into the transposed (channels-on-sublanes) layout the kernel uses."""
    K = cfg["encoder_kernel_size"]
    C = cfg["encoder_dim"]
    nf = cfg["separation_n_feats"]
    nh = cfg["separation_n_hidden"]
    kd = cfg["separation_kernel_size"]
    n_src = cfg["n_sources"]
    blocks = params["blocks"]
    n_blocks = len(blocks)
    NC = n_src * C
    RM = max(C, nf, NC)
    RV = max(nh, 2 * nf)
    NV = kd + 7

    # misc column params: [in_g | in_b | in_cb | out_b]
    misc = jnp.zeros((RM, 4), jnp.float32)
    misc = misc.at[:C, 0].set(params["in_norm_g"])
    misc = misc.at[:C, 1].set(params["in_norm_b"])
    misc = misc.at[:nf, 2].set(params["in_conv_b"])
    misc = misc.at[:NC, 3].set(params["out_conv_b"])

    # per-block column params: [b1, g1, be1, wd_0..wd_{kd-1}, bd, g2, be2, bsr]
    blk_vec = jnp.zeros((n_blocks, RV, NV), jnp.float32)
    for i, b in enumerate(blocks):
        blk_vec = blk_vec.at[i, :nh, 0].set(b["b1"])
        blk_vec = blk_vec.at[i, :nh, 1].set(b["g1"])
        blk_vec = blk_vec.at[i, :nh, 2].set(b["be1"])
        for k in range(kd):
            blk_vec = blk_vec.at[i, :nh, 3 + k].set(b["wd"][k])
        blk_vec = blk_vec.at[i, :nh, 3 + kd].set(b["bd"])
        blk_vec = blk_vec.at[i, :nh, 4 + kd].set(b["g2"])
        blk_vec = blk_vec.at[i, :nh, 5 + kd].set(b["be2"])
        bres = b["b_res"] if b["b_res"] is not None else jnp.zeros((nf,), jnp.float32)
        blk_vec = blk_vec.at[i, :2 * nf, 6 + kd].set(
            jnp.concatenate([b["b_skip"], bres]))

    w1 = jnp.stack([b["w1"].T for b in blocks])                   # (NB, nh, nf)
    wsr = jnp.stack([
        jnp.concatenate(
            [b["w_skip"].T,
             (b["w_res"].T if b["w_res"] is not None
              else jnp.zeros((nf, nh), jnp.float32))], axis=0)
        for b in blocks])                                         # (NB, 2*nf, nh)

    dec_bd = jnp.zeros((n_src * K, NC), jnp.float32)              # block-diag decoder
    for s in range(n_src):
        dec_bd = dec_bd.at[s * K:(s + 1) * K, s * C:(s + 1) * C].set(params["dec_w"].T)

    return dict(
        enc_w=params["enc_w"].T,            # (C, K)
        misc=misc,                          # (RM, 4)
        in_cw=params["in_conv_w"].T,        # (nf, C)
        w1=w1,                              # (NB, nh, nf)
        blk_vec=blk_vec,                    # (NB, RV, NV)
        wsr=wsr,                            # (NB, 2*nf, nh)
        out_w=params["out_conv_w"].T,       # (n_src*C, nf)
        dec_bd=dec_bd,                      # (n_src*K, n_src*C)
    )


# ------------------------------------------------------------------
# Forward pass (embed_video=None path) — one pallas_call total
# ------------------------------------------------------------------

def conv_tasnet_forward(packed, x, cfg):
    """x: (B, 1, L) -> (B, n_sources, L)."""
    B, _, L = x.shape
    K = cfg["encoder_kernel_size"]
    S = K // 2
    C = cfg["encoder_dim"]
    nf = cfg["separation_n_feats"]
    nh = cfg["separation_n_hidden"]
    kd = cfg["separation_kernel_size"]
    n_src = cfg["n_sources"]
    nl, ns = cfg["separation_n_layers"], cfg["separation_n_stacks"]

    assert K == 2 * S, "fused framing / overlap-add assumes kernel_size == 2*stride"
    assert L % S == 0, "input length must be a multiple of the encoder stride"

    dilations = tuple(2 ** l for _ in range(ns) for l in range(nl))
    alphas = tuple((0.25, 0.25) for _ in dilations)   # static PReLU slopes
    n_blocks = len(dilations)
    T = L // S + 1                                    # encoder frames; (T-1)*S == L
    NC = n_src * C
    RM = max(C, nf, NC)
    RV = max(nh, 2 * nf)
    NV = kd + 7

    # lane-dense frame matrix: frames[b, k, t] = xpad[b, t*S + k]  (time on lanes)
    xp = jnp.pad(x[:, 0, :], ((0, 0), (S, S)))        # (B, (T+1)*S)
    xr = xp.reshape(B, T + 1, S)
    frames = jnp.concatenate(
        [xr[:, :T, :].transpose(0, 2, 1), xr[:, 1:, :].transpose(0, 2, 1)],
        axis=1)                                       # (B, K, T)

    kernel = _make_kernel(T, K, S, C, nf, nh, kd, n_src, dilations, alphas, 0.25)

    def wfull(shape):
        nd = len(shape)
        return pl.BlockSpec(shape, lambda b, _nd=nd: (0,) * _nd)

    out = pl.pallas_call(
        kernel,
        out_shape=jax.ShapeDtypeStruct((B, n_src * S, T), jnp.float32),
        grid=(B,),
        in_specs=[
            pl.BlockSpec((1, K, T), lambda b: (b, 0, 0)),   # frames
            wfull((C, K)),                                  # enc_w
            wfull((RM, 4)),                                 # misc columns
            wfull((nf, C)),                                 # bottleneck 1x1
            wfull((n_blocks, nh, nf)),                      # w1
            wfull((n_blocks, RV, NV)),                      # per-block columns
            wfull((n_blocks, 2 * nf, nh)),                  # merged skip|res
            wfull((NC, nf)),                                # fused mask head
            wfull((n_src * K, NC)),                         # block-diag decoder
        ],
        out_specs=pl.BlockSpec((1, n_src * S, T), lambda b: (b, 0, 0)),
        compiler_params=pltpu.CompilerParams(
            dimension_semantics=("parallel",),
            vmem_limit_bytes=32 * 1024 * 1024,
        ),
    )(
        frames, packed["enc_w"], packed["misc"], packed["in_cw"],
        packed["w1"], packed["blk_vec"], packed["wsr"],
        packed["out_w"], packed["dec_bd"],
    )

    # (B, n_src*S, T) -> (B, n_src, S, T-1) -> interleave -> (B, n_src, L)
    out = out.reshape(B, n_src, S, T)[:, :, :, :T - 1]
    out = jnp.transpose(out, (0, 1, 3, 2)).reshape(B, n_src, (T - 1) * S)
    return out


# ------------------------------------------------------------------

if __name__ == "__main__":
    cfg = dict(
        encoder_kernel_size=16,
        encoder_dim=64,
        separation_kernel_size=3,
        separation_n_feats=32,
        separation_n_hidden=64,
        separation_n_layers=2,
        separation_n_stacks=2,
        embed_dim=16,       # unused in the embed_video=None path
        n_sources=2,
    )
    key = jax.random.PRNGKey(0)
    pkey, xkey = jax.random.split(key)
    params = init_params(pkey, cfg)
    packed = pack_params(params, cfg)

    # L chosen so T = L/S + 1 = 128 -> fully lane-dense activations and stores
    B, L = 2, 1016
    x = jax.random.normal(xkey, (B, 1, L), jnp.float32)

    fwd = jax.jit(functools.partial(conv_tasnet_forward, cfg=cfg))
    out = jax.block_until_ready(fwd(packed, x))
    assert out.shape == (B, cfg["n_sources"], L), out.shape
    assert bool(jnp.all(jnp.isfinite(out)))
    print("KERNEL_OK")
</pallas_src>

<mosaic_0001>
module attributes {stable_mosaic.version = 11 : i64} {
  func.func @kernel(%arg0: i32, %arg1: memref<1x16x128xf32, #tpu.memory_space<vmem>>, %arg2: memref<64x16xf32, #tpu.memory_space<vmem>>, %arg3: memref<128x4xf32, #tpu.memory_space<vmem>>, %arg4: memref<32x64xf32, #tpu.memory_space<vmem>>, %arg5: memref<4x64x32xf32, #tpu.memory_space<vmem>>, %arg6: memref<4x64x10xf32, #tpu.memory_space<vmem>>, %arg7: memref<4x64x64xf32, #tpu.memory_space<vmem>>, %arg8: memref<128x32xf32, #tpu.memory_space<vmem>>, %arg9: memref<32x128xf32, #tpu.memory_space<vmem>>, %arg10: memref<1x16x128xf32, #tpu.memory_space<vmem>>) attributes {dimension_semantics = [#tpu.dimension_semantics<parallel>], iteration_bounds = array<i64: 2>, scalar_prefetch = 0 : i64, scratch_operands = 0 : i64, tpu.core_type = #tpu.core_type<tc>, window_params = [{transform_indices = @transform_0, window_bounds = array<i64: 1, 16, 128>}, {pipeline_mode = #tpu.pipeline_mode<synchronous>, transform_indices = @transform_1, window_bounds = array<i64: 64, 16>}, {pipeline_mode = #tpu.pipeline_mode<synchronous>, transform_indices = @transform_2, window_bounds = array<i64: 128, 4>}, {pipeline_mode = #tpu.pipeline_mode<synchronous>, transform_indices = @transform_3, window_bounds = array<i64: 32, 64>}, {pipeline_mode = #tpu.pipeline_mode<synchronous>, transform_indices = @transform_4, window_bounds = array<i64: 4, 64, 32>}, {pipeline_mode = #tpu.pipeline_mode<synchronous>, transform_indices = @transform_5, window_bounds = array<i64: 4, 64, 10>}, {pipeline_mode = #tpu.pipeline_mode<synchronous>, transform_indices = @transform_6, window_bounds = array<i64: 4, 64, 64>}, {pipeline_mode = #tpu.pipeline_mode<synchronous>, transform_indices = @transform_7, window_bounds = array<i64: 128, 32>}, {pipeline_mode = #tpu.pipeline_mode<synchronous>, transform_indices = @transform_8, window_bounds = array<i64: 32, 128>}, {transform_indices = @transform_9, window_bounds = array<i64: 1, 16, 128>}]} {
    %c0 = arith.constant 0 : index
    %c0_0 = arith.constant 0 : index
    %c0_1 = arith.constant 0 : index
    %0 = vector.load %arg1[%c0, %c0_0, %c0_1] : memref<1x16x128xf32, #tpu.memory_space<vmem>>, vector<1x16x128xf32>
    %1 = vector.shape_cast %0 : vector<1x16x128xf32> to vector<16x128xf32>
    %c0_2 = arith.constant 0 : index
    %c0_3 = arith.constant 0 : index
    %2 = vector.load %arg2[%c0_2, %c0_3] : memref<64x16xf32, #tpu.memory_space<vmem>>, vector<64x16xf32>
    %cst = arith.constant dense<0.000000e+00> : vector<64x128xf32>
    %3 = tpu.matmul %2, %1, %cst {dimension_numbers = #tpu.dot_dimension_numbers<[1], [0], [0], [1], [0, 0, 1, 1], [], []>} : vector<64x16xf32>, vector<16x128xf32>, vector<64x128xf32> -> vector<64x128xf32>
    %c0_4 = arith.constant 0 : index
    %c0_5 = arith.constant 0 : index
    %4 = vector.load %arg3[%c0_4, %c0_5] : memref<128x4xf32, #tpu.memory_space<vmem>>, vector<128x4xf32>
    %5 = vector.extract_strided_slice %4 {offsets = [0, 0], sizes = [64, 1], strides = [1, 1]} : vector<128x4xf32> to vector<64x1xf32>
    %6 = vector.extract_strided_slice %4 {offsets = [0, 1], sizes = [64, 1], strides = [1, 1]} : vector<128x4xf32> to vector<64x1xf32>
    %7 = vector.extract_strided_slice %4 {offsets = [0, 2], sizes = [32, 1], strides = [1, 1]} : vector<128x4xf32> to vector<32x1xf32>
    %8 = vector.extract_strided_slice %4 {offsets = [0, 3], sizes = [128, 1], strides = [1, 1]} : vector<128x4xf32> to vector<128x1xf32>
    %9 = vector.shape_cast %3 : vector<64x128xf32> to vector<1x64x128xf32>
    %cst_6 = arith.constant dense<0.000000e+00> : vector<1xf32>
    %10 = vector.multi_reduction <add>, %9, %cst_6 [1, 2] : vector<1x64x128xf32> to vector<1xf32>
    %11 = vector.shape_cast %10 : vector<1xf32> to vector<1x1x1xf32>
    %12 = vector.extract %11[0, 0, 0] : f32 from vector<1x1x1xf32>
    %13 = arith.mulf %3, %3 : vector<64x128xf32>
    %14 = vector.shape_cast %13 : vector<64x128xf32> to vector<1x64x128xf32>
    %cst_7 = arith.constant dense<0.000000e+00> : vector<1xf32>
    %15 = vector.multi_reduction <add>, %14, %cst_7 [1, 2] : vector<1x64x128xf32> to vector<1xf32>
    %16 = vector.shape_cast %15 : vector<1xf32> to vector<1x1x1xf32>
    %17 = vector.extract %16[0, 0, 0] : f32 from vector<1x1x1xf32>
    %cst_8 = arith.constant 8.192000e+03 : f32
    %18 = arith.divf %12, %cst_8 : f32
    %cst_9 = arith.constant 8.192000e+03 : f32
    %19 = arith.divf %17, %cst_9 : f32
    %20 = arith.mulf %18, %18 : f32
    %21 = arith.subf %19, %20 : f32
    %cst_10 = arith.constant 0.000000e+00 : f32
    %22 = arith.maximumf %21, %cst_10 : f32
    %cst_11 = arith.constant 9.99999993E-9 : f32
    %23 = arith.addf %22, %cst_11 : f32
    %24 = math.rsqrt %23 : f32
    %25 = vector.broadcast %18 : f32 to vector<64x128xf32>
    %26 = arith.subf %3, %25 : vector<64x128xf32>
    %27 = vector.broadcast %24 : f32 to vector<64x128xf32>
    %28 = arith.mulf %26, %27 : vector<64x128xf32>
    %29 = vector.broadcast %5 : vector<64x1xf32> to vector<64x128xf32>
    %30 = arith.mulf %28, %29 : vector<64x128xf32>
    %31 = vector.broadcast %6 : vector<64x1xf32> to vector<64x128xf32>
    %32 = arith.addf %30, %31 : vector<64x128xf32>
    %c0_12 = arith.constant 0 : index
    %c0_13 = arith.constant 0 : index
    %33 = vector.load %arg4[%c0_12, %c0_13] : memref<32x64xf32, #tpu.memory_space<vmem>>, vector<32x64xf32>
    %cst_14 = arith.constant dense<0.000000e+00> : vector<32x128xf32>
    %34 = tpu.matmul %33, %32, %cst_14 {dimension_numbers = #tpu.dot_dimension_numbers<[1], [0], [0], [1], [0, 0, 1, 1], [], []>} : vector<32x64xf32>, vector<64x128xf32>, vector<32x128xf32> -> vector<32x128xf32>
    %35 = vector.broadcast %7 : vector<32x1xf32> to vector<32x128xf32>
    %36 = arith.addf %34, %35 : vector<32x128xf32>
    %37 = tpu.iota {dimensions = array<i32: 1>} : vector<1x128xi32>
    %cst_15 = arith.constant 0.000000e+00 : f32
    %38 = vector.broadcast %cst_15 : f32 to vector<32x128xf32>
    %c0_16 = arith.constant 0 : index
    %c0_17 = arith.constant 0 : index
    %c0_18 = arith.constant 0 : index
    %39 = vector.load %arg6[%c0_16, %c0_17, %c0_18] : memref<4x64x10xf32, #tpu.memory_space<vmem>>, vector<1x64x10xf32>
    %40 = vector.shape_cast %39 : vector<1x64x10xf32> to vector<64x10xf32>
    %41 = vector.extract_strided_slice %40 {offsets = [0, 0], sizes = [64, 1], strides = [1, 1]} : vector<64x10xf32> to vector<64x1xf32>
    %42 = vector.extract_strided_slice %40 {offsets = [0, 1], sizes = [64, 1], strides = [1, 1]} : vector<64x10xf32> to vector<64x1xf32>
    %43 = vector.extract_strided_slice %40 {offsets = [0, 2], sizes = [64, 1], strides = [1, 1]} : vector<64x10xf32> to vector<64x1xf32>
    %44 = vector.extract_strided_slice %40 {offsets = [0, 6], sizes = [64, 1], strides = [1, 1]} : vector<64x10xf32> to vector<64x1xf32>
    %45 = vector.extract_strided_slice %40 {offsets = [0, 7], sizes = [64, 1], strides = [1, 1]} : vector<64x10xf32> to vector<64x1xf32>
    %46 = vector.extract_strided_slice %40 {offsets = [0, 8], sizes = [64, 1], strides = [1, 1]} : vector<64x10xf32> to vector<64x1xf32>
    %47 = vector.extract_strided_slice %40 {offsets = [0, 9], sizes = [64, 1], strides = [1, 1]} : vector<64x10xf32> to vector<64x1xf32>
    %c0_19 = arith.constant 0 : index
    %c0_20 = arith.constant 0 : index
    %c0_21 = arith.constant 0 : index
    %48 = vector.load %arg5[%c0_19, %c0_20, %c0_21] : memref<4x64x32xf32, #tpu.memory_space<vmem>>, vector<1x64x32xf32>
    %49 = vector.shape_cast %48 : vector<1x64x32xf32> to vector<64x32xf32>
    %cst_22 = arith.constant dense<0.000000e+00> : vector<64x128xf32>
    %50 = tpu.matmul %49, %36, %cst_22 {dimension_numbers = #tpu.dot_dimension_numbers<[1], [0], [0], [1], [0, 0, 1, 1], [], []>} : vector<64x32xf32>, vector<32x128xf32>, vector<64x128xf32> -> vector<64x128xf32>
    %51 = vector.broadcast %41 : vector<64x1xf32> to vector<64x128xf32>
    %52 = arith.addf %50, %51 : vector<64x128xf32>
    %cst_23 = arith.constant 0.000000e+00 : f32
    %53 = vector.broadcast %cst_23 : f32 to vector<64x128xf32>
    %54 = arith.cmpf oge, %52, %53 : vector<64x128xf32>
    %cst_24 = arith.constant 2.500000e-01 : f32
    %55 = vector.broadcast %cst_24 : f32 to vector<64x128xf32>
    %56 = arith.mulf %55, %52 : vector<64x128xf32>
    %57 = arith.select %54, %52, %56 : vector<64x128xi1>, vector<64x128xf32>
    %58 = vector.shape_cast %57 : vector<64x128xf32> to vector<1x64x128xf32>
    %cst_25 = arith.constant dense<0.000000e+00> : vector<1xf32>
    %59 = vector.multi_reduction <add>, %58, %cst_25 [1, 2] : vector<1x64x128xf32> to vector<1xf32>
    %60 = vector.shape_cast %59 : vector<1xf32> to vector<1x1x1xf32>
    %61 = vector.extract %60[0, 0, 0] : f32 from vector<1x1x1xf32>
    %62 = arith.mulf %57, %57 : vector<64x128xf32>
    %63 = vector.shape_cast %62 : vector<64x128xf32> to vector<1x64x128xf32>
    %cst_26 = arith.constant dense<0.000000e+00> : vector<1xf32>
    %64 = vector.multi_reduction <add>, %63, %cst_26 [1, 2] : vector<1x64x128xf32> to vector<1xf32>
    %65 = vector.shape_cast %64 : vector<1xf32> to vector<1x1x1xf32>
    %66 = vector.extract %65[0, 0, 0] : f32 from vector<1x1x1xf32>
    %cst_27 = arith.constant 8.192000e+03 : f32
    %67 = arith.divf %61, %cst_27 : f32
    %cst_28 = arith.constant 8.192000e+03 : f32
    %68 = arith.divf %66, %cst_28 : f32
    %69 = arith.mulf %67, %67 : f32
    %70 = arith.subf %68, %69 : f32
    %cst_29 = arith.constant 0.000000e+00 : f32
    %71 = arith.maximumf %70, %cst_29 : f32
    %cst_30 = arith.constant 9.99999993E-9 : f32
    %72 = arith.addf %71, %cst_30 : f32
    %73 = math.rsqrt %72 : f32
    %74 = vector.broadcast %67 : f32 to vector<64x128xf32>
    %75 = arith.subf %57, %74 : vector<64x128xf32>
    %76 = vector.broadcast %73 : f32 to vector<64x128xf32>
    %77 = arith.mulf %75, %76 : vector<64x128xf32>
    %78 = vector.broadcast %42 : vector<64x1xf32> to vector<64x128xf32>
    %79 = arith.mulf %77, %78 : vector<64x128xf32>
    %80 = vector.broadcast %43 : vector<64x1xf32> to vector<64x128xf32>
    %81 = arith.addf %79, %80 : vector<64x128xf32>
    %cst_31 = arith.constant 0.000000e+00 : f32
    %82 = vector.broadcast %cst_31 : f32 to vector<64x128xf32>
    %83 = vector.extract_strided_slice %40 {offsets = [0, 3], sizes = [64, 1], strides = [1, 1]} : vector<64x10xf32> to vector<64x1xf32>
    %c1_i32 = arith.constant 1 : i32
    %84 = tpu.dynamic_rotate %81 by %c1_i32 dim 1 : vector<64x128xf32>, i32 -> vector<64x128xf32>
    %c1_i32_32 = arith.constant 1 : i32
    %85 = vector.broadcast %c1_i32_32 : i32 to vector<1x128xi32>
    %86 = arith.cmpi sge, %37, %85 : vector<1x128xi32>
    %cst_33 = arith.constant 0.000000e+00 : f32
    %87 = vector.shape_cast %86 : vector<1x128xi1> to vector<1x128xi1>
    %88 = vector.broadcast %87 : vector<1x128xi1> to vector<64x128xi1>
    %89 = vector.broadcast %cst_33 : f32 to vector<64x128xf32>
    %90 = arith.select %88, %84, %89 : vector<64x128xi1>, vector<64x128xf32>
    %91 = vector.broadcast %83 : vector<64x1xf32> to vector<64x128xf32>
    %92 = arith.mulf %91, %90 : vector<64x128xf32>
    %93 = arith.addf %82, %92 : vector<64x128xf32>
    %94 = vector.extract_strided_slice %40 {offsets = [0, 4], sizes = [64, 1], strides = [1, 1]} : vector<64x10xf32> to vector<64x1xf32>
    %95 = vector.broadcast %94 : vector<64x1xf32> to vector<64x128xf32>
    %96 = arith.mulf %95, %81 : vector<64x128xf32>
    %97 = arith.addf %93, %96 : vector<64x128xf32>
    %98 = vector.extract_strided_slice %40 {offsets = [0, 5], sizes = [64, 1], strides = [1, 1]} : vector<64x10xf32> to vector<64x1xf32>
    %c127_i32 = arith.constant 127 : i32
    %99 = tpu.dynamic_rotate %81 by %c127_i32 dim 1 : vector<64x128xf32>, i32 -> vector<64x128xf32>
    %c127_i32_34 = arith.constant 127 : i32
    %100 = vector.broadcast %c127_i32_34 : i32 to vector<1x128xi32>
    %101 = arith.cmpi slt, %37, %100 : vector<1x128xi32>
    %cst_35 = arith.constant 0.000000e+00 : f32
    %102 = vector.shape_cast %101 : vector<1x128xi1> to vector<1x128xi1>
    %103 = vector.broadcast %102 : vector<1x128xi1> to vector<64x128xi1>
    %104 = vector.broadcast %cst_35 : f32 to vector<64x128xf32>
    %105 = arith.select %103, %99, %104 : vector<64x128xi1>, vector<64x128xf32>
    %106 = vector.broadcast %98 : vector<64x1xf32> to vector<64x128xf32>
    %107 = arith.mulf %106, %105 : vector<64x128xf32>
    %108 = arith.addf %97, %107 : vector<64x128xf32>
    %109 = vector.broadcast %44 : vector<64x1xf32> to vector<64x128xf32>
    %110 = arith.addf %108, %109 : vector<64x128xf32>
    %cst_36 = arith.constant 0.000000e+00 : f32
    %111 = vector.broadcast %cst_36 : f32 to vector<64x128xf32>
    %112 = arith.cmpf oge, %110, %111 : vector<64x128xf32>
    %cst_37 = arith.constant 2.500000e-01 : f32
    %113 = vector.broadcast %cst_37 : f32 to vector<64x128xf32>
    %114 = arith.mulf %113, %110 : vector<64x128xf32>
    %115 = arith.select %112, %110, %114 : vector<64x128xi1>, vector<64x128xf32>
    %116 = vector.shape_cast %115 : vector<64x128xf32> to vector<1x64x128xf32>
    %cst_38 = arith.constant dense<0.000000e+00> : vector<1xf32>
    %117 = vector.multi_reduction <add>, %116, %cst_38 [1, 2] : vector<1x64x128xf32> to vector<1xf32>
    %118 = vector.shape_cast %117 : vector<1xf32> to vector<1x1x1xf32>
    %119 = vector.extract %118[0, 0, 0] : f32 from vector<1x1x1xf32>
    %120 = arith.mulf %115, %115 : vector<64x128xf32>
    %121 = vector.shape_cast %120 : vector<64x128xf32> to vector<1x64x128xf32>
    %cst_39 = arith.constant dense<0.000000e+00> : vector<1xf32>
    %122 = vector.multi_reduction <add>, %121, %cst_39 [1, 2] : vector<1x64x128xf32> to vector<1xf32>
    %123 = vector.shape_cast %122 : vector<1xf32> to vector<1x1x1xf32>
    %124 = vector.extract %123[0, 0, 0] : f32 from vector<1x1x1xf32>
    %cst_40 = arith.constant 8.192000e+03 : f32
    %125 = arith.divf %119, %cst_40 : f32
    %cst_41 = arith.constant 8.192000e+03 : f32
    %126 = arith.divf %124, %cst_41 : f32
    %127 = arith.mulf %125, %125 : f32
    %128 = arith.subf %126, %127 : f32
    %cst_42 = arith.constant 0.000000e+00 : f32
    %129 = arith.maximumf %128, %cst_42 : f32
    %cst_43 = arith.constant 9.99999993E-9 : f32
    %130 = arith.addf %129, %cst_43 : f32
    %131 = math.rsqrt %130 : f32
    %132 = vector.broadcast %125 : f32 to vector<64x128xf32>
    %133 = arith.subf %115, %132 : vector<64x128xf32>
    %134 = vector.broadcast %131 : f32 to vector<64x128xf32>
    %135 = arith.mulf %133, %134 : vector<64x128xf32>
    %136 = vector.broadcast %45 : vector<64x1xf32> to vector<64x128xf32>
    %137 = arith.mulf %135, %136 : vector<64x128xf32>
    %138 = vector.broadcast %46 : vector<64x1xf32> to vector<64x128xf32>
    %139 = arith.addf %137, %138 : vector<64x128xf32>
    %c0_44 = arith.constant 0 : index
    %c0_45 = arith.constant 0 : index
    %c0_46 = arith.constant 0 : index
    %140 = vector.load %arg7[%c0_44, %c0_45, %c0_46] : memref<4x64x64xf32, #tpu.memory_space<vmem>>, vector<1x64x64xf32>
    %141 = vector.shape_cast %140 : vector<1x64x64xf32> to vector<64x64xf32>
    %cst_47 = arith.constant dense<0.000000e+00> : vector<64x128xf32>
    %142 = tpu.matmul %141, %139, %cst_47 {dimension_numbers = #tpu.dot_dimension_numbers<[1], [0], [0], [1], [0, 0, 1, 1], [], []>} : vector<64x64xf32>, vector<64x128xf32>, vector<64x128xf32> -> vector<64x128xf32>
    %143 = vector.broadcast %47 : vector<64x1xf32> to vector<64x128xf32>
    %144 = arith.addf %142, %143 : vector<64x128xf32>
    %145 = vector.extract_strided_slice %144 {offsets = [0, 0], sizes = [32, 128], strides = [1, 1]} : vector<64x128xf32> to vector<32x128xf32>
    %146 = arith.addf %38, %145 : vector<32x128xf32>
    %147 = vector.extract_strided_slice %144 {offsets = [32, 0], sizes = [32, 128], strides = [1, 1]} : vector<64x128xf32> to vector<32x128xf32>
    %148 = arith.addf %36, %147 : vector<32x128xf32>
    %c1 = arith.constant 1 : index
    %c0_48 = arith.constant 0 : index
    %c0_49 = arith.constant 0 : index
    %149 = vector.load %arg6[%c1, %c0_48, %c0_49] : memref<4x64x10xf32, #tpu.memory_space<vmem>>, vector<1x64x10xf32>
    %150 = vector.shape_cast %149 : vector<1x64x10xf32> to vector<64x10xf32>
    %151 = vector.extract_strided_slice %150 {offsets = [0, 0], sizes = [64, 1], strides = [1, 1]} : vector<64x10xf32> to vector<64x1xf32>
    %152 = vector.extract_strided_slice %150 {offsets = [0, 1], sizes = [64, 1], strides = [1, 1]} : vector<64x10xf32> to vector<64x1xf32>
    %153 = vector.extract_strided_slice %150 {offsets = [0, 2], sizes = [64, 1], strides = [1, 1]} : vector<64x10xf32> to vector<64x1xf32>
    %154 = vector.extract_strided_slice %150 {offsets = [0, 6], sizes = [64, 1], strides = [1, 1]} : vector<64x10xf32> to vector<64x1xf32>
    %155 = vector.extract_strided_slice %150 {offsets = [0, 7], sizes = [64, 1], strides = [1, 1]} : vector<64x10xf32> to vector<64x1xf32>
    %156 = vector.extract_strided_slice %150 {offsets = [0, 8], sizes = [64, 1], strides = [1, 1]} : vector<64x10xf32> to vector<64x1xf32>
    %157 = vector.extract_strided_slice %150 {offsets = [0, 9], sizes = [64, 1], strides = [1, 1]} : vector<64x10xf32> to vector<64x1xf32>
    %c1_50 = arith.constant 1 : index
    %c0_51 = arith.constant 0 : index
    %c0_52 = arith.constant 0 : index
    %158 = vector.load %arg5[%c1_50, %c0_51, %c0_52] : memref<4x64x32xf32, #tpu.memory_space<vmem>>, vector<1x64x32xf32>
    %159 = vector.shape_cast %158 : vector<1x64x32xf32> to vector<64x32xf32>
    %cst_53 = arith.constant dense<0.000000e+00> : vector<64x128xf32>
    %160 = tpu.matmul %159, %148, %cst_53 {dimension_numbers = #tpu.dot_dimension_numbers<[1], [0], [0], [1], [0, 0, 1, 1], [], []>} : vector<64x32xf32>, vector<32x128xf32>, vector<64x128xf32> -> vector<64x128xf32>
    %161 = vector.broadcast %151 : vector<64x1xf32> to vector<64x128xf32>
    %162 = arith.addf %160, %161 : vector<64x128xf32>
    %cst_54 = arith.constant 0.000000e+00 : f32
    %163 = vector.broadcast %cst_54 : f32 to vector<64x128xf32>
    %164 = arith.cmpf oge, %162, %163 : vector<64x128xf32>
    %cst_55 = arith.constant 2.500000e-01 : f32
    %165 = vector.broadcast %cst_55 : f32 to vector<64x128xf32>
    %166 = arith.mulf %165, %162 : vector<64x128xf32>
    %167 = arith.select %164, %162, %166 : vector<64x128xi1>, vector<64x128xf32>
    %168 = vector.shape_cast %167 : vector<64x128xf32> to vector<1x64x128xf32>
    %cst_56 = arith.constant dense<0.000000e+00> : vector<1xf32>
    %169 = vector.multi_reduction <add>, %168, %cst_56 [1, 2] : vector<1x64x128xf32> to vector<1xf32>
    %170 = vector.shape_cast %169 : vector<1xf32> to vector<1x1x1xf32>
    %171 = vector.extract %170[0, 0, 0] : f32 from vector<1x1x1xf32>
    %172 = arith.mulf %167, %167 : vector<64x128xf32>
    %173 = vector.shape_cast %172 : vector<64x128xf32> to vector<1x64x128xf32>
    %cst_57 = arith.constant dense<0.000000e+00> : vector<1xf32>
    %174 = vector.multi_reduction <add>, %173, %cst_57 [1, 2] : vector<1x64x128xf32> to vector<1xf32>
    %175 = vector.shape_cast %174 : vector<1xf32> to vector<1x1x1xf32>
    %176 = vector.extract %175[0, 0, 0] : f32 from vector<1x1x1xf32>
    %cst_58 = arith.constant 8.192000e+03 : f32
    %177 = arith.divf %171, %cst_58 : f32
    %cst_59 = arith.constant 8.192000e+03 : f32
    %178 = arith.divf %176, %cst_59 : f32
    %179 = arith.mulf %177, %177 : f32
    %180 = arith.subf %178, %179 : f32
    %cst_60 = arith.constant 0.000000e+00 : f32
    %181 = arith.maximumf %180, %cst_60 : f32
    %cst_61 = arith.constant 9.99999993E-9 : f32
    %182 = arith.addf %181, %cst_61 : f32
    %183 = math.rsqrt %182 : f32
    %184 = vector.broadcast %177 : f32 to vector<64x128xf32>
    %185 = arith.subf %167, %184 : vector<64x128xf32>
    %186 = vector.broadcast %183 : f32 to vector<64x128xf32>
    %187 = arith.mulf %185, %186 : vector<64x128xf32>
    %188 = vector.broadcast %152 : vector<64x1xf32> to vector<64x128xf32>
    %189 = arith.mulf %187, %188 : vector<64x128xf32>
    %190 = vector.broadcast %153 : vector<64x1xf32> to vector<64x128xf32>
    %191 = arith.addf %189, %190 : vector<64x128xf32>
    %cst_62 = arith.constant 0.000000e+00 : f32
    %192 = vector.broadcast %cst_62 : f32 to vector<64x128xf32>
    %193 = vector.extract_strided_slice %150 {offsets = [0, 3], sizes = [64, 1], strides = [1, 1]} : vector<64x10xf32> to vector<64x1xf32>
    %c2_i32 = arith.constant 2 : i32
    %194 = tpu.dynamic_rotate %191 by %c2_i32 dim 1 : vector<64x128xf32>, i32 -> vector<64x128xf32>
    %c2_i32_63 = arith.constant 2 : i32
    %195 = vector.broadcast %c2_i32_63 : i32 to vector<1x128xi32>
    %196 = arith.cmpi sge, %37, %195 : vector<1x128xi32>
    %cst_64 = arith.constant 0.000000e+00 : f32
    %197 = vector.shape_cast %196 : vector<1x128xi1> to vector<1x128xi1>
    %198 = vector.broadcast %197 : vector<1x128xi1> to vector<64x128xi1>
    %199 = vector.broadcast %cst_64 : f32 to vector<64x128xf32>
    %200 = arith.select %198, %194, %199 : vector<64x128xi1>, vector<64x128xf32>
    %201 = vector.broadcast %193 : vector<64x1xf32> to vector<64x128xf32>
    %202 = arith.mulf %201, %200 : vector<64x128xf32>
    %203 = arith.addf %192, %202 : vector<64x128xf32>
    %204 = vector.extract_strided_slice %150 {offsets = [0, 4], sizes = [64, 1], strides = [1, 1]} : vector<64x10xf32> to vector<64x1xf32>
    %205 = vector.broadcast %204 : vector<64x1xf32> to vector<64x128xf32>
    %206 = arith.mulf %205, %191 : vector<64x128xf32>
    %207 = arith.addf %203, %206 : vector<64x128xf32>
    %208 = vector.extract_strided_slice %150 {offsets = [0, 5], sizes = [64, 1], strides = [1, 1]} : vector<64x10xf32> to vector<64x1xf32>
    %c126_i32 = arith.constant 126 : i32
    %209 = tpu.dynamic_rotate %191 by %c126_i32 dim 1 : vector<64x128xf32>, i32 -> vector<64x128xf32>
    %c126_i32_65 = arith.constant 126 : i32
    %210 = vector.broadcast %c126_i32_65 : i32 to vector<1x128xi32>
    %211 = arith.cmpi slt, %37, %210 : vector<1x128xi32>
    %cst_66 = arith.constant 0.000000e+00 : f32
    %212 = vector.shape_cast %211 : vector<1x128xi1> to vector<1x128xi1>
    %213 = vector.broadcast %212 : vector<1x128xi1> to vector<64x128xi1>
    %214 = vector.broadcast %cst_66 : f32 to vector<64x128xf32>
    %215 = arith.select %213, %209, %214 : vector<64x128xi1>, vector<64x128xf32>
    %216 = vector.broadcast %208 : vector<64x1xf32> to vector<64x128xf32>
    %217 = arith.mulf %216, %215 : vector<64x128xf32>
    %218 = arith.addf %207, %217 : vector<64x128xf32>
    %219 = vector.broadcast %154 : vector<64x1xf32> to vector<64x128xf32>
    %220 = arith.addf %218, %219 : vector<64x128xf32>
    %cst_67 = arith.constant 0.000000e+00 : f32
    %221 = vector.broadcast %cst_67 : f32 to vector<64x128xf32>
    %222 = arith.cmpf oge, %220, %221 : vector<64x128xf32>
    %cst_68 = arith.constant 2.500000e-01 : f32
    %223 = vector.broadcast %cst_68 : f32 to vector<64x128xf32>
    %224 = arith.mulf %223, %220 : vector<64x128xf32>
    %225 = arith.select %222, %220, %224 : vector<64x128xi1>, vector<64x128xf32>
    %226 = vector.shape_cast %225 : vector<64x128xf32> to vector<1x64x128xf32>
    %cst_69 = arith.constant dense<0.000000e+00> : vector<1xf32>
    %227 = vector.multi_reduction <add>, %226, %cst_69 [1, 2] : vector<1x64x128xf32> to vector<1xf32>
    %228 = vector.shape_cast %227 : vector<1xf32> to vector<1x1x1xf32>
    %229 = vector.extract %228[0, 0, 0] : f32 from vector<1x1x1xf32>
    %230 = arith.mulf %225, %225 : vector<64x128xf32>
    %231 = vector.shape_cast %230 : vector<64x128xf32> to vector<1x64x128xf32>
    %cst_70 = arith.constant dense<0.000000e+00> : vector<1xf32>
    %232 = vector.multi_reduction <add>, %231, %cst_70 [1, 2] : vector<1x64x128xf32> to vector<1xf32>
    %233 = vector.shape_cast %232 : vector<1xf32> to vector<1x1x1xf32>
    %234 = vector.extract %233[0, 0, 0] : f32 from vector<1x1x1xf32>
    %cst_71 = arith.constant 8.192000e+03 : f32
    %235 = arith.divf %229, %cst_71 : f32
    %cst_72 = arith.constant 8.192000e+03 : f32
    %236 = arith.divf %234, %cst_72 : f32
    %237 = arith.mulf %235, %235 : f32
    %238 = arith.subf %236, %237 : f32
    %cst_73 = arith.constant 0.000000e+00 : f32
    %239 = arith.maximumf %238, %cst_73 : f32
    %cst_74 = arith.constant 9.99999993E-9 : f32
    %240 = arith.addf %239, %cst_74 : f32
    %241 = math.rsqrt %240 : f32
    %242 = vector.broadcast %235 : f32 to vector<64x128xf32>
    %243 = arith.subf %225, %242 : vector<64x128xf32>
    %244 = vector.broadcast %241 : f32 to vector<64x128xf32>
    %245 = arith.mulf %243, %244 : vector<64x128xf32>
    %246 = vector.broadcast %155 : vector<64x1xf32> to vector<64x128xf32>
    %247 = arith.mulf %245, %246 : vector<64x128xf32>
    %248 = vector.broadcast %156 : vector<64x1xf32> to vector<64x128xf32>
    %249 = arith.addf %247, %248 : vector<64x128xf32>
    %c1_75 = arith.constant 1 : index
    %c0_76 = arith.constant 0 : index
    %c0_77 = arith.constant 0 : index
    %250 = vector.load %arg7[%c1_75, %c0_76, %c0_77] : memref<4x64x64xf32, #tpu.memory_space<vmem>>, vector<1x64x64xf32>
    %251 = vector.shape_cast %250 : vector<1x64x64xf32> to vector<64x64xf32>
    %cst_78 = arith.constant dense<0.000000e+00> : vector<64x128xf32>
    %252 = tpu.matmul %251, %249, %cst_78 {dimension_numbers = #tpu.dot_dimension_numbers<[1], [0], [0], [1], [0, 0, 1, 1], [], []>} : vector<64x64xf32>, vector<64x128xf32>, vector<64x128xf32> -> vector<64x128xf32>
    %253 = vector.broadcast %157 : vector<64x1xf32> to vector<64x128xf32>
    %254 = arith.addf %252, %253 : vector<64x128xf32>
    %255 = vector.extract_strided_slice %254 {offsets = [0, 0], sizes = [32, 128], strides = [1, 1]} : vector<64x128xf32> to vector<32x128xf32>
    %256 = arith.addf %146, %255 : vector<32x128xf32>
    %257 = vector.extract_strided_slice %254 {offsets = [32, 0], sizes = [32, 128], strides = [1, 1]} : vector<64x128xf32> to vector<32x128xf32>
    %258 = arith.addf %148, %257 : vector<32x128xf32>
    %c2 = arith.constant 2 : index
    %c0_79 = arith.constant 0 : index
    %c0_80 = arith.constant 0 : index
    %259 = vector.load %arg6[%c2, %c0_79, %c0_80] : memref<4x64x10xf32, #tpu.memory_space<vmem>>, vector<1x64x10xf32>
    %260 = vector.shape_cast %259 : vector<1x64x10xf32> to vector<64x10xf32>
    %261 = vector.extract_strided_slice %260 {offsets = [0, 0], sizes = [64, 1], strides = [1, 1]} : vector<64x10xf32> to vector<64x1xf32>
    %262 = vector.extract_strided_slice %260 {offsets = [0, 1], sizes = [64, 1], strides = [1, 1]} : vector<64x10xf32> to vector<64x1xf32>
    %263 = vector.extract_strided_slice %260 {offsets = [0, 2], sizes = [64, 1], strides = [1, 1]} : vector<64x10xf32> to vector<64x1xf32>
    %264 = vector.extract_strided_slice %260 {offsets = [0, 6], sizes = [64, 1], strides = [1, 1]} : vector<64x10xf32> to vector<64x1xf32>
    %265 = vector.extract_strided_slice %260 {offsets = [0, 7], sizes = [64, 1], strides = [1, 1]} : vector<64x10xf32> to vector<64x1xf32>
    %266 = vector.extract_strided_slice %260 {offsets = [0, 8], sizes = [64, 1], strides = [1, 1]} : vector<64x10xf32> to vector<64x1xf32>
    %267 = vector.extract_strided_slice %260 {offsets = [0, 9], sizes = [64, 1], strides = [1, 1]} : vector<64x10xf32> to vector<64x1xf32>
    %c2_81 = arith.constant 2 : index
    %c0_82 = arith.constant 0 : index
    %c0_83 = arith.constant 0 : index
    %268 = vector.load %arg5[%c2_81, %c0_82, %c0_83] : memref<4x64x32xf32, #tpu.memory_space<vmem>>, vector<1x64x32xf32>
    %269 = vector.shape_cast %268 : vector<1x64x32xf32> to vector<64x32xf32>
    %cst_84 = arith.constant dense<0.000000e+00> : vector<64x128xf32>
    %270 = tpu.matmul %269, %258, %cst_84 {dimension_numbers = #tpu.dot_dimension_numbers<[1], [0], [0], [1], [0, 0, 1, 1], [], []>} : vector<64x32xf32>, vector<32x128xf32>, vector<64x128xf32> -> vector<64x128xf32>
    %271 = vector.broadcast %261 : vector<64x1xf32> to vector<64x128xf32>
    %272 = arith.addf %270, %271 : vector<64x128xf32>
    %cst_85 = arith.constant 0.000000e+00 : f32
    %273 = vector.broadcast %cst_85 : f32 to vector<64x128xf32>
    %274 = arith.cmpf oge, %272, %273 : vector<64x128xf32>
    %cst_86 = arith.constant 2.500000e-01 : f32
    %275 = vector.broadcast %cst_86 : f32 to vector<64x128xf32>
    %276 = arith.mulf %275, %272 : vector<64x128xf32>
    %277 = arith.select %274, %272, %276 : vector<64x128xi1>, vector<64x128xf32>
    %278 = vector.shape_cast %277 : vector<64x128xf32> to vector<1x64x128xf32>
    %cst_87 = arith.constant dense<0.000000e+00> : vector<1xf32>
    %279 = vector.multi_reduction <add>, %278, %cst_87 [1, 2] : vector<1x64x128xf32> to vector<1xf32>
    %280 = vector.shape_cast %279 : vector<1xf32> to vector<1x1x1xf32>
    %281 = vector.extract %280[0, 0, 0] : f32 from vector<1x1x1xf32>
    %282 = arith.mulf %277, %277 : vector<64x128xf32>
    %283 = vector.shape_cast %282 : vector<64x128xf32> to vector<1x64x128xf32>
    %cst_88 = arith.constant dense<0.000000e+00> : vector<1xf32>
    %284 = vector.multi_reduction <add>, %283, %cst_88 [1, 2] : vector<1x64x128xf32> to vector<1xf32>
    %285 = vector.shape_cast %284 : vector<1xf32> to vector<1x1x1xf32>
    %286 = vector.extract %285[0, 0, 0] : f32 from vector<1x1x1xf32>
    %cst_89 = arith.constant 8.192000e+03 : f32
    %287 = arith.divf %281, %cst_89 : f32
    %cst_90 = arith.constant 8.192000e+03 : f32
    %288 = arith.divf %286, %cst_90 : f32
    %289 = arith.mulf %287, %287 : f32
    %290 = arith.subf %288, %289 : f32
    %cst_91 = arith.constant 0.000000e+00 : f32
    %291 = arith.maximumf %290, %cst_91 : f32
    %cst_92 = arith.constant 9.99999993E-9 : f32
    %292 = arith.addf %291, %cst_92 : f32
    %293 = math.rsqrt %292 : f32
    %294 = vector.broadcast %287 : f32 to vector<64x128xf32>
    %295 = arith.subf %277, %294 : vector<64x128xf32>
    %296 = vector.broadcast %293 : f32 to vector<64x128xf32>
    %297 = arith.mulf %295, %296 : vector<64x128xf32>
    %298 = vector.broadcast %262 : vector<64x1xf32> to vector<64x128xf32>
    %299 = arith.mulf %297, %298 : vector<64x128xf32>
    %300 = vector.broadcast %263 : vector<64x1xf32> to vector<64x128xf32>
    %301 = arith.addf %299, %300 : vector<64x128xf32>
    %cst_93 = arith.constant 0.000000e+00 : f32
    %302 = vector.broadcast %cst_93 : f32 to vector<64x128xf32>
    %303 = vector.extract_strided_slice %260 {offsets = [0, 3], sizes = [64, 1], strides = [1, 1]} : vector<64x10xf32> to vector<64x1xf32>
    %c1_i32_94 = arith.constant 1 : i32
    %304 = tpu.dynamic_rotate %301 by %c1_i32_94 dim 1 : vector<64x128xf32>, i32 -> vector<64x128xf32>
    %c1_i32_95 = arith.constant 1 : i32
    %305 = vector.broadcast %c1_i32_95 : i32 to vector<1x128xi32>
    %306 = arith.cmpi sge, %37, %305 : vector<1x128xi32>
    %cst_96 = arith.constant 0.000000e+00 : f32
    %307 = vector.shape_cast %306 : vector<1x128xi1> to vector<1x128xi1>
    %308 = vector.broadcast %307 : vector<1x128xi1> to vector<64x128xi1>
    %309 = vector.broadcast %cst_96 : f32 to vector<64x128xf32>
    %310 = arith.select %308, %304, %309 : vector<64x128xi1>, vector<64x128xf32>
    %311 = vector.broadcast %303 : vector<64x1xf32> to vector<64x128xf32>
    %312 = arith.mulf %311, %310 : vector<64x128xf32>
    %313 = arith.addf %302, %312 : vector<64x128xf32>
    %314 = vector.extract_strided_slice %260 {offsets = [0, 4], sizes = [64, 1], strides = [1, 1]} : vector<64x10xf32> to vector<64x1xf32>
    %315 = vector.broadcast %314 : vector<64x1xf32> to vector<64x128xf32>
    %316 = arith.mulf %315, %301 : vector<64x128xf32>
    %317 = arith.addf %313, %316 : vector<64x128xf32>
    %318 = vector.extract_strided_slice %260 {offsets = [0, 5], sizes = [64, 1], strides = [1, 1]} : vector<64x10xf32> to vector<64x1xf32>
    %c127_i32_97 = arith.constant 127 : i32
    %319 = tpu.dynamic_rotate %301 by %c127_i32_97 dim 1 : vector<64x128xf32>, i32 -> vector<64x128xf32>
    %c127_i32_98 = arith.constant 127 : i32
    %320 = vector.broadcast %c127_i32_98 : i32 to vector<1x128xi32>
    %321 = arith.cmpi slt, %37, %320 : vector<1x128xi32>
    %cst_99 = arith.constant 0.000000e+00 : f32
    %322 = vector.shape_cast %321 : vector<1x128xi1> to vector<1x128xi1>
    %323 = vector.broadcast %322 : vector<1x128xi1> to vector<64x128xi1>
    %324 = vector.broadcast %cst_99 : f32 to vector<64x128xf32>
    %325 = arith.select %323, %319, %324 : vector<64x128xi1>, vector<64x128xf32>
    %326 = vector.broadcast %318 : vector<64x1xf32> to vector<64x128xf32>
    %327 = arith.mulf %326, %325 : vector<64x128xf32>
    %328 = arith.addf %317, %327 : vector<64x128xf32>
    %329 = vector.broadcast %264 : vector<64x1xf32> to vector<64x128xf32>
    %330 = arith.addf %328, %329 : vector<64x128xf32>
    %cst_100 = arith.constant 0.000000e+00 : f32
    %331 = vector.broadcast %cst_100 : f32 to vector<64x128xf32>
    %332 = arith.cmpf oge, %330, %331 : vector<64x128xf32>
    %cst_101 = arith.constant 2.500000e-01 : f32
    %333 = vector.broadcast %cst_101 : f32 to vector<64x128xf32>
    %334 = arith.mulf %333, %330 : vector<64x128xf32>
    %335 = arith.select %332, %330, %334 : vector<64x128xi1>, vector<64x128xf32>
    %336 = vector.shape_cast %335 : vector<64x128xf32> to vector<1x64x128xf32>
    %cst_102 = arith.constant dense<0.000000e+00> : vector<1xf32>
    %337 = vector.multi_reduction <add>, %336, %cst_102 [1, 2] : vector<1x64x128xf32> to vector<1xf32>
    %338 = vector.shape_cast %337 : vector<1xf32> to vector<1x1x1xf32>
    %339 = vector.extract %338[0, 0, 0] : f32 from vector<1x1x1xf32>
    %340 = arith.mulf %335, %335 : vector<64x128xf32>
    %341 = vector.shape_cast %340 : vector<64x128xf32> to vector<1x64x128xf32>
    %cst_103 = arith.constant dense<0.000000e+00> : vector<1xf32>
    %342 = vector.multi_reduction <add>, %341, %cst_103 [1, 2] : vector<1x64x128xf32> to vector<1xf32>
    %343 = vector.shape_cast %342 : vector<1xf32> to vector<1x1x1xf32>
    %344 = vector.extract %343[0, 0, 0] : f32 from vector<1x1x1xf32>
    %cst_104 = arith.constant 8.192000e+03 : f32
    %345 = arith.divf %339, %cst_104 : f32
    %cst_105 = arith.constant 8.192000e+03 : f32
    %346 = arith.divf %344, %cst_105 : f32
    %347 = arith.mulf %345, %345 : f32
    %348 = arith.subf %346, %347 : f32
    %cst_106 = arith.constant 0.000000e+00 : f32
    %349 = arith.maximumf %348, %cst_106 : f32
    %cst_107 = arith.constant 9.99999993E-9 : f32
    %350 = arith.addf %349, %cst_107 : f32
    %351 = math.rsqrt %350 : f32
    %352 = vector.broadcast %345 : f32 to vector<64x128xf32>
    %353 = arith.subf %335, %352 : vector<64x128xf32>
    %354 = vector.broadcast %351 : f32 to vector<64x128xf32>
    %355 = arith.mulf %353, %354 : vector<64x128xf32>
    %356 = vector.broadcast %265 : vector<64x1xf32> to vector<64x128xf32>
    %357 = arith.mulf %355, %356 : vector<64x128xf32>
    %358 = vector.broadcast %266 : vector<64x1xf32> to vector<64x128xf32>
    %359 = arith.addf %357, %358 : vector<64x128xf32>
    %c2_108 = arith.constant 2 : index
    %c0_109 = arith.constant 0 : index
    %c0_110 = arith.constant 0 : index
    %360 = vector.load %arg7[%c2_108, %c0_109, %c0_110] : memref<4x64x64xf32, #tpu.memory_space<vmem>>, vector<1x64x64xf32>
    %361 = vector.shape_cast %360 : vector<1x64x64xf32> to vector<64x64xf32>
    %cst_111 = arith.constant dense<0.000000e+00> : vector<64x128xf32>
    %362 = tpu.matmul %361, %359, %cst_111 {dimension_numbers = #tpu.dot_dimension_numbers<[1], [0], [0], [1], [0, 0, 1, 1], [], []>} : vector<64x64xf32>, vector<64x128xf32>, vector<64x128xf32> -> vector<64x128xf32>
    %363 = vector.broadcast %267 : vector<64x1xf32> to vector<64x128xf32>
    %364 = arith.addf %362, %363 : vector<64x128xf32>
    %365 = vector.extract_strided_slice %364 {offsets = [0, 0], sizes = [32, 128], strides = [1, 1]} : vector<64x128xf32> to vector<32x128xf32>
    %366 = arith.addf %256, %365 : vector<32x128xf32>
    %367 = vector.extract_strided_slice %364 {offsets = [32, 0], sizes = [32, 128], strides = [1, 1]} : vector<64x128xf32> to vector<32x128xf32>
    %368 = arith.addf %258, %367 : vector<32x128xf32>
    %c3 = arith.constant 3 : index
    %c0_112 = arith.constant 0 : index
    %c0_113 = arith.constant 0 : index
    %369 = vector.load %arg6[%c3, %c0_112, %c0_113] : memref<4x64x10xf32, #tpu.memory_space<vmem>>, vector<1x64x10xf32>
    %370 = vector.shape_cast %369 : vector<1x64x10xf32> to vector<64x10xf32>
    %371 = vector.extract_strided_slice %370 {offsets = [0, 0], sizes = [64, 1], strides = [1, 1]} : vector<64x10xf32> to vector<64x1xf32>
    %372 = vector.extract_strided_slice %370 {offsets = [0, 1], sizes = [64, 1], strides = [1, 1]} : vector<64x10xf32> to vector<64x1xf32>
    %373 = vector.extract_strided_slice %370 {offsets = [0, 2], sizes = [64, 1], strides = [1, 1]} : vector<64x10xf32> to vector<64x1xf32>
    %374 = vector.extract_strided_slice %370 {offsets = [0, 6], sizes = [64, 1], strides = [1, 1]} : vector<64x10xf32> to vector<64x1xf32>
    %375 = vector.extract_strided_slice %370 {offsets = [0, 7], sizes = [64, 1], strides = [1, 1]} : vector<64x10xf32> to vector<64x1xf32>
    %376 = vector.extract_strided_slice %370 {offsets = [0, 8], sizes = [64, 1], strides = [1, 1]} : vector<64x10xf32> to vector<64x1xf32>
    %377 = vector.extract_strided_slice %370 {offsets = [0, 9], sizes = [64, 1], strides = [1, 1]} : vector<64x10xf32> to vector<64x1xf32>
    %c3_114 = arith.constant 3 : index
    %c0_115 = arith.constant 0 : index
    %c0_116 = arith.constant 0 : index
    %378 = vector.load %arg5[%c3_114, %c0_115, %c0_116] : memref<4x64x32xf32, #tpu.memory_space<vmem>>, vector<1x64x32xf32>
    %379 = vector.shape_cast %378 : vector<1x64x32xf32> to vector<64x32xf32>
    %cst_117 = arith.constant dense<0.000000e+00> : vector<64x128xf32>
    %380 = tpu.matmul %379, %368, %cst_117 {dimension_numbers = #tpu.dot_dimension_numbers<[1], [0], [0], [1], [0, 0, 1, 1], [], []>} : vector<64x32xf32>, vector<32x128xf32>, vector<64x128xf32> -> vector<64x128xf32>
    %381 = vector.broadcast %371 : vector<64x1xf32> to vector<64x128xf32>
    %382 = arith.addf %380, %381 : vector<64x128xf32>
    %cst_118 = arith.constant 0.000000e+00 : f32
    %383 = vector.broadcast %cst_118 : f32 to vector<64x128xf32>
    %384 = arith.cmpf oge, %382, %383 : vector<64x128xf32>
    %cst_119 = arith.constant 2.500000e-01 : f32
    %385 = vector.broadcast %cst_119 : f32 to vector<64x128xf32>
    %386 = arith.mulf %385, %382 : vector<64x128xf32>
    %387 = arith.select %384, %382, %386 : vector<64x128xi1>, vector<64x128xf32>
    %388 = vector.shape_cast %387 : vector<64x128xf32> to vector<1x64x128xf32>
    %cst_120 = arith.constant dense<0.000000e+00> : vector<1xf32>
    %389 = vector.multi_reduction <add>, %388, %cst_120 [1, 2] : vector<1x64x128xf32> to vector<1xf32>
    %390 = vector.shape_cast %389 : vector<1xf32> to vector<1x1x1xf32>
    %391 = vector.extract %390[0, 0, 0] : f32 from vector<1x1x1xf32>
    %392 = arith.mulf %387, %387 : vector<64x128xf32>
    %393 = vector.shape_cast %392 : vector<64x128xf32> to vector<1x64x128xf32>
    %cst_121 = arith.constant dense<0.000000e+00> : vector<1xf32>
    %394 = vector.multi_reduction <add>, %393, %cst_121 [1, 2] : vector<1x64x128xf32> to vector<1xf32>
    %395 = vector.shape_cast %394 : vector<1xf32> to vector<1x1x1xf32>
    %396 = vector.extract %395[0, 0, 0] : f32 from vector<1x1x1xf32>
    %cst_122 = arith.constant 8.192000e+03 : f32
    %397 = arith.divf %391, %cst_122 : f32
    %cst_123 = arith.constant 8.192000e+03 : f32
    %398 = arith.divf %396, %cst_123 : f32
    %399 = arith.mulf %397, %397 : f32
    %400 = arith.subf %398, %399 : f32
    %cst_124 = arith.constant 0.000000e+00 : f32
    %401 = arith.maximumf %400, %cst_124 : f32
    %cst_125 = arith.constant 9.99999993E-9 : f32
    %402 = arith.addf %401, %cst_125 : f32
    %403 = math.rsqrt %402 : f32
    %404 = vector.broadcast %397 : f32 to vector<64x128xf32>
    %405 = arith.subf %387, %404 : vector<64x128xf32>
    %406 = vector.broadcast %403 : f32 to vector<64x128xf32>
    %407 = arith.mulf %405, %406 : vector<64x128xf32>
    %408 = vector.broadcast %372 : vector<64x1xf32> to vector<64x128xf32>
    %409 = arith.mulf %407, %408 : vector<64x128xf32>
    %410 = vector.broadcast %373 : vector<64x1xf32> to vector<64x128xf32>
    %411 = arith.addf %409, %410 : vector<64x128xf32>
    %cst_126 = arith.constant 0.000000e+00 : f32
    %412 = vector.broadcast %cst_126 : f32 to vector<64x128xf32>
    %413 = vector.extract_strided_slice %370 {offsets = [0, 3], sizes = [64, 1], strides = [1, 1]} : vector<64x10xf32> to vector<64x1xf32>
    %c2_i32_127 = arith.constant 2 : i32
    %414 = tpu.dynamic_rotate %411 by %c2_i32_127 dim 1 : vector<64x128xf32>, i32 -> vector<64x128xf32>
    %c2_i32_128 = arith.constant 2 : i32
    %415 = vector.broadcast %c2_i32_128 : i32 to vector<1x128xi32>
    %416 = arith.cmpi sge, %37, %415 : vector<1x128xi32>
    %cst_129 = arith.constant 0.000000e+00 : f32
    %417 = vector.shape_cast %416 : vector<1x128xi1> to vector<1x128xi1>
    %418 = vector.broadcast %417 : vector<1x128xi1> to vector<64x128xi1>
    %419 = vector.broadcast %cst_129 : f32 to vector<64x128xf32>
    %420 = arith.select %418, %414, %419 : vector<64x128xi1>, vector<64x128xf32>
    %421 = vector.broadcast %413 : vector<64x1xf32> to vector<64x128xf32>
    %422 = arith.mulf %421, %420 : vector<64x128xf32>
    %423 = arith.addf %412, %422 : vector<64x128xf32>
    %424 = vector.extract_strided_slice %370 {offsets = [0, 4], sizes = [64, 1], strides = [1, 1]} : vector<64x10xf32> to vector<64x1xf32>
    %425 = vector.broadcast %424 : vector<64x1xf32> to vector<64x128xf32>
    %426 = arith.mulf %425, %411 : vector<64x128xf32>
    %427 = arith.addf %423, %426 : vector<64x128xf32>
    %428 = vector.extract_strided_slice %370 {offsets = [0, 5], sizes = [64, 1], strides = [1, 1]} : vector<64x10xf32> to vector<64x1xf32>
    %c126_i32_130 = arith.constant 126 : i32
    %429 = tpu.dynamic_rotate %411 by %c126_i32_130 dim 1 : vector<64x128xf32>, i32 -> vector<64x128xf32>
    %c126_i32_131 = arith.constant 126 : i32
    %430 = vector.broadcast %c126_i32_131 : i32 to vector<1x128xi32>
    %431 = arith.cmpi slt, %37, %430 : vector<1x128xi32>
    %cst_132 = arith.constant 0.000000e+00 : f32
    %432 = vector.shape_cast %431 : vector<1x128xi1> to vector<1x128xi1>
    %433 = vector.broadcast %432 : vector<1x128xi1> to vector<64x128xi1>
    %434 = vector.broadcast %cst_132 : f32 to vector<64x128xf32>
    %435 = arith.select %433, %429, %434 : vector<64x128xi1>, vector<64x128xf32>
    %436 = vector.broadcast %428 : vector<64x1xf32> to vector<64x128xf32>
    %437 = arith.mulf %436, %435 : vector<64x128xf32>
    %438 = arith.addf %427, %437 : vector<64x128xf32>
    %439 = vector.broadcast %374 : vector<64x1xf32> to vector<64x128xf32>
    %440 = arith.addf %438, %439 : vector<64x128xf32>
    %cst_133 = arith.constant 0.000000e+00 : f32
    %441 = vector.broadcast %cst_133 : f32 to vector<64x128xf32>
    %442 = arith.cmpf oge, %440, %441 : vector<64x128xf32>
    %cst_134 = arith.constant 2.500000e-01 : f32
    %443 = vector.broadcast %cst_134 : f32 to vector<64x128xf32>
    %444 = arith.mulf %443, %440 : vector<64x128xf32>
    %445 = arith.select %442, %440, %444 : vector<64x128xi1>, vector<64x128xf32>
    %446 = vector.shape_cast %445 : vector<64x128xf32> to vector<1x64x128xf32>
    %cst_135 = arith.constant dense<0.000000e+00> : vector<1xf32>
    %447 = vector.multi_reduction <add>, %446, %cst_135 [1, 2] : vector<1x64x128xf32> to vector<1xf32>
    %448 = vector.shape_cast %447 : vector<1xf32> to vector<1x1x1xf32>
    %449 = vector.extract %448[0, 0, 0] : f32 from vector<1x1x1xf32>
    %450 = arith.mulf %445, %445 : vector<64x128xf32>
    %451 = vector.shape_cast %450 : vector<64x128xf32> to vector<1x64x128xf32>
    %cst_136 = arith.constant dense<0.000000e+00> : vector<1xf32>
    %452 = vector.multi_reduction <add>, %451, %cst_136 [1, 2] : vector<1x64x128xf32> to vector<1xf32>
    %453 = vector.shape_cast %452 : vector<1xf32> to vector<1x1x1xf32>
    %454 = vector.extract %453[0, 0, 0] : f32 from vector<1x1x1xf32>
    %cst_137 = arith.constant 8.192000e+03 : f32
    %455 = arith.divf %449, %cst_137 : f32
    %cst_138 = arith.constant 8.192000e+03 : f32
    %456 = arith.divf %454, %cst_138 : f32
    %457 = arith.mulf %455, %455 : f32
    %458 = arith.subf %456, %457 : f32
    %cst_139 = arith.constant 0.000000e+00 : f32
    %459 = arith.maximumf %458, %cst_139 : f32
    %cst_140 = arith.constant 9.99999993E-9 : f32
    %460 = arith.addf %459, %cst_140 : f32
    %461 = math.rsqrt %460 : f32
    %462 = vector.broadcast %455 : f32 to vector<64x128xf32>
    %463 = arith.subf %445, %462 : vector<64x128xf32>
    %464 = vector.broadcast %461 : f32 to vector<64x128xf32>
    %465 = arith.mulf %463, %464 : vector<64x128xf32>
    %466 = vector.broadcast %375 : vector<64x1xf32> to vector<64x128xf32>
    %467 = arith.mulf %465, %466 : vector<64x128xf32>
    %468 = vector.broadcast %376 : vector<64x1xf32> to vector<64x128xf32>
    %469 = arith.addf %467, %468 : vector<64x128xf32>
    %c3_141 = arith.constant 3 : index
    %c0_142 = arith.constant 0 : index
    %c0_143 = arith.constant 0 : index
    %470 = vector.load %arg7[%c3_141, %c0_142, %c0_143] : memref<4x64x64xf32, #tpu.memory_space<vmem>>, vector<1x64x64xf32>
    %471 = vector.shape_cast %470 : vector<1x64x64xf32> to vector<64x64xf32>
    %cst_144 = arith.constant dense<0.000000e+00> : vector<64x128xf32>
    %472 = tpu.matmul %471, %469, %cst_144 {dimension_numbers = #tpu.dot_dimension_numbers<[1], [0], [0], [1], [0, 0, 1, 1], [], []>} : vector<64x64xf32>, vector<64x128xf32>, vector<64x128xf32> -> vector<64x128xf32>
    %473 = vector.broadcast %377 : vector<64x1xf32> to vector<64x128xf32>
    %474 = arith.addf %472, %473 : vector<64x128xf32>
    %475 = vector.extract_strided_slice %474 {offsets = [0, 0], sizes = [32, 128], strides = [1, 1]} : vector<64x128xf32> to vector<32x128xf32>
    %476 = arith.addf %366, %475 : vector<32x128xf32>
    %cst_145 = arith.constant 0.000000e+00 : f32
    %477 = vector.broadcast %cst_145 : f32 to vector<32x128xf32>
    %478 = arith.cmpf oge, %476, %477 : vector<32x128xf32>
    %cst_146 = arith.constant 2.500000e-01 : f32
    %479 = vector.broadcast %cst_146 : f32 to vector<32x128xf32>
    %480 = arith.mulf %479, %476 : vector<32x128xf32>
    %481 = arith.select %478, %476, %480 : vector<32x128xi1>, vector<32x128xf32>
    %c0_147 = arith.constant 0 : index
    %c0_148 = arith.constant 0 : index
    %482 = vector.load %arg8[%c0_147, %c0_148] : memref<128x32xf32, #tpu.memory_space<vmem>>, vector<128x32xf32>
    %cst_149 = arith.constant dense<0.000000e+00> : vector<128x128xf32>
    %483 = tpu.matmul %482, %481, %cst_149 {dimension_numbers = #tpu.dot_dimension_numbers<[1], [0], [0], [1], [0, 0, 1, 1], [], []>} : vector<128x32xf32>, vector<32x128xf32>, vector<128x128xf32> -> vector<128x128xf32>
    %484 = vector.broadcast %8 : vector<128x1xf32> to vector<128x128xf32>
    %485 = arith.addf %483, %484 : vector<128x128xf32>
    %486 = arith.negf %485 : vector<128x128xf32>
    %487 = math.exp %486 : vector<128x128xf32>
    %cst_150 = arith.constant 1.000000e+00 : f32
    %488 = vector.broadcast %cst_150 : f32 to vector<128x128xf32>
    %489 = arith.addf %488, %487 : vector<128x128xf32>
    %490 = arith.divf %488, %489 : vector<128x128xf32>
    %491 = tpu.concatenate %3, %3 in 0 : vector<64x128xf32>, vector<64x128xf32> -> vector<128x128xf32>
    %492 = arith.mulf %490, %491 : vector<128x128xf32>
    %c0_151 = arith.constant 0 : index
    %c0_152 = arith.constant 0 : index
    %493 = vector.load %arg9[%c0_151, %c0_152] : memref<32x128xf32, #tpu.memory_space<vmem>>, vector<32x128xf32>
    %cst_153 = arith.constant dense<0.000000e+00> : vector<32x128xf32>
    %494 = tpu.matmul %493, %492, %cst_153 {dimension_numbers = #tpu.dot_dimension_numbers<[1], [0], [0], [1], [0, 0, 1, 1], [], []>} : vector<32x128xf32>, vector<128x128xf32>, vector<32x128xf32> -> vector<32x128xf32>
    %c127_i32_154 = arith.constant 127 : i32
    %495 = tpu.dynamic_rotate %494 by %c127_i32_154 dim 1 : vector<32x128xf32>, i32 -> vector<32x128xf32>
    %496 = vector.extract_strided_slice %495 {offsets = [0, 0], sizes = [8, 128], strides = [1, 1]} : vector<32x128xf32> to vector<8x128xf32>
    %497 = vector.extract_strided_slice %494 {offsets = [8, 0], sizes = [8, 128], strides = [1, 1]} : vector<32x128xf32> to vector<8x128xf32>
    %498 = arith.addf %496, %497 : vector<8x128xf32>
    %499 = vector.extract_strided_slice %495 {offsets = [16, 0], sizes = [8, 128], strides = [1, 1]} : vector<32x128xf32> to vector<8x128xf32>
    %500 = vector.extract_strided_slice %494 {offsets = [24, 0], sizes = [8, 128], strides = [1, 1]} : vector<32x128xf32> to vector<8x128xf32>
    %501 = arith.addf %499, %500 : vector<8x128xf32>
    %502 = tpu.concatenate %498, %501 in 0 : vector<8x128xf32>, vector<8x128xf32> -> vector<16x128xf32>
    %c0_155 = arith.constant 0 : index
    %c0_156 = arith.constant 0 : index
    %c0_157 = arith.constant 0 : index
    %503 = vector.load %arg10[%c0_155, %c0_156, %c0_157] : memref<1x16x128xf32, #tpu.memory_space<vmem>>, vector<1x16x128xf32>
    %504 = vector.shape_cast %503 : vector<1x16x128xf32> to vector<16x128xf32>
    %505 = vector.shape_cast %502 : vector<16x128xf32> to vector<1x16x128xf32>
    tpu.vector_store %arg10[%c0_155, %c0_156, %c0_157], %505 {strides = array<i32>} : memref<1x16x128xf32, #tpu.memory_space<vmem>>, vector<1x16x128xf32>,
    return
  }
  func.func @transform_0(%arg0: i32) -> (i32, i32, i32) {
    %c0_i32 = arith.constant 0 : i32
    %c0_i32_0 = arith.constant 0 : i32
    %c0_i32_1 = arith.constant 0 : i32
    return %arg0, %c0_i32, %c0_i32_0 : i32, i32, i32
  }
  func.func @transform_1(%arg0: i32) -> (i32, i32) {
    %c0_i32 = arith.constant 0 : i32
    %c0_i32_0 = arith.constant 0 : i32
    %c0_i32_1 = arith.constant 0 : i32
    return %c0_i32, %c0_i32_0 : i32, i32
  }
  func.func @transform_2(%arg0: i32) -> (i32, i32) {
    %c0_i32 = arith.constant 0 : i32
    %c0_i32_0 = arith.constant 0 : i32
    %c0_i32_1 = arith.constant 0 : i32
    return %c0_i32, %c0_i32_0 : i32, i32
  }
  func.func @transform_3(%arg0: i32) -> (i32, i32) {
    %c0_i32 = arith.constant 0 : i32
    %c0_i32_0 = arith.constant 0 : i32
    %c0_i32_1 = arith.constant 0 : i32
    return %c0_i32, %c0_i32_0 : i32, i32
  }
  func.func @transform_4(%arg0: i32) -> (i32, i32, i32) {
    %c0_i32 = arith.constant 0 : i32
    %c0_i32_0 = arith.constant 0 : i32
    %c0_i32_1 = arith.constant 0 : i32
    %c0_i32_2 = arith.constant 0 : i32
    return %c0_i32, %c0_i32_0, %c0_i32_1 : i32, i32, i32
  }
  func.func @transform_5(%arg0: i32) -> (i32, i32, i32) {
    %c0_i32 = arith.constant 0 : i32
    %c0_i32_0 = arith.constant 0 : i32
    %c0_i32_1 = arith.constant 0 : i32
    %c0_i32_2 = arith.constant 0 : i32
    return %c0_i32, %c0_i32_0, %c0_i32_1 : i32, i32, i32
  }
  func.func @transform_6(%arg0: i32) -> (i32, i32, i32) {
    %c0_i32 = arith.constant 0 : i32
    %c0_i32_0 = arith.constant 0 : i32
    %c0_i32_1 = arith.constant 0 : i32
    %c0_i32_2 = arith.constant 0 : i32
    return %c0_i32, %c0_i32_0, %c0_i32_1 : i32, i32, i32
  }
  func.func @transform_7(%arg0: i32) -> (i32, i32) {
    %c0_i32 = arith.constant 0 : i32
    %c0_i32_0 = arith.constant 0 : i32
    %c0_i32_1 = arith.constant 0 : i32
    return %c0_i32, %c0_i32_0 : i32, i32
  }
  func.func @transform_8(%arg0: i32) -> (i32, i32) {
    %c0_i32 = arith.constant 0 : i32
    %c0_i32_0 = arith.constant 0 : i32
    %c0_i32_1 = arith.constant 0 : i32
    return %c0_i32, %c0_i32_0 : i32, i32
  }
  func.func @transform_9(%arg0: i32) -> (i32, i32, i32) {
    %c0_i32 = arith.constant 0 : i32
    %c0_i32_0 = arith.constant 0 : i32
    %c0_i32_1 = arith.constant 0 : i32
    return %arg0, %c0_i32, %c0_i32_0 : i32, i32, i32
  }
}

</mosaic_0001>

<bundles_post_ra>
// kernel: conv_tasnet_forward.1
= control target key start
LH: loop header
LB: loop body
LE: loop exit
PB: predicated region body
PF: predicated region fallthrough
CT: control target
= control target key end

     0   :  { %s6403_s30 = smov 0   ;;  %s8645_s0 = inlined_call_operand.vmem [shape: f32[2,16,128], index: 0, kind: input, shape index: {}]   ;;  %s8646_s1 = inlined_call_operand.vmem [shape: f32[64,16], index: 1, kind: input, shape index: {}]   ;;  %s8647_s2 = inlined_call_operand.vmem [shape: f32[128,4], index: 2, kind: input, shape index: {}]   ;;  %s8648_s3 = inlined_call_operand.vmem [shape: f32[32,64], index: 3, kind: input, shape index: {}]   ;;  %s8649_s4 = inlined_call_operand.vmem [shape: f32[4,64,32], index: 4, kind: input, shape index: {}]   ;;  %s8650_s5 = inlined_call_operand.vmem [shape: f32[4,64,10], index: 5, kind: input, shape index: {}]   ;;  %s8651_s6 = inlined_call_operand.vmem [shape: f32[4,64,64], index: 6, kind: input, shape index: {}]   ;;  %s8652_s7 = inlined_call_operand.vmem [shape: f32[128,32], index: 7, kind: input, shape index: {}]   ;;  %s8653_s8 = inlined_call_operand.vmem [shape: f32[32,128], index: 8, kind: input, shape index: {}]   ;;  %s8654_s9 = inlined_call_operand.vmem [shape: f32[2,16,128], index: 9, kind: output, shape index: {}]  }
   0x1 LB: > { %s5111_s10 = sadd.s32 4294967295, %s6336_s30   ;;  %p5115_p0 = scmp.ge.s32.totalorder %s6336_s30, 1  ;;  %s6336_s30 = sphi %s6403_s30, %s19_s30  }
   0x2   : > { %p287_p1 = scmp.lt.s32.totalorder %s6336_s30, 3 }
   0x4   : > { %p288_p2 = pnand %p5115_p0, %p287_p1 }
   0x6   : > { %291 = sbr.rel (%p288_p2) target bundleno = 6284 (0x188c), region = 56 }
   0xd   : > { %p323_p3 = scmp.lt.s32.totalorder %s5111_s10, 1  ;;  %v335_v0 = vld [vmem:[%s8646_s1] sm:$0xff]  ;;  %vm343_vm0 = vcmask 130048   ;;  %v336_v4 = vld [vmem:[%s8646_s1 + $0x8] sm:$0xff]  ;;  %v337_v5 = vld [vmem:[%s8646_s1 + $0x10] sm:$0xff]  ;;  %v8667_v12 = vmov 0  }
   0xe   : > { %5482 = vmatprep.mubr.msk.f32.mxu0 %vm343_vm0, %v335_v0  ;;  %v338_v6 = vld [vmem:[%s8646_s1 + $0x18] sm:$0xff]  ;;  %v339_v7 = vld [vmem:[%s8646_s1 + $0x20] sm:$0xff]  ;;  %v340_v8 = vld [vmem:[%s8646_s1 + $0x28] sm:$0xff]  ;;  %6039 = vset.pattern.permute.xlu1 %v8667_v12  ;;  %v8665_v13 = vmov 1   ;;  %vm668_vm1 = vcmask 523264   ;;  %s6341_s19 = smov 0.0  }
   0xf   : > { %s8864_s10 = smov (!%p323_p3, %s5111_s10), 1  ;;  %v341_v9 = vld [vmem:[%s8646_s1 + $0x30] sm:$0xff]  ;;  %v342_v10 = vld [vmem:[%s8646_s1 + $0x38] sm:$0xff]  ;;  %v6454_v11 = vld [vmem:[%s8647_s2] sm:$0xff]  ;;  %6040 = vset.pattern.permute.xlu0 %v8665_v13  ;;  %vm824_vm2 = vcmask 261120  }
  0x10   : > { %s5302_s13 = sshll.u32 %s8864_s10, 4  ;;  %562 = vperm.xlu1 %6039, %v6454_v11   ;;  %v6462_v14 = vld [vmem:[%s8647_s2 + $0x8] sm:$0xff]  ;;  %v6470_v15 = vld [vmem:[%s8647_s2 + $0x10] sm:$0xff]  ;;  %v6477_v16 = vld [vmem:[%s8647_s2 + $0x18] sm:$0xff] }
  0x11   : > { %s327_s16 = scalar_lea.vmem %s8645_s0, %s5302_s13  ;;  %v477_v17 = vld [vmem:[%s8647_s2 + $0x20] sm:$0xff]  ;;  %v478_v18 = vld [vmem:[%s8647_s2 + $0x28] sm:$0xff]  ;;  %v479_v49 = vld [vmem:[%s8647_s2 + $0x30] sm:$0xff] }
  0x12   : > { %v333_v1 = vld [vmem:[%s327_s16] sm:$0xff]  ;;  %v334_v2 = vld [vmem:[%s327_s16 + $0x8] sm:$0xff]  ;;  %v480_v50 = vld [vmem:[%s8647_s2 + $0x38] sm:$0xff] }
  0x13   : > { %v5778_v3 = vpack.c.bf16 %v334_v2, %v333_v1  ;;  %v648_v1 = vld [vmem:[%s8648_s3] sm:$0xff]  ;;  %v8663_v2 = vmov 2  }
  0x14   : > { %567 = vperm.xlu1 %6039, %v6462_v14   ;;  %5510 = vmatprep.mubr.msk.f32.mxu1 %vm668_vm1, %v648_v1 }
  0x15   : > { %5779 = vmatprep.subr.bf16.mxu0 %v5778_v3 }
  0x16   : > { %5781 = vmatpush3.bf16.msra.mxu0 %v5778_v3 }
  0x18   : > { %6041 = vset.pattern.permute.xlu1 %v8665_v13 }
  0x19   : > { %5483 = vmatmul.mubr.msk.f32.vlgmr.msra.gmra.mrb[0].mxu0 %vm343_vm0, %v336_v4  ;;  %613 = vperm.xlu1 %6041, %v6462_v14  }
  0x1a   : > { %5485 = vmatprep.mubr.msk.f32.mxu0 %vm343_vm0, %v337_v5 }
  0x1d   : > { %5486 = vmatmul.mubr.msk.f32.gmra.mrb[2].mxu0 %vm343_vm0, %v338_v6  ;;  %6042 = vset.pattern.permute.xlu1 %v8667_v12 }
  0x1e   : > { %5488 = vmatprep.mubr.msk.f32.mxu0 %vm343_vm0, %v339_v7  ;;  %572 = vperm.xlu1 %6042, %v6470_v15  }
  0x21   : > { %5489 = vmatmul.mubr.msk.f32.gmra.mrb[4].mxu0 %vm343_vm0, %v340_v8 }
  0x22   : > { %5491 = vmatprep.mubr.msk.f32.mxu0 %vm343_vm0, %v341_v9  ;;  %577 = vperm.xlu1 %6042, %v6477_v16  }
  0x25   : > { %5492 = vmatmul.mubr.msk.f32.gmra.mrb[6].mxu0 %vm343_vm0, %v342_v10 }
  0x26   : > { %6043 = vset.pattern.permute.xlu1 %v8665_v13 }
  0x27   : > { %617 = vperm.xlu1 %6043, %v6470_v15  }
  0x2b   : > { %621 = vperm.xlu1 %6043, %v6477_v16  }
  0x2f   : > { %6044 = vset.pattern.permute.xlu1 %v8667_v12 }
  0x30   : > { %582 = vperm.xlu1 %6044, %v477_v17  }
  0x34   : > { %587 = vperm.xlu1 %6044, %v478_v18  }
  0x38   : > { %6045 = vset.pattern.permute.xlu1 %v8665_v13 }
  0x39   : > { %625 = vperm.xlu1 %6045, %v477_v17  }
  0x3d   : > { %629 = vperm.xlu1 %6045, %v478_v18  }
  0x41   : > { %6046 = vset.pattern.permute.xlu1 %v8667_v12 }
  0x42   : > { %592 = vperm.xlu1 %6046, %v479_v49  }
  0x46   : > { %597 = vperm.xlu1 %6046, %v480_v50  }
  0x4a   : > { %6047 = vset.pattern.permute.xlu1 %v8665_v13 }
  0x4b   : > { %637 = vperm.xlu1 %6047, %v480_v50  }
  0x4f   : > { %6049 = vset.pattern.permute.xlu1 %v8663_v2 }
  0x50   : > { %657 = vperm.xlu1 %6049, %v6462_v14  }
  0x54   : > { %661 = vperm.xlu1 %6049, %v6470_v15  }
  0x58   : > { %6050 = vset.pattern.permute.xlu1 %v8667_v12 }
  0x8f   : > { %v563_v3 = vpop.permute.xlu1 %562 }
  0x93   : > { %v568_v5 = vpop.permute.xlu1 %567 }
  0xec   : > { %v6492_v19 = vpop.f32.mrb[0].mxu0 }
  0xed   : > { %8758 = vst [vmem:[#allocation2_spill] sm:$0xff] %v6492_v19  ;;  %v506_v20 = vmul.f32 %v6492_v19, %v6492_v19  ;;  %v6496_v21 = vpop.f32.mrb[1].mxu0 }
  0xee   : > { %8759 = vst [vmem:[#allocation3_spill] sm:$0xff] %v6496_v21  ;;  %v489_v22 = vadd.f32 %v6492_v19, %v6496_v21  ;;  %v505_v23 = vmul.f32 %v6496_v21, %v6496_v21 }
  0xf0   : > { %v513_v24 = vadd.f32 %v506_v20, %v505_v23  ;;  %v6502_v25 = vpop.f32.mrb[2].mxu0 }
  0xf1   : > { %8760 = vst [vmem:[#allocation4_spill] sm:$0xff] %v6502_v25  ;;  %v6504_v26 = vpop.f32.mrb[3].mxu0  ;;  %v508_v29 = vmul.f32 %v6502_v25, %v6502_v25 }
  0xf2   : > { %8761 = vst [vmem:[#allocation5_spill] sm:$0xff] %v6504_v26  ;;  %v490_v27 = vadd.f32 %v489_v22, %v6504_v26  ;;  %v507_v28 = vmul.f32 %v6504_v26, %v6504_v26 }
  0xf4   : > { %v514_v30 = vadd.f32 %v513_v24, %v507_v28  ;;  %v6511_v31 = vpop.f32.mrb[4].mxu0  ;;  %v491_v32 = vadd.f32 %v6502_v25, %v490_v27 }
  0xf5   : > { %8762 = vst [vmem:[#allocation6_spill] sm:$0xff] %v6511_v31  ;;  %v6514_v33 = vpop.f32.mrb[5].mxu0  ;;  %v510_v39 = vmul.f32 %v6511_v31, %v6511_v31 }
  0xf6   : > { %8763 = vst [vmem:[#allocation7_spill] sm:$0xff] %v6514_v33  ;;  %v509_v34 = vmul.f32 %v6514_v33, %v6514_v33  ;;  %v492_v35 = vadd.f32 %v491_v32, %v6514_v33  ;;  %v515_v36 = vadd.f32 %v514_v30, %v508_v29 }
  0xf8   : > { %v6519_v37 = vpop.f32.mrb[6].mxu0  ;;  %v493_v38 = vadd.f32 %v6511_v31, %v492_v35  ;;  %v516_v40 = vadd.f32 %v515_v36, %v509_v34 }
  0xf9   : > { %8764 = vst [vmem:[#allocation8_spill] sm:$0xff] %v6519_v37  ;;  %v6524_v41 = vpop.f32.mrb[7].mxu0  ;;  %v512_v46 = vmul.f32 %v6519_v37, %v6519_v37 }
  0xfa   : > { %8765 = vst [vmem:[#allocation9_spill] sm:$0xff] %v6524_v41  ;;  %v494_v42 = vadd.f32 %v493_v38, %v6524_v41  ;;  %v511_v43 = vmul.f32 %v6524_v41, %v6524_v41  ;;  %v517_v44 = vadd.f32 %v516_v40, %v510_v39 }
  0xfc   : > { %v495_v45 = vadd.f32 %v6519_v37, %v494_v42  ;;  %v518_v47 = vadd.f32 %v517_v44, %v511_v43 }
  0xfe   : > { %496 = vadd.xlane.f32.xlu0 %v495_v45  ;;  %v519_v48 = vadd.f32 %v518_v47, %v512_v46 }
 0x102   : > { %520 = vadd.xlane.f32.xlu0 %v519_v48 }
 0x118   : > { %609 = vperm.xlu0 %6040, %v6454_v11  }
 0x11c   : > { %633 = vperm.xlu0 %6040, %v479_v49  }
 0x120   : > { %6048 = vset.pattern.permute.xlu0 %v8663_v2 }
 0x121   : > { %653 = vperm.xlu0 %6048, %v6454_v11  }
 0x125   : > { %665 = vperm.xlu0 %6048, %v6477_v16   ;;  %v614_v16 = vpop.permute.xlu1 %613 }
 0x129   : > { %6051 = vset.pattern.permute.xlu0 %v8667_v12  ;;  %v573_v18 = vpop.permute.xlu1 %572 }
 0x12d   : > { %v578_v20 = vpop.permute.xlu1 %577 }
 0x131   : > { %v618_v23 = vpop.permute.xlu1 %617 }
 0x135   : > { %v622_v24 = vpop.permute.xlu1 %621 }
 0x139   : > { %v583_v27 = vpop.permute.xlu1 %582 }
 0x13d   : > { %v588_v28 = vpop.permute.xlu1 %587 }
 0x141   : > { %v626_v29 = vpop.permute.xlu1 %625 }
 0x145   : > { %v630_v30 = vpop.permute.xlu1 %629 }
 0x149   : > { %v593_v32 = vpop.permute.xlu1 %592 }
 0x14d   : > { %v598_v34 = vpop.permute.xlu1 %597 }
 0x151   : > { %v638_v43 = vpop.permute.xlu1 %637 }
 0x18b   : > { %v497_v51 = vpop.xlane.xlu0 %496 }
 0x18c   : > { %v498_v52 = vrot.slane %v497_v51, 4 }
 0x18e   : > { %v499_v53 = vadd.f32 %v498_v52, %v497_v51 }
 0x18f   : > { %v521_v54 = vpop.xlane.xlu0 %520 }
 0x190   : > { %v522_v55 = vrot.slane %v521_v54, 4  ;;  %v500_v56 = vrot.slane %v499_v53, 2 }
 0x192   : > { %v523_v57 = vadd.f32 %v522_v55, %v521_v54  ;;  %v501_v58 = vadd.f32 %v500_v56, %v499_v53 }
 0x194   : > { %v502_v59 = vrot.slane %v501_v58, 1  ;;  %v524_v60 = vrot.slane %v523_v57, 2 }
 0x196   : > { %v503_v61 = vadd.f32 %v502_v59, %v501_v58  ;;  %v525_v62 = vadd.f32 %v524_v60, %v523_v57 }
 0x197   : > { %v610_v35 = vpop.permute.xlu0 %609 }
 0x198   : > { %5962 = vpush %v503_v61  ;;  %v526_v63 = vrot.slane %v525_v62, 1 }
 0x19a   : > { %v527_v0 = vadd.f32 %v526_v63, %v525_v62 }
 0x19b   : > { %v634_v44 = vpop.permute.xlu0 %633 }
 0x19c   : > { %5964 = vpush %v527_v0 }
 0x1c9   : > { %s5963_s12 = spop %5962 }
 0x1ca   : > { %s531_s14 = smul.f32 0.00012207031, %s5963_s12 }
 0x1cc   : > { %v542_v4 = vstv %s531_s14  ;;  %s535_s15 = smul.f32 %s531_s14, %s531_s14 }
 0x1cd   : > { %s5965_s16 = spop %5964  ;;  %v550_v6 = vsub.f32 %v6519_v37, %v542_v4  ;;  %v543_v7 = vsub.f32 %v6496_v21, %v542_v4  ;;  %v549_v8 = vsub.f32 %v6524_v41, %v542_v4  ;;  %v544_v9 = vsub.f32 %v6492_v19, %v542_v4 }
 0x1ce   : > { %s534_s17 = smul.f32 0.00012207031, %s5965_s16  ;;  %v545_v10 = vsub.f32 %v6504_v26, %v542_v4  ;;  %v546_v11 = vsub.f32 %v6502_v25, %v542_v4  ;;  %v547_v14 = vsub.f32 %v6514_v33, %v542_v4  ;;  %v548_v15 = vsub.f32 %v6511_v31, %v542_v4 }
 0x1d0   : > { %s536_s18 = ssub.f32 %s534_s17, %s535_s15 }
 0x1d2   : > { %s537_s20 = smax.f32 %s6341_s19, %s536_s18  ;;  %s6346_s18 = smov 1  }
 0x1d3   : > { %s538_s21 = sadd.f32 1e-08, %s537_s20  ;;  %s6347_s20 = smov 127  }
 0x1d5   : > { %v539_v17 = vstv %s538_s21 }
 0x1d6   : > { %6228 = vrsqrt.f32 %v539_v17  ;;  %v6609_v17 = vld [vmem:[%s8650_s5 + $0x30] sm:$0xff] }
 0x1d7   : > { %8766 = vst [vmem:[#allocation10_spill] sm:$0xff] %v6609_v17 }
 0x1e0   : > { %v6229_v22 = vpop.eup %6228 }
 0x1e1   : > { %5966 = vpush %v6229_v22  ;;  %v654_v22 = vpop.permute.xlu0 %653 }
 0x212   : > { %s5967_s22 = spop %5966 }
 0x213   : > { %v551_v36 = vstv %s5967_s22 }
 0x214   : > { %v559_v38 = vmul.f32 %v551_v36, %v550_v6  ;;  %v552_v39 = vmul.f32 %v551_v36, %v543_v7  ;;  %v558_v40 = vmul.f32 %v551_v36, %v549_v8  ;;  %v553_v42 = vmul.f32 %v551_v36, %v544_v9  ;;  %v651_v8 = vld [vmem:[%s8648_s3 + $0x18] sm:$0xff]  ;;  %v776_v9 = vld [vmem:[%s8649_s4] sm:$0xff] }
 0x215   : > { %v554_v45 = vmul.f32 %v551_v36, %v545_v10  ;;  %v555_v46 = vmul.f32 %v551_v36, %v546_v11  ;;  %v556_v47 = vmul.f32 %v551_v36, %v547_v14  ;;  %v557_v48 = vmul.f32 %v551_v36, %v548_v15  ;;  %5524 = vmatprep.mubr.msk.f32.mxu0 %vm824_vm2, %v776_v9  ;;  %v6580_v10 = vld [vmem:[%s8650_s5] sm:$0xff]  ;;  %v6586_v11 = vld [vmem:[%s8650_s5 + $0x8] sm:$0xff]  ;;  %v6591_v14 = vld [vmem:[%s8650_s5 + $0x10] sm:$0xff] }
 0x216   : > { %v607_v49 = vmul.f32 %v598_v34, %v559_v38  ;;  %v600_v50 = vmul.f32 %v563_v3, %v552_v39  ;;  %v606_v51 = vmul.f32 %v593_v32, %v558_v40  ;;  %v601_v52 = vmul.f32 %v568_v5, %v553_v42  ;;  %v649_v3 = vld [vmem:[%s8648_s3 + $0x8] sm:$0xff]  ;;  %v650_v5 = vld [vmem:[%s8648_s3 + $0x10] sm:$0xff]  ;;  %786 = vperm.xlu1 %6050, %v6580_v10   ;;  %v6597_v15 = vld [vmem:[%s8650_s5 + $0x20] sm:$0xff]  ;;  %v666_v32 = vpop.permute.xlu0 %665 }
 0x217   : > { %v602_v53 = vmul.f32 %v573_v18, %v554_v45  ;;  %v603_v54 = vmul.f32 %v578_v20, %v555_v46  ;;  %v604_v55 = vmul.f32 %v583_v27, %v556_v47  ;;  %v605_v56 = vmul.f32 %v588_v28, %v557_v48  ;;  %791 = vperm.xlu0 %6051, %v6586_v11   ;;  %v6615_v18 = vld [vmem:[%s8650_s5 + $0x28] sm:$0xff]  ;;  %v6622_v20 = vld [vmem:[%s8650_s5 + $0x38] sm:$0xff]  ;;  %v780_v45 = vld [vmem:[%s8649_s4 + $0x20] sm:$0xff] }
 0x218   : > { %v640_v57 = vadd.f32 %v610_v35, %v600_v50  ;;  %v647_v58 = vadd.f32 %v638_v43, %v607_v49  ;;  %v646_v59 = vadd.f32 %v634_v44, %v606_v51  ;;  %v641_v60 = vadd.f32 %v614_v16, %v601_v52  ;;  %v6603_v16 = vld [vmem:[%s8650_s5 + $0x18] sm:$0xff]  ;;  %8767 = vst [vmem:[#allocation11_spill] sm:$0xff] %v6615_v18  ;;  %v777_v42 = vld [vmem:[%s8649_s4 + $0x8] sm:$0xff]  ;;  %v778_v43 = vld [vmem:[%s8649_s4 + $0x10] sm:$0xff] }
 0x219   : > { %v642_v61 = vadd.f32 %v618_v23, %v602_v53  ;;  %v643_v62 = vadd.f32 %v622_v24, %v603_v54  ;;  %v644_v63 = vadd.f32 %v626_v29, %v604_v55  ;;  %v645_v0 = vadd.f32 %v630_v30, %v605_v56  ;;  %8768 = vst [vmem:[#allocation12_spill] sm:$0xff] %v6622_v20  ;;  %v658_v23 = vpop.permute.xlu1 %657  ;;  %v779_v44 = vld [vmem:[%s8649_s4 + $0x18] sm:$0xff]  ;;  %v781_v46 = vld [vmem:[%s8649_s4 + $0x28] sm:$0xff]  ;;  %v782_v47 = vld [vmem:[%s8649_s4 + $0x30] sm:$0xff] }
 0x21a   : > { %v5794_v1 = vpack.c.bf16 %v647_v58, %v646_v59  ;;  %v5782_v4 = vpack.c.bf16 %v641_v60, %v640_v57  ;;  %796 = vperm.xlu1 %6050, %v6591_v14   ;;  %v783_v48 = vld [vmem:[%s8649_s4 + $0x38] sm:$0xff] }
 0x21b   : > { %v5786_v6 = vpack.c.bf16 %v643_v62, %v642_v61  ;;  %v5790_v7 = vpack.c.bf16 %v645_v0, %v644_v63  ;;  %806 = vperm.xlu0 %6051, %v6597_v15  }
 0x21c   : > { %5783 = vmatprep.subr.bf16.mxu1 %v5782_v4 }
 0x21d   : > { %5785 = vmatpush3.bf16.msra.mxu1 %v5782_v4  ;;  %v662_v35 = vpop.permute.xlu1 %661 }
 0x21e   : > { %5787 = vmatprep.subr.bf16.mxu1 %v5786_v6  ;;  %801 = vperm.xlu1 %6050, %v6603_v16  }
 0x21f   : > { %816 = vperm.xlu0 %6051, %v6609_v17  }
 0x221   : > { %5789 = vmatpush3.bf16.msra.mxu1 %v5786_v6 }
 0x222   : > { %5791 = vmatprep.subr.bf16.mxu1 %v5790_v7  ;;  %811 = vperm.xlu1 %6050, %v6615_v18  }
 0x223   : > { %6052 = vset.pattern.permute.xlu0 %v8665_v13 }
 0x225   : > { %5793 = vmatpush3.bf16.msra.mxu1 %v5790_v7 }
 0x226   : > { %5795 = vmatprep.subr.bf16.mxu1 %v5794_v1  ;;  %821 = vperm.xlu1 %6050, %v6622_v20  }
 0x229   : > { %5797 = vmatpush3.bf16.msra.mxu1 %v5794_v1 }
 0x22a   : > { %6053 = vset.pattern.permute.xlu1 %v8665_v13 }
 0x22c   : > { %5511 = vmatmul.mubr.msk.f32.vlgmr.msra.gmra.mrb[0].mxu1 %vm668_vm1, %v649_v3 }
 0x22d   : > { %5513 = vmatprep.mubr.msk.f32.mxu1 %vm668_vm1, %v650_v5 }
 0x230   : > { %5514 = vmatmul.mubr.msk.f32.gmra.mrb[2].mxu1 %vm668_vm1, %v651_v8 }
 0x295   : > { %v787_v49 = vpop.permute.xlu1 %786 }
 0x296   : > { %v792_v51 = vpop.permute.xlu0 %791 }
 0x299   : > { %v797_v50 = vpop.permute.xlu1 %796 }
 0x29a   : > { %v807_v6 = vpop.permute.xlu0 %806 }
 0x29d   : > { %v802_v52 = vpop.permute.xlu1 %801 }
 0x2a1   : > { %v812_v63 = vpop.permute.xlu1 %811 }
 0x2ff   : > { %v5512_v24 = vpop.f32.mrb[0].mxu1 }
 0x300   : > { %v6627_v27 = vadd.f32 %v5512_v24, %v658_v23  ;;  %v747_v28 = vpop.f32.mrb[1].mxu1 }
 0x301   : > { %v6629_v29 = vadd.f32 %v747_v28, %v654_v22 }
 0x302   : > { %8769 = vst [vmem:[#allocation13_spill] sm:$0xff] %v6627_v27 }
 0x303   : > { %8770 = vst [vmem:[#allocation14_spill] sm:$0xff] %v6629_v29  ;;  %v5798_v30 = vpack.c.bf16 %v6627_v27, %v6629_v29  ;;  %v5515_v34 = vpop.f32.mrb[2].mxu1 }
 0x304   : > { %v6633_v36 = vadd.f32 %v5515_v34, %v666_v32  ;;  %v757_v38 = vpop.f32.mrb[3].mxu1 }
 0x305   : > { %v6635_v39 = vadd.f32 %v757_v38, %v662_v35  ;;  %5799 = vmatprep.subr.bf16.mxu0 %v5798_v30 }
 0x306   : > { %8771 = vst [vmem:[#allocation15_spill] sm:$0xff] %v6633_v36  ;;  %5801 = vmatpush3.bf16.msra.mxu0 %v5798_v30 }
 0x307   : > { %8772 = vst [vmem:[#allocation16_spill] sm:$0xff] %v6635_v39  ;;  %v5802_v40 = vpack.c.bf16 %v6633_v36, %v6635_v39 }
 0x309   : > { %5803 = vmatprep.subr.bf16.mxu0 %v5802_v40 }
 0x30a   : > { %5805 = vmatpush3.bf16.msra.mxu0 %v5802_v40  ;;  %v822_v40 = vpop.permute.xlu1 %821 }
 0x30d   : > { %5525 = vmatmul.mubr.msk.f32.vlgmr.msra.gmra.mrb[8].mxu0 %vm824_vm2, %v777_v42 }
 0x30e   : > { %5527 = vmatprep.mubr.msk.f32.mxu0 %vm824_vm2, %v778_v43 }
 0x311   : > { %5528 = vmatmul.mubr.msk.f32.gmra.mrb[10].mxu0 %vm824_vm2, %v779_v44  ;;  %v817_v44 = vpop.permute.xlu0 %816 }
 0x312   : > { %5530 = vmatprep.mubr.msk.f32.mxu0 %vm824_vm2, %v780_v45 }
 0x315   : > { %5531 = vmatmul.mubr.msk.f32.gmra.mrb[12].mxu0 %vm824_vm2, %v781_v46 }
 0x316   : > { %5533 = vmatprep.mubr.msk.f32.mxu0 %vm824_vm2, %v782_v47 }
 0x319   : > { %5534 = vmatmul.mubr.msk.f32.gmra.mrb[14].mxu0 %vm824_vm2, %v783_v48 }
 0x3e0   : > { %v5526_v53 = vpop.f32.mrb[8].mxu0 }
 0x3e1   : > { %v921_v54 = vadd.f32 %v5526_v53, %v792_v51  ;;  %v915_v55 = vpop.f32.mrb[9].mxu0 }
 0x3e2   : > { %v916_v56 = vadd.f32 %v915_v55, %v787_v49 }
 0x3e3   : > { %vm955_vm3 = vcmp.ge.f32.partialorder %v921_v54, 0.0  ;;  %v963_v57 = vmul.f32 0.25, %v921_v54 }
 0x3e4   : > { %vm954_vm4 = vcmp.ge.f32.partialorder %v916_v56, 0.0  ;;  %v962_v58 = vmul.f32 0.25, %v916_v56  ;;  %v5529_v59 = vpop.f32.mrb[10].mxu0 }
 0x3e5   : > { %v6667_v60 = vsel %vm955_vm3, %v921_v54, %v963_v57  ;;  %v931_v61 = vadd.f32 %v5529_v59, %v802_v52  ;;  %v925_v62 = vpop.f32.mrb[11].mxu0 }
 0x3e6   : > { %v995_v0 = vmul.f32 %v6667_v60, %v6667_v60  ;;  %v6671_v1 = vsel %vm954_vm4, %v916_v56, %v962_v58  ;;  %v926_v4 = vadd.f32 %v925_v62, %v797_v50 }
 0x3e7   : > { %v994_v7 = vmul.f32 %v6671_v1, %v6671_v1  ;;  %v965_v3 = vmul.f32 0.25, %v931_v61  ;;  %vm957_vm5 = vcmp.ge.f32.partialorder %v931_v61, 0.0  ;;  %v978_v9 = vadd.f32 %v6667_v60, %v6671_v1 }
 0x3e8   : > { %vm956_vm6 = vcmp.ge.f32.partialorder %v926_v4, 0.0  ;;  %v964_v5 = vmul.f32 0.25, %v926_v4  ;;  %v5532_v8 = vpop.f32.mrb[12].mxu0 }
 0x3e9   : > { %v941_v22 = vadd.f32 %v5532_v8, %v812_v63  ;;  %v935_v23 = vpop.f32.mrb[13].mxu0  ;;  %v1002_v24 = vadd.f32 %v995_v0, %v994_v7  ;;  %v6679_v32 = vsel %vm957_vm5, %v931_v61, %v965_v3 }
 0x3ea   : > { %v6677_v28 = vsel %vm956_vm6, %v926_v4, %v964_v5  ;;  %v936_v30 = vadd.f32 %v935_v23, %v807_v6  ;;  %v997_v49 = vmul.f32 %v6679_v32, %v6679_v32  ;;  %v8657_v23 = vmov 5  }
 0x3eb   : > { %v979_v34 = vadd.f32 %v978_v9, %v6677_v28  ;;  %v996_v35 = vmul.f32 %v6677_v28, %v6677_v28  ;;  %v967_v38 = vmul.f32 0.25, %v941_v22  ;;  %vm959_vm7 = vcmp.ge.f32.partialorder %v941_v22, 0.0 }
 0x3ec   : > { %vm958_vm8 = vcmp.ge.f32.partialorder %v936_v30, 0.0  ;;  %v966_v42 = vmul.f32 0.25, %v936_v30  ;;  %v5535_v43 = vpop.f32.mrb[14].mxu0  ;;  %v8661_v9 = vmov 3  }
 0x3ed   : > { %v1003_v45 = vadd.f32 %v1002_v24, %v996_v35  ;;  %v980_v46 = vadd.f32 %v979_v34, %v6679_v32  ;;  %v951_v47 = vadd.f32 %v5535_v43, %v822_v40  ;;  %v945_v48 = vpop.f32.mrb[15].mxu0  ;;  %v6689_v52 = vsel %vm959_vm7, %v941_v22, %v967_v38 }
 0x3ee   : > { %v6687_v50 = vsel %vm958_vm8, %v936_v30, %v966_v42  ;;  %v946_v51 = vadd.f32 %v945_v48, %v817_v44  ;;  %v999_v59 = vmul.f32 %v6689_v52, %v6689_v52  ;;  %v8659_v22 = vmov 4  }
 0x3ef   : > { %v981_v53 = vadd.f32 %v980_v46, %v6687_v50  ;;  %v998_v54 = vmul.f32 %v6687_v50, %v6687_v50  ;;  %v969_v55 = vmul.f32 0.25, %v951_v47  ;;  %vm961_vm9 = vcmp.ge.f32.partialorder %v951_v47, 0.0 }
 0x3f0   : > { %vm960_vm10 = vcmp.ge.f32.partialorder %v946_v51, 0.0  ;;  %v968_v56 = vmul.f32 0.25, %v946_v51  ;;  %v1004_v57 = vadd.f32 %v1003_v45, %v997_v49  ;;  %v8655_v24 = vmov 6  }
 0x3f1   : > { %v982_v58 = vadd.f32 %v981_v53, %v6689_v52  ;;  %v6699_v63 = vsel %vm961_vm9, %v951_v47, %v969_v55 }
 0x3f2   : > { %v6697_v61 = vsel %vm960_vm10, %v946_v51, %v968_v56  ;;  %v1005_v62 = vadd.f32 %v1004_v57, %v998_v54  ;;  %v1001_v3 = vmul.f32 %v6699_v63, %v6699_v63 }
 0x3f3   : > { %v983_v0 = vadd.f32 %v982_v58, %v6697_v61  ;;  %v1000_v4 = vmul.f32 %v6697_v61, %v6697_v61 }
 0x3f4   : > { %v1006_v6 = vadd.f32 %v1005_v62, %v999_v59 }
 0x3f5   : > { %v984_v7 = vadd.f32 %v983_v0, %v6699_v63 }
 0x3f6   : > { %v1007_v5 = vadd.f32 %v1006_v6, %v1000_v4 }
 0x3f7   : > { %985 = vadd.xlane.f32.xlu0 %v984_v7 }
 0x3f8   : > { %v1008_v8 = vadd.f32 %v1007_v5, %v1001_v3 }
 0x3fa   : > { %1009 = vadd.xlane.f32.xlu1 %v1008_v8 }
 0x40b   : > { %1054 = vperm.xlu1 %6053, %v6586_v11  }
 0x40d   : > { %1050 = vperm.xlu0 %6052, %v6580_v10  }
 0x40f   : > { %1058 = vperm.xlu1 %6053, %v6591_v14  }
 0x411   : > { %1074 = vperm.xlu0 %6052, %v6609_v17  }
 0x413   : > { %6054 = vset.pattern.permute.xlu1 %v8663_v2 }
 0x414   : > { %1090 = vperm.xlu1 %6054, %v6580_v10  }
 0x415   : > { %6059 = vset.pattern.permute.xlu0 %v8663_v2 }
 0x416   : > { %1102 = vperm.xlu0 %6059, %v6603_v16  }
 0x418   : > { %1094 = vperm.xlu1 %6054, %v6586_v11  }
 0x41a   : > { %1114 = vperm.xlu0 %6059, %v6609_v17  }
 0x41c   : > { %6055 = vset.pattern.permute.xlu1 %v8665_v13 }
 0x41d   : > { %1062 = vperm.xlu1 %6055, %v6603_v16  }
 0x41e   : > { %6063 = vset.pattern.permute.xlu0 %v8661_v9 }
 0x41f   : > { %1161 = vperm.xlu0 %6063, %v6586_v11  }
 0x421   : > { %6056 = vset.pattern.permute.xlu1 %v8663_v2 }
 0x422   : > { %1098 = vperm.xlu1 %6056, %v6591_v14  }
 0x423   : > { %1165 = vperm.xlu0 %6063, %v6591_v14  }
 0x426   : > { %6057 = vset.pattern.permute.xlu1 %v8665_v13 }
 0x427   : > { %1066 = vperm.xlu1 %6057, %v6597_v15   ;;  %1177 = vperm.xlu0 %6063, %v6615_v18  }
 0x42b   : > { %1070 = vperm.xlu1 %6057, %v6615_v18   ;;  %6071 = vset.pattern.permute.xlu0 %v8659_v22 }
 0x42c   : > { %1217 = vperm.xlu0 %6071, %v6603_v16  }
 0x42f   : > { %6058 = vset.pattern.permute.xlu1 %v8663_v2 }
 0x430   : > { %1106 = vperm.xlu1 %6058, %v6597_v15   ;;  %1221 = vperm.xlu0 %6071, %v6597_v15  }
 0x434   : > { %1110 = vperm.xlu1 %6058, %v6615_v18   ;;  %1229 = vperm.xlu0 %6071, %v6609_v17  }
 0x438   : > { %6060 = vset.pattern.permute.xlu1 %v8665_v13  ;;  %1233 = vperm.xlu0 %6071, %v6622_v20  }
 0x439   : > { %1078 = vperm.xlu1 %6060, %v6622_v20  }
 0x43c   : > { %6077 = vset.pattern.permute.xlu0 %v8657_v23 }
 0x43d   : > { %6061 = vset.pattern.permute.xlu1 %v8663_v2  ;;  %1280 = vperm.xlu0 %6077, %v6580_v10   ;;  %v766_v2 = vlaneseq }
 0x43e   : > { %1118 = vperm.xlu1 %6061, %v6622_v20  }
 0x43f   : > { %v6877_v12 = vand.u32 127, %v766_v2 }
 0x441   : > { %1308 = vperm.xlu0 %6077, %v6622_v20   ;;  %vm1145_vm11 = vcmp.ge.s32.totalorder %v6877_v12, 1  ;;  %vm1268_vm12 = vcmp.lt.s32.totalorder %v6877_v12, 127 }
 0x442   : > { %6062 = vset.pattern.permute.xlu1 %v8661_v9 }
 0x443   : > { %1157 = vperm.xlu1 %6062, %v6580_v10  }
 0x445   : > { %6079 = vset.pattern.permute.xlu0 %v8655_v24 }
 0x446   : > { %1328 = vperm.xlu0 %6079, %v6580_v10  }
 0x447   : > { %6064 = vset.pattern.permute.xlu1 %v8659_v22 }
 0x448   : > { %1205 = vperm.xlu1 %6064, %v6580_v10  }
 0x44a   : > { %1336 = vperm.xlu0 %6079, %v6591_v14  }
 0x44c   : > { %1209 = vperm.xlu1 %6064, %v6586_v11  }
 0x44e   : > { %1340 = vperm.xlu0 %6079, %v6603_v16  }
 0x450   : > { %1213 = vperm.xlu1 %6064, %v6591_v14  }
 0x452   : > { %1344 = vperm.xlu0 %6079, %v6597_v15  }
 0x454   : > { %6065 = vset.pattern.permute.xlu1 %v8657_v23 }
 0x455   : > { %1284 = vperm.xlu1 %6065, %v6586_v11  }
 0x459   : > { %6066 = vset.pattern.permute.xlu1 %v8661_v9 }
 0x45a   : > { %1169 = vperm.xlu1 %6066, %v6603_v16  }
 0x45e   : > { %6067 = vset.pattern.permute.xlu1 %v8657_v23 }
 0x45f   : > { %1288 = vperm.xlu1 %6067, %v6591_v14  }
 0x463   : > { %6068 = vset.pattern.permute.xlu1 %v8661_v9 }
 0x464   : > { %1173 = vperm.xlu1 %6068, %v6597_v15  }
 0x468   : > { %6069 = vset.pattern.permute.xlu1 %v8657_v23 }
 0x469   : > { %1292 = vperm.xlu1 %6069, %v6603_v16  }
 0x46d   : > { %6070 = vset.pattern.permute.xlu1 %v8655_v24 }
 0x46e   : > { %1332 = vperm.xlu1 %6070, %v6586_v11  }
 0x472   : > { %6072 = vset.pattern.permute.xlu1 %v8659_v22 }
 0x473   : > { %1225 = vperm.xlu1 %6072, %v6615_v18  }
 0x477   : > { %6073 = vset.pattern.permute.xlu1 %v8657_v23 }
 0x478   : > { %1296 = vperm.xlu1 %6073, %v6597_v15  }
 0x47c   : > { %6074 = vset.pattern.permute.xlu1 %v8661_v9 }
 0x47d   : > { %1181 = vperm.xlu1 %6074, %v6609_v17  }
 0x481   : > { %6075 = vset.pattern.permute.xlu1 %v8657_v23 }
 0x482   : > { %1300 = vperm.xlu1 %6075, %v6615_v18  }
 0x484   : > { %v986_v30 = vpop.xlane.xlu0 %985 }
 0x485   : > { %v987_v34 = vrot.slane %v986_v30, 4 }
 0x486   : > { %6076 = vset.pattern.permute.xlu1 %v8661_v9 }
 0x487   : > { %v988_v35 = vadd.f32 %v987_v34, %v986_v30  ;;  %v1010_v38 = vpop.xlane.xlu1 %1009  ;;  %1185 = vperm.xlu1 %6076, %v6622_v20  }
 0x488   : > { %v1011_v40 = vrot.slane %v1010_v38, 4 }
 0x489   : > { %v989_v42 = vrot.slane %v988_v35, 2 }
 0x48a   : > { %v1012_v43 = vadd.f32 %v1011_v40, %v1010_v38 }
 0x48b   : > { %v990_v44 = vadd.f32 %v989_v42, %v988_v35  ;;  %6078 = vset.pattern.permute.xlu1 %v8657_v23  ;;  %v1055_v54 = vpop.permute.xlu1 %1054 }
 0x48c   : > { %v1013_v45 = vrot.slane %v1012_v43, 2  ;;  %1304 = vperm.xlu1 %6078, %v6609_v17   ;;  %v1051_v42 = vpop.permute.xlu0 %1050 }
 0x48d   : > { %v991_v46 = vrot.slane %v990_v44, 1 }
 0x48e   : > { %v1014_v47 = vadd.f32 %v1013_v45, %v1012_v43 }
 0x48f   : > { %v992_v48 = vadd.f32 %v991_v46, %v990_v44  ;;  %v1059_v56 = vpop.permute.xlu1 %1058 }
 0x490   : > { %v1015_v49 = vrot.slane %v1014_v47, 1  ;;  %6080 = vset.pattern.permute.xlu1 %v8655_v24 }
 0x491   : > { %5968 = vpush %v992_v48  ;;  %1348 = vperm.xlu1 %6080, %v6615_v18  }
 0x492   : > { %v1016_v51 = vadd.f32 %v1015_v49, %v1014_v47 }
 0x493   : > { %v1091_v57 = vpop.permute.xlu1 %1090 }
 0x494   : > { %5970 = vpush %v1016_v51 }
 0x495   : > { %1352 = vperm.xlu1 %6080, %v6609_v17  }
 0x497   : > { %v1095_v58 = vpop.permute.xlu1 %1094 }
 0x49c   : > { %v1063_v59 = vpop.permute.xlu1 %1062 }
 0x4a1   : > { %v1099_v62 = vpop.permute.xlu1 %1098 }
 0x4a6   : > { %v1067_v0 = vpop.permute.xlu1 %1066 }
 0x4aa   : > { %v1071_v4 = vpop.permute.xlu1 %1070 }
 0x4af   : > { %v1107_v6 = vpop.permute.xlu1 %1106 }
 0x4b3   : > { %v1111_v5 = vpop.permute.xlu1 %1110 }
 0x4b8   : > { %v1079_v48 = vpop.permute.xlu1 %1078 }
 0x4c2   : > { %s5969_s27 = spop %5968 }
 0x4c3   : > { %s1020_s28 = smul.f32 0.00012207031, %s5969_s27 }
 0x4c5   : > { %s1024_s29 = smul.f32 %s1020_s28, %s1020_s28  ;;  %s5971_s11 = spop %5970  ;;  %v1031_v7 = vstv %s1020_s28 }
 0x4c6   : > { %s1023_s12 = smul.f32 0.00012207031, %s5971_s11  ;;  %v1033_v3 = vsub.f32 %v6667_v60, %v1031_v7  ;;  %v1032_v30 = vsub.f32 %v6671_v1, %v1031_v7  ;;  %v1034_v34 = vsub.f32 %v6677_v28, %v1031_v7  ;;  %v1037_v43 = vsub.f32 %v6689_v52, %v1031_v7 }
 0x4c7   : > { %v1039_v51 = vsub.f32 %v6699_v63, %v1031_v7  ;;  %v1035_v1 = vsub.f32 %v6679_v32, %v1031_v7  ;;  %v1119_v63 = vpop.permute.xlu1 %1118  ;;  %v1036_v32 = vsub.f32 %v6687_v50, %v1031_v7 }
 0x4c8   : > { %s1025_s14 = ssub.f32 %s1023_s12, %s1024_s29 }
 0x4ca   : > { %s1026_s15 = smax.f32 %s6341_s19, %s1025_s14 }
 0x4cb   : > { %s1027_s16 = sadd.f32 1e-08, %s1026_s15 }
 0x4cd   : > { %v1028_v53 = vstv %s1027_s16 }
 0x4ce   : > { %6230 = vrsqrt.f32 %v1028_v53 }
 0x4d8   : > { %v6231_v55 = vpop.eup %6230 }
 0x4d9   : > { %5972 = vpush %v6231_v55  ;;  %v1075_v55 = vpop.permute.xlu0 %1074 }
 0x50a   : > { %s5973_s17 = spop %5972 }
 0x50b   : > { %v1040_v8 = vstv %s5973_s17 }
 0x50c   : > { %v1042_v35 = vmul.f32 %v1040_v8, %v1033_v3  ;;  %v1041_v38 = vmul.f32 %v1040_v8, %v1032_v30  ;;  %v1043_v40 = vmul.f32 %v1040_v8, %v1034_v34  ;;  %v1046_v46 = vmul.f32 %v1040_v8, %v1037_v43  ;;  %v6811_v3 = vpop.permute.xlu1 %1157 }
 0x50d   : > { %v1048_v52 = vmul.f32 %v1040_v8, %v1039_v51  ;;  %v1045_v34 = vmul.f32 %v1040_v8, %v1036_v32 }
 0x50e   : > { %v1082_v44 = vmul.f32 %v1055_v54, %v1042_v35  ;;  %v1081_v45 = vmul.f32 %v1051_v42, %v1041_v38  ;;  %v1083_v60 = vmul.f32 %v1059_v56, %v1043_v40  ;;  %v1086_v28 = vmul.f32 %v1071_v4, %v1046_v46 }
 0x50f   : > { %v1044_v54 = vmul.f32 %v1040_v8, %v1035_v1  ;;  %v1038_v38 = vsub.f32 %v6697_v61, %v1031_v7 }
 0x510   : > { %v6786_v47 = vadd.f32 %v1095_v58, %v1082_v44  ;;  %v6788_v49 = vadd.f32 %v1091_v57, %v1081_v45  ;;  %v6796_v53 = vadd.f32 %v1099_v62, %v1083_v60  ;;  %v6802_v56 = vadd.f32 %v1111_v5, %v1086_v28  ;;  %v1103_v62 = vpop.permute.xlu0 %1102  ;;  %v6820_v5 = vpop.permute.xlu1 %1205 }
 0x511   : > { %v1088_v57 = vmul.f32 %v1079_v48, %v1048_v52  ;;  %v1084_v58 = vmul.f32 %v1063_v59, %v1044_v54  ;;  %v1085_v59 = vmul.f32 %v1067_v0, %v1045_v34  ;;  %v1047_v40 = vmul.f32 %v1040_v8, %v1038_v38 }
 0x512   : > { %1131 = vrot.lane.b32.xlu0 %v6786_v47, %s6346_s18  ;;  %1129 = vrot.lane.b32.xlu1 %v6788_v49, %s6346_s18  ;;  %v8669_v45 = vmov 7  }
 0x513   : > { %v6809_v4 = vadd.f32 %v1119_v63, %v1088_v57  ;;  %v6813_v30 = vadd.f32 %v1103_v62, %v1084_v58  ;;  %v6824_v50 = vadd.f32 %v1107_v6, %v1085_v59  ;;  %v1087_v42 = vmul.f32 %v1075_v55, %v1047_v40  ;;  %6082 = vset.pattern.permute.xlu1 %v8669_v45 }
 0x514   : > { %v1210_v35 = vpop.permute.xlu1 %1209  ;;  %v1115_v6 = vpop.permute.xlu0 %1114 }
 0x515   : > { %v6837_v44 = vadd.f32 %v1115_v6, %v1087_v42 }
 0x516   : > { %1254 = vrot.lane.b32.xlu0 %v6786_v47, %s6347_s20  ;;  %1133 = vrot.lane.b32.xlu1 %v6796_v53, %s6346_s18 }
 0x518   : > { %v6831_v0 = vpop.permute.xlu1 %1213  ;;  %v1162_v7 = vpop.permute.xlu0 %1161 }
 0x51a   : > { %1262 = vrot.lane.b32.xlu0 %v6802_v56, %s6347_s20  ;;  %1252 = vrot.lane.b32.xlu1 %v6788_v49, %s6347_s20 }
 0x51c   : > { %v1285_v43 = vpop.permute.xlu1 %1284  ;;  %v1166_v46 = vpop.permute.xlu0 %1165 }
 0x51e   : > { %1143 = vrot.lane.b32.xlu0 %v6809_v4, %s6346_s18  ;;  %1135 = vrot.lane.b32.xlu1 %v6813_v30, %s6346_s18 }
 0x520   : > { %v1170_v61 = vpop.permute.xlu1 %1169  ;;  %v6849_v60 = vpop.permute.xlu0 %1177 }
 0x522   : > { %1356 = vperm.xlu0 %6079, %v6622_v20   ;;  %1256 = vrot.lane.b32.xlu1 %v6796_v53, %s6347_s20 }
 0x524   : > { %v1289_v8 = vpop.permute.xlu1 %1288  ;;  %v1218_v1 = vpop.permute.xlu0 %1217 }
 0x526   : > { %1137 = vrot.lane.b32.xlu1 %v6824_v50, %s6346_s18  ;;  %6081 = vset.pattern.permute.xlu0 %v8669_v45 }
 0x528   : > { %v6847_v48 = vpop.permute.xlu1 %1173  ;;  %v6851_v52 = vpop.permute.xlu0 %1221 }
 0x52a   : > { %1258 = vrot.lane.b32.xlu1 %v6813_v30, %s6347_s20 }
 0x52c   : > { %v1293_v51 = vpop.permute.xlu1 %1292  ;;  %v6857_v63 = vpop.permute.xlu0 %1229 }
 0x52e   : > { %1139 = vrot.lane.b32.xlu1 %v6802_v56, %s6346_s18 }
 0x530   : > { %v1333_v28 = vpop.permute.xlu1 %1332  ;;  %v6861_v58 = vpop.permute.xlu0 %1233 }
 0x532   : > { %1260 = vrot.lane.b32.xlu1 %v6824_v50, %s6347_s20 }
 0x534   : > { %v6853_v54 = vpop.permute.xlu1 %1225  ;;  %v1281_v32 = vpop.permute.xlu0 %1280 }
 0x536   : > { %1141 = vrot.lane.b32.xlu1 %v6837_v44, %s6346_s18 }
 0x538   : > { %v6855_v55 = vpop.permute.xlu1 %1296  ;;  %v6865_v34 = vpop.permute.xlu0 %1308 }
 0x53a   : > { %1264 = vrot.lane.b32.xlu1 %v6837_v44, %s6347_s20 }
 0x53c   : > { %v6859_v57 = vpop.permute.xlu1 %1181  ;;  %v1329_v38 = vpop.permute.xlu0 %1328 }
 0x53e   : > { %1266 = vrot.lane.b32.xlu1 %v6809_v4, %s6347_s20 }
 0x540   : > { %v6863_v62 = vpop.permute.xlu1 %1300  ;;  %v1337_v42 = vpop.permute.xlu0 %1336 }
 0x544   : > { %v6867_v59 = vpop.permute.xlu1 %1185  ;;  %v1341_v24 = vpop.permute.xlu0 %1340 }
 0x548   : > { %v6869_v40 = vpop.permute.xlu1 %1304  ;;  %v6875_v9 = vpop.permute.xlu0 %1344 }
 0x54c   : > { %v6871_v6 = vpop.permute.xlu1 %1348 }
 0x550   : > { %v6873_v23 = vpop.permute.xlu1 %1352 }
 0x584   : > { %v1130_v22 = vpop.permute.xlu1 %1129  ;;  %v1132_v45 = vpop.permute.xlu0 %1131 }
 0x585   : > { %v1148_v31 = vsel %vm1145_vm11, %v1130_v22, 0.0  ;;  %v1149_v26 = vsel %vm1145_vm11, %v1132_v45, 0.0  ;;  %v1237_v22 = vmul.f32 %v1210_v35, %v6786_v47  ;;  %v1236_v45 = vmul.f32 %v6820_v5, %v6788_v49 }
 0x586   : > { %v1188_v39 = vmul.f32 %v6811_v3, %v1148_v31  ;;  %v1189_v36 = vmul.f32 %v1162_v7, %v1149_v26 }
 0x588   : > { %v1134_v13 = vpop.permute.xlu1 %1133  ;;  %v1255_v33 = vpop.permute.xlu0 %1254  ;;  %v1244_v26 = vadd.f32 %v1236_v45, %v1188_v39  ;;  %v1245_v3 = vadd.f32 %v1237_v22, %v1189_v36 }
 0x589   : > { %v1150_v25 = vsel %vm1145_vm11, %v1134_v13, 0.0  ;;  %v1272_v2 = vsel %vm1268_vm12, %v1255_v33, 0.0 }
 0x58a   : > { %v1190_v27 = vmul.f32 %v1166_v46, %v1150_v25  ;;  %v1312_v13 = vmul.f32 %v1285_v43, %v1272_v2  ;;  %v1239_v25 = vmul.f32 %v1218_v1, %v6813_v30 }
 0x58c   : > { %v1253_v41 = vpop.permute.xlu1 %1252  ;;  %v1320_v20 = vadd.f32 %v1312_v13, %v1245_v3  ;;  %v1263_v39 = vpop.permute.xlu0 %1262 }
 0x58d   : > { %v1271_v21 = vsel %vm1268_vm12, %v1253_v41, 0.0  ;;  %v1238_v41 = vmul.f32 %v6831_v0, %v6796_v53  ;;  %v1240_v0 = vmul.f32 %v6851_v52, %v6824_v50 }
 0x58e   : > { %v1311_v17 = vmul.f32 %v1281_v32, %v1271_v21  ;;  %v1360_v43 = vadd.f32 %v1333_v28, %v1320_v20 }
 0x58f   : > { %v1246_v7 = vadd.f32 %v1238_v41, %v1190_v27 }
 0x590   : > { %v1136_v37 = vpop.permute.xlu1 %1135  ;;  %v1319_v47 = vadd.f32 %v1311_v17, %v1244_v26  ;;  %vm1368_vm13 = vcmp.ge.f32.partialorder %v1360_v43, 0.0  ;;  %v1242_v26 = vmul.f32 %v6857_v63, %v6837_v44 }
 0x591   : > { %v1151_v33 = vsel %vm1145_vm11, %v1136_v37, 0.0 }
 0x592   : > { %v1359_v46 = vadd.f32 %v1329_v38, %v1319_v47 }
 0x594   : > { %v1257_v19 = vpop.permute.xlu1 %1256  ;;  %vm1367_vm14 = vcmp.ge.f32.partialorder %v1359_v46, 0.0 }
 0x595   : > { %v1273_v29 = vsel %vm1268_vm12, %v1257_v19, 0.0  ;;  %v1191_v19 = vmul.f32 %v1170_v61, %v1151_v33  ;;  %v1376_v61 = vmul.f32 0.25, %v1360_v43 }
 0x596   : > { %v1313_v18 = vmul.f32 %v1289_v8, %v1273_v29  ;;  %v1375_v8 = vmul.f32 0.25, %v1359_v46 }
 0x597   : > { %v1247_v5 = vadd.f32 %v1239_v25, %v1191_v19  ;;  %v6920_v52 = vsel %vm1368_vm13, %v1360_v43, %v1376_v61  ;;  %v1243_v43 = vmul.f32 %v6861_v58, %v6809_v4 }
 0x598   : > { %v1138_v31 = vpop.permute.xlu1 %1137  ;;  %v1321_v35 = vadd.f32 %v1313_v18, %v1246_v7  ;;  %v1241_v18 = vmul.f32 %v6853_v54, %v6802_v56  ;;  %v6922_v54 = vsel %vm1367_vm14, %v1359_v46, %v1375_v8  ;;  %v1408_v3 = vmul.f32 %v6920_v52, %v6920_v52 }
 0x599   : > { %v1152_v29 = vsel %vm1145_vm11, %v1138_v31, 0.0 }
 0x59a   : > { %v1361_v36 = vadd.f32 %v1337_v42, %v1321_v35  ;;  %v1192_v30 = vmul.f32 %v6847_v48, %v1152_v29  ;;  %v1144_v42 = vpop.permute.xlu0 %1143 }
 0x59c   : > { %v1259_v49 = vpop.permute.xlu1 %1258  ;;  %v1377_v1 = vmul.f32 0.25, %v1361_v36  ;;  %vm1369_vm15 = vcmp.ge.f32.partialorder %v1361_v36, 0.0  ;;  %v1248_v50 = vadd.f32 %v1240_v0, %v1192_v30 }
 0x59d   : > { %v1274_v21 = vsel %vm1268_vm12, %v1259_v49, 0.0 }
 0x59e   : > { %v1314_v37 = vmul.f32 %v1293_v51, %v1274_v21  ;;  %v1276_v51 = vsel %vm1268_vm12, %v1263_v39, 0.0  ;;  %v6924_v2 = vsel %vm1369_vm15, %v1361_v36, %v1377_v1 }
 0x59f   : > { %v1316_v48 = vmul.f32 %v6863_v62, %v1276_v51  ;;  %v1407_v62 = vmul.f32 %v6922_v54, %v6922_v54  ;;  %v1409_v7 = vmul.f32 %v6924_v2, %v6924_v2 }
 0x5a0   : > { %v1322_v27 = vadd.f32 %v1314_v37, %v1247_v5  ;;  %v1140_v53 = vpop.permute.xlu1 %1139 }
 0x5a1   : > { %v1153_v17 = vsel %vm1145_vm11, %v1140_v53, 0.0  ;;  %v1415_v5 = vadd.f32 %v1408_v3, %v1407_v62  ;;  %v1357_v61 = vpop.permute.xlu0 %1356 }
 0x5a2   : > { %v1193_v20 = vmul.f32 %v6849_v60, %v1153_v17  ;;  %v1362_v28 = vadd.f32 %v1341_v24, %v1322_v27 }
 0x5a3   : > { %v1416_v39 = vadd.f32 %v1415_v5, %v1409_v7 }
 0x5a4   : > { %v1249_v32 = vadd.f32 %v1241_v18, %v1193_v20  ;;  %v1261_v38 = vpop.permute.xlu1 %1260  ;;  %v1378_v22 = vmul.f32 0.25, %v1362_v28  ;;  %vm1370_vm0 = vcmp.ge.f32.partialorder %v1362_v28, 0.0 }
 0x5a5   : > { %v1275_v56 = vsel %vm1268_vm12, %v1261_v38, 0.0 }
 0x5a6   : > { %v1315_v60 = vmul.f32 %v6855_v55, %v1275_v56  ;;  %v1324_v24 = vadd.f32 %v1316_v48, %v1249_v32  ;;  %v1155_v55 = vsel %vm1145_vm11, %v1144_v42, 0.0  ;;  %v6940_v19 = vsel %vm1370_vm0, %v1362_v28, %v1378_v22 }
 0x5a8   : > { %v1323_v45 = vadd.f32 %v1315_v60, %v1248_v50  ;;  %v1142_v13 = vpop.permute.xlu1 %1141  ;;  %v1364_v47 = vadd.f32 %v6871_v6, %v1324_v24  ;;  %v1410_v6 = vmul.f32 %v6940_v19, %v6940_v19  ;;  %v8699_v24 = vmov 8  }
 0x5a9   : > { %v1154_v33 = vsel %vm1145_vm11, %v1142_v13, 0.0  ;;  %v8774_v13 = vld [vmem:[#allocation12_spill] sm:$0xff] }
 0x5aa   : > { %v1363_v41 = vadd.f32 %v6875_v9, %v1323_v45  ;;  %v1194_v31 = vmul.f32 %v6859_v57, %v1154_v33  ;;  %v1391_v9 = vadd.f32 %v6920_v52, %v6922_v54  ;;  %v1195_v57 = vmul.f32 %v6867_v59, %v1155_v55 }
 0x5ab   : > { %v1380_v46 = vmul.f32 0.25, %v1364_v47  ;;  %vm1372_vm4 = vcmp.ge.f32.partialorder %v1364_v47, 0.0  ;;  %v1417_v58 = vadd.f32 %v1416_v39, %v1410_v6  ;;  %v8773_v45 = vmov 7  }
 0x5ac   : > { %vm1371_vm3 = vcmp.ge.f32.partialorder %v1363_v41, 0.0  ;;  %v1379_v25 = vmul.f32 0.25, %v1363_v41  ;;  %v1265_v35 = vpop.permute.xlu1 %1264  ;;  %v1250_v49 = vadd.f32 %v1242_v26, %v1194_v31  ;;  %v1392_v37 = vadd.f32 %v1391_v9, %v6924_v2 }
 0x5ad   : > { %v1277_v44 = vsel %vm1268_vm12, %v1265_v35, 0.0  ;;  %v1251_v53 = vadd.f32 %v1243_v43, %v1195_v57  ;;  %v6964_v20 = vsel %vm1372_vm4, %v1364_v47, %v1380_v46  ;;  %v1542_v57 = vld [vmem:[%s8651_s6] sm:$0xff]  ;;  %vm2220_vm4 = vcmp.lt.s32.totalorder %v6877_v12, 126 }
 0x5ae   : > { %v6948_v63 = vsel %vm1371_vm3, %v1363_v41, %v1379_v25  ;;  %v1317_v21 = vmul.f32 %v6869_v40, %v1277_v44  ;;  %v1393_v27 = vadd.f32 %v1392_v37, %v6940_v19  ;;  %5552 = vmatprep.mubr.msk.f32.mxu1 %vm668_vm1, %v1542_v57  ;;  %v8697_v44 = vmov 9   ;;  %v1545_v57 = vld [vmem:[%s8651_s6 + $0x18] sm:$0xff] }
 0x5af   : > { %v1411_v40 = vmul.f32 %v6948_v63, %v6948_v63  ;;  %vm2097_vm3 = vcmp.ge.s32.totalorder %v6877_v12, 2 }
 0x5b0   : > { %v1325_v29 = vadd.f32 %v1317_v21, %v1250_v49  ;;  %v1267_v59 = vpop.permute.xlu1 %1266  ;;  %v1394_v4 = vadd.f32 %v1393_v27, %v6948_v63  ;;  %v8777_v49 = vmov 0  }
 0x5b1   : > { %v1278_v36 = vsel %vm1268_vm12, %v1267_v59, 0.0  ;;  %v1418_v8 = vadd.f32 %v1417_v58, %v1411_v40 }
 0x5b2   : > { %v1365_v17 = vadd.f32 %v6873_v23, %v1325_v29  ;;  %v1318_v18 = vmul.f32 %v6865_v34, %v1278_v36  ;;  %v1395_v28 = vadd.f32 %v1394_v4, %v6964_v20  ;;  %v1412_v23 = vmul.f32 %v6964_v20, %v6964_v20 }
 0x5b4   : > { %v1381_v30 = vmul.f32 0.25, %v1365_v17  ;;  %v1326_v0 = vadd.f32 %v1318_v18, %v1251_v53  ;;  %vm1373_vm5 = vcmp.ge.f32.partialorder %v1365_v17, 0.0  ;;  %v1419_v56 = vadd.f32 %v1418_v8, %v1412_v23 }
 0x5b6   : > { %v1366_v51 = vadd.f32 %v1357_v61, %v1326_v0  ;;  %v6966_v1 = vsel %vm1373_vm5, %v1365_v17, %v1381_v30 }
 0x5b7   : > { %v1413_v34 = vmul.f32 %v6966_v1, %v6966_v1  ;;  %v1396_v38 = vadd.f32 %v1395_v28, %v6966_v1 }
 0x5b8   : > { %vm1374_vm6 = vcmp.ge.f32.partialorder %v1366_v51, 0.0  ;;  %v1382_v32 = vmul.f32 0.25, %v1366_v51 }
 0x5b9   : > { %v1420_v42 = vadd.f32 %v1419_v56, %v1413_v34 }
 0x5ba   : > { %v6974_v48 = vsel %vm1374_vm6, %v1366_v51, %v1382_v32 }
 0x5bb   : > { %v1397_v50 = vadd.f32 %v1396_v38, %v6974_v48  ;;  %v1414_v60 = vmul.f32 %v6974_v48, %v6974_v48 }
 0x5bd   : > { %1398 = vadd.xlane.f32.xlu1 %v1397_v50  ;;  %v1421_v22 = vadd.f32 %v1420_v42, %v1414_v60 }
 0x5bf   : > { %1422 = vadd.xlane.f32.xlu0 %v1421_v22 }
 0x5ce   : > { %1467 = vperm.xlu1 %6082, %v6586_v11  }
 0x5d2   : > { %6083 = vset.pattern.permute.xlu1 %v8699_v24 }
 0x5d3   : > { %1503 = vperm.xlu1 %6083, %v6580_v10  }
 0x5d5   : > { %1463 = vperm.xlu0 %6081, %v6580_v10   ;;  %v8775_v10 = vld [vmem:[#allocation11_spill] sm:$0xff] }
 0x5d7   : > { %1507 = vperm.xlu1 %6083, %v6586_v11   ;;  %v8776_v11 = vld [vmem:[#allocation10_spill] sm:$0xff] }
 0x5d9   : > { %6087 = vset.pattern.permute.xlu0 %v8699_v24 }
 0x5da   : > { %1519 = vperm.xlu0 %6087, %v6597_v15  }
 0x5db   : > { %6084 = vset.pattern.permute.xlu1 %v8773_v45 }
 0x5dc   : > { %1471 = vperm.xlu1 %6084, %v6591_v14  }
 0x5de   : > { %6088 = vset.pattern.permute.xlu0 %v8773_v45 }
 0x5df   : > { %1479 = vperm.xlu0 %6088, %v6597_v15  }
 0x5e0   : > { %1475 = vperm.xlu1 %6084, %v6603_v16  }
 0x5e3   : > { %1491 = vperm.xlu0 %6088, %v8774_v13  }
 0x5e4   : > { %6085 = vset.pattern.permute.xlu1 %v8699_v24 }
 0x5e5   : > { %1511 = vperm.xlu1 %6085, %v6591_v14  }
 0x5e7   : > { %6092 = vset.pattern.permute.xlu0 %v8697_v44 }
 0x5e8   : > { %1567 = vperm.xlu0 %6092, %v6597_v15  }
 0x5e9   : > { %1515 = vperm.xlu1 %6085, %v6603_v16  }
 0x5ec   : > { %1579 = vperm.xlu0 %6092, %v8774_v13  }
 0x5ed   : > { %6086 = vset.pattern.permute.xlu1 %v8773_v45 }
 0x5ee   : > { %1483 = vperm.xlu1 %6086, %v8775_v10  }
 0x5f0   : > { %6095 = vset.pattern.permute.xlu0 %v8777_v49 }
 0x5f2   : > { %6089 = vset.pattern.permute.xlu1 %v8699_v24 }
 0x5f3   : > { %1523 = vperm.xlu1 %6089, %v8775_v10  }
 0x5f7   : > { %6090 = vset.pattern.permute.xlu1 %v8773_v45 }
 0x5f8   : > { %1487 = vperm.xlu1 %6090, %v8776_v11  }
 0x5fc   : > { %6091 = vset.pattern.permute.xlu1 %v8699_v24 }
 0x5fd   : > { %1527 = vperm.xlu1 %6091, %v8776_v11  }
 0x601   : > { %1531 = vperm.xlu1 %6091, %v8774_v13  }
 0x605   : > { %6093 = vset.pattern.permute.xlu1 %v8697_v44 }
 0x606   : > { %1571 = vperm.xlu1 %6093, %v8775_v10  }
 0x60a   : > { %1575 = vperm.xlu1 %6093, %v8776_v11  }
 0x60e   : > { %6094 = vset.pattern.permute.xlu1 %v8777_v49 }
 0x64a   : > { %v1399_v14 = vpop.xlane.xlu1 %1398 }
 0x64b   : > { %v1400_v16 = vrot.slane %v1399_v14, 4 }
 0x64c   : > { %v1423_v33 = vpop.xlane.xlu0 %1422 }
 0x64d   : > { %v1401_v62 = vadd.f32 %v1400_v16, %v1399_v14  ;;  %v1424_v55 = vrot.slane %v1423_v33, 4 }
 0x64e   : > { %v1468_v21 = vpop.permute.xlu1 %1467 }
 0x64f   : > { %v1425_v41 = vadd.f32 %v1424_v55, %v1423_v33  ;;  %v1402_v31 = vrot.slane %v1401_v62, 2 }
 0x651   : > { %v1403_v26 = vadd.f32 %v1402_v31, %v1401_v62  ;;  %v1426_v3 = vrot.slane %v1425_v41, 2 }
 0x652   : > { %v1504_v37 = vpop.permute.xlu1 %1503 }
 0x653   : > { %v1404_v7 = vrot.slane %v1403_v26, 1  ;;  %v1427_v47 = vadd.f32 %v1426_v3, %v1425_v41 }
 0x654   : > { %v1464_v36 = vpop.permute.xlu0 %1463 }
 0x655   : > { %v1405_v25 = vadd.f32 %v1404_v7, %v1403_v26  ;;  %v1428_v35 = vrot.slane %v1427_v47, 1 }
 0x656   : > { %v1508_v6 = vpop.permute.xlu1 %1507 }
 0x657   : > { %5974 = vpush %v1405_v25  ;;  %v1429_v9 = vadd.f32 %v1428_v35, %v1427_v47  ;;  %v1543_v35 = vld [vmem:[%s8651_s6 + $0x8] sm:$0xff] }
 0x659   : > { %5976 = vpush %v1429_v9  ;;  %v1520_v40 = vpop.permute.xlu0 %1519  ;;  %v1544_v9 = vld [vmem:[%s8651_s6 + $0x10] sm:$0xff] }
 0x65b   : > { %v1472_v43 = vpop.permute.xlu1 %1471 }
 0x65e   : > { %v1480_v30 = vpop.permute.xlu0 %1479 }
 0x65f   : > { %v1476_v46 = vpop.permute.xlu1 %1475 }
 0x664   : > { %v1512_v29 = vpop.permute.xlu1 %1511 }
 0x668   : > { %v1516_v59 = vpop.permute.xlu1 %1515 }
 0x66d   : > { %v1484_v39 = vpop.permute.xlu1 %1483 }
 0x672   : > { %v1524_v27 = vpop.permute.xlu1 %1523 }
 0x677   : > { %v1488_v17 = vpop.permute.xlu1 %1487 }
 0x67c   : > { %v1528_v42 = vpop.permute.xlu1 %1527 }
 0x680   : > { %v1532_v26 = vpop.permute.xlu1 %1531 }
 0x688   : > { %s5975_s23 = spop %5974 }
 0x689   : > { %s1433_s24 = smul.f32 0.00012207031, %s5975_s23 }
 0x68a   : > { %s5977_s25 = spop %5976 }
 0x68b   : > { %s1437_s26 = smul.f32 %s1433_s24, %s1433_s24  ;;  %v1444_v53 = vstv %s1433_s24 }
 0x68c   : > { %s1436_s27 = smul.f32 0.00012207031, %s5977_s25  ;;  %v1445_v18 = vsub.f32 %v6922_v54, %v1444_v53  ;;  %v1446_v4 = vsub.f32 %v6920_v52, %v1444_v53  ;;  %v1447_v58 = vsub.f32 %v6924_v2, %v1444_v53  ;;  %v1448_v61 = vsub.f32 %v6940_v19, %v1444_v53 }
 0x68d   : > { %v1449_v8 = vsub.f32 %v6948_v63, %v1444_v53  ;;  %v1450_v51 = vsub.f32 %v6964_v20, %v1444_v53  ;;  %v1451_v28 = vsub.f32 %v6966_v1, %v1444_v53  ;;  %v1452_v23 = vsub.f32 %v6974_v48, %v1444_v53  ;;  %v1492_v1 = vpop.permute.xlu0 %1491 }
 0x68e   : > { %s1438_s28 = ssub.f32 %s1436_s27, %s1437_s26  ;;  %v8783_v53 = vmov 1   ;;  %s6351_s27 = smov 2  }
 0x690   : > { %s1439_s29 = smax.f32 %s6341_s19, %s1438_s28  ;;  %s6352_s28 = smov 126  }
 0x691   : > { %s1440_s11 = sadd.f32 1e-08, %s1439_s29 }
 0x693   : > { %v1441_v15 = vstv %s1440_s11 }
 0x694   : > { %6232 = vrsqrt.f32 %v1441_v15  ;;  %v1546_v15 = vld [vmem:[%s8651_s6 + $0x20] sm:$0xff] }
 0x69e   : > { %v6233_v5 = vpop.eup %6232 }
 0x69f   : > { %5978 = vpush %v6233_v5  ;;  %v1548_v5 = vld [vmem:[%s8651_s6 + $0x30] sm:$0xff] }
 0x6d0   : > { %s5979_s12 = spop %5978 }
 0x6d1   : > { %v1453_v0 = vstv %s5979_s12 }
 0x6d2   : > { %v1454_v34 = vmul.f32 %v1453_v0, %v1445_v18  ;;  %v1455_v32 = vmul.f32 %v1453_v0, %v1446_v4  ;;  %v1456_v38 = vmul.f32 %v1453_v0, %v1447_v58  ;;  %v1457_v54 = vmul.f32 %v1453_v0, %v1448_v61  ;;  %v1572_v18 = vpop.permute.xlu1 %1571  ;;  %v8784_v61 = vld [vmem:[#allocation13_spill] sm:$0xff] }
 0x6d3   : > { %v1458_v56 = vmul.f32 %v1453_v0, %v1449_v8  ;;  %v1459_v52 = vmul.f32 %v1453_v0, %v1450_v51  ;;  %v1460_v60 = vmul.f32 %v1453_v0, %v1451_v28  ;;  %v1461_v22 = vmul.f32 %v1453_v0, %v1452_v23  ;;  %v8786_v28 = vld [vmem:[#allocation14_spill] sm:$0xff] }
 0x6d4   : > { %v1494_v50 = vmul.f32 %v1464_v36, %v1454_v34  ;;  %v1495_v2 = vmul.f32 %v1468_v21, %v1455_v32  ;;  %v1496_v19 = vmul.f32 %v1472_v43, %v1456_v38  ;;  %v1497_v13 = vmul.f32 %v1476_v46, %v1457_v54  ;;  %v1547_v21 = vld [vmem:[%s8651_s6 + $0x28] sm:$0xff]  ;;  %v7060_v43 = vld [vmem:[%s8650_s5 + $0x40] sm:$0xff]  ;;  %v7089_v36 = vld [vmem:[%s8650_s5 + $0x70] sm:$0xff] }
 0x6d5   : > { %v1498_v20 = vmul.f32 %v1480_v30, %v1458_v56  ;;  %v1499_v11 = vmul.f32 %v1484_v39, %v1459_v52  ;;  %v1500_v33 = vmul.f32 %v1488_v17, %v1460_v60  ;;  %v1501_v62 = vmul.f32 %v1492_v1, %v1461_v22  ;;  %1739 = vperm.xlu1 %6094, %v7060_v43   ;;  %v7066_v46 = vld [vmem:[%s8650_s5 + $0x48] sm:$0xff]  ;;  %v7083_v39 = vld [vmem:[%s8650_s5 + $0x58] sm:$0xff]  ;;  %v1568_v17 = vpop.permute.xlu0 %1567  ;;  %v8790_v60 = vld [vmem:[#allocation16_spill] sm:$0xff] }
 0x6d6   : > { %v1534_v63 = vadd.f32 %v1504_v37, %v1494_v50  ;;  %v1535_v10 = vadd.f32 %v1508_v6, %v1495_v2  ;;  %v1536_v14 = vadd.f32 %v1512_v29, %v1496_v19  ;;  %v1537_v48 = vadd.f32 %v1516_v59, %v1497_v13  ;;  %v1549_v37 = vld [vmem:[%s8651_s6 + $0x38] sm:$0xff]  ;;  %v5156_v6 = vld [vmem:[%s8649_s4 + $0x40] sm:$0xff]  ;;  %v7071_v29 = vld [vmem:[%s8650_s5 + $0x50] sm:$0xff]  ;;  %1744 = vperm.xlu0 %6095, %v7066_v46   ;;  %v1576_v32 = vpop.permute.xlu1 %1575 }
 0x6d7   : > { %v1538_v41 = vadd.f32 %v1520_v40, %v1498_v20  ;;  %v1539_v31 = vadd.f32 %v1524_v27, %v1499_v11  ;;  %v1540_v3 = vadd.f32 %v1528_v42, %v1500_v33  ;;  %v1541_v7 = vadd.f32 %v1532_v26, %v1501_v62  ;;  %5572 = vmatprep.mubr.msk.f32.mxu0 %vm824_vm2, %v5156_v6  ;;  %v7077_v59 = vld [vmem:[%s8650_s5 + $0x60] sm:$0xff]  ;;  %v7095_v27 = vld [vmem:[%s8650_s5 + $0x68] sm:$0xff]  ;;  %v7102_v40 = vld [vmem:[%s8650_s5 + $0x78] sm:$0xff] }
 0x6d8   : > { %v5806_v16 = vpack.c.bf16 %v1535_v10, %v1534_v63  ;;  %v5810_v55 = vpack.c.bf16 %v1537_v48, %v1536_v14  ;;  %8778 = vst [vmem:[#allocation12_spill] sm:$0xff] %v7071_v29  ;;  %8779 = vst [vmem:[#allocation11_spill] sm:$0xff] %v7083_v39  ;;  %v8788_v50 = vld [vmem:[#allocation15_spill] sm:$0xff]  ;;  %v5158_v13 = vld [vmem:[%s8649_s4 + $0x50] sm:$0xff] }
 0x6d9   : > { %v5814_v47 = vpack.c.bf16 %v1539_v31, %v1538_v41  ;;  %v5818_v25 = vpack.c.bf16 %v1541_v7, %v1540_v3  ;;  %1749 = vperm.xlu1 %6094, %v7071_v29   ;;  %8780 = vst [vmem:[#allocation10_spill] sm:$0xff] %v7089_v36  ;;  %8781 = vst [vmem:[#allocation17_spill] sm:$0xff] %v7095_v27  ;;  %v1580_v51 = vpop.permute.xlu0 %1579  ;;  %v5157_v19 = vld [vmem:[%s8649_s4 + $0x48] sm:$0xff]  ;;  %v5159_v63 = vld [vmem:[%s8649_s4 + $0x58] sm:$0xff] }
 0x6da   : > { %5807 = vmatprep.subr.bf16.mxu1 %v5806_v16  ;;  %1759 = vperm.xlu0 %6095, %v7077_v59   ;;  %8782 = vst [vmem:[#allocation18_spill] sm:$0xff] %v7102_v40  ;;  %v5160_v10 = vld [vmem:[%s8649_s4 + $0x60] sm:$0xff]  ;;  %v5161_v20 = vld [vmem:[%s8649_s4 + $0x68] sm:$0xff]  ;;  %v5162_v11 = vld [vmem:[%s8649_s4 + $0x70] sm:$0xff] }
 0x6db   : > { %5809 = vmatpush3.bf16.msra.mxu1 %v5806_v16  ;;  %v5163_v1 = vld [vmem:[%s8649_s4 + $0x78] sm:$0xff] }
 0x6dc   : > { %5811 = vmatprep.subr.bf16.mxu1 %v5810_v55 }
 0x6dd   : > { %1754 = vperm.xlu1 %6094, %v7083_v39  }
 0x6de   : > { %1769 = vperm.xlu0 %6095, %v7089_v36  }
 0x6df   : > { %5813 = vmatpush3.bf16.msra.mxu1 %v5810_v55 }
 0x6e0   : > { %5815 = vmatprep.subr.bf16.mxu1 %v5814_v47 }
 0x6e1   : > { %1764 = vperm.xlu1 %6094, %v7095_v27  }
 0x6e2   : > { %6096 = vset.pattern.permute.xlu0 %v8783_v53 }
 0x6e3   : > { %5817 = vmatpush3.bf16.msra.mxu1 %v5814_v47 }
 0x6e4   : > { %5819 = vmatprep.subr.bf16.mxu1 %v5818_v25 }
 0x6e5   : > { %1774 = vperm.xlu1 %6094, %v7102_v40  }
 0x6e7   : > { %5821 = vmatpush3.bf16.msra.mxu1 %v5818_v25 }
 0x6e9   : > { %6097 = vset.pattern.permute.xlu1 %v8783_v53 }
 0x6ea   : > { %5553 = vmatmul.mubr.msk.f32.vlgmr.msra.gmra.mrb[4].mxu1 %vm668_vm1, %v1543_v35 }
 0x6eb   : > { %5555 = vmatprep.mubr.msk.f32.mxu1 %vm668_vm1, %v1544_v9 }
 0x6ee   : > { %5556 = vmatmul.mubr.msk.f32.gmra.mrb[6].mxu1 %vm668_vm1, %v1545_v57 }
 0x6ef   : > { %5558 = vmatprep.mubr.msk.f32.mxu1 %vm668_vm1, %v1546_v15 }
 0x6f2   : > { %5559 = vmatmul.mubr.msk.f32.gmra.mrb[8].mxu1 %vm668_vm1, %v1547_v21 }
 0x6f3   : > { %5561 = vmatprep.mubr.msk.f32.mxu1 %vm668_vm1, %v1548_v5 }
 0x6f6   : > { %5562 = vmatmul.mubr.msk.f32.gmra.mrb[10].mxu1 %vm668_vm1, %v1549_v37 }
 0x754   : > { %v1740_v14 = vpop.permute.xlu1 %1739 }
 0x755   : > { %v1745_v16 = vpop.permute.xlu0 %1744 }
 0x758   : > { %v1750_v48 = vpop.permute.xlu1 %1749 }
 0x759   : > { %v1760_v5 = vpop.permute.xlu0 %1759 }
 0x75c   : > { %v1755_v33 = vpop.permute.xlu1 %1754 }
 0x760   : > { %v1765_v9 = vpop.permute.xlu1 %1764 }
 0x7c5   : > { %v5560_v4 = vpop.f32.mrb[8].mxu1 }
 0x7c6   : > { %v1698_v58 = vadd.f32 %v5560_v4, %v1572_v18  ;;  %v1692_v30 = vpop.f32.mrb[9].mxu1 }
 0x7c7   : > { %v1693_v0 = vadd.f32 %v1692_v30, %v1568_v17 }
 0x7c8   : > { %v7108_v8 = vadd.f32 %v1698_v58, %v8784_v61 }
 0x7c9   : > { %v7111_v23 = vadd.f32 %v1693_v0, %v8786_v28  ;;  %v5563_v34 = vpop.f32.mrb[10].mxu1 }
 0x7ca   : > { %8785 = vst [vmem:[#allocation13_spill] sm:$0xff] %v7108_v8  ;;  %v1708_v38 = vadd.f32 %v5563_v34, %v1580_v51  ;;  %v1702_v54 = vpop.f32.mrb[11].mxu1 }
 0x7cb   : > { %8787 = vst [vmem:[#allocation14_spill] sm:$0xff] %v7111_v23  ;;  %v1703_v56 = vadd.f32 %v1702_v54, %v1576_v32  ;;  %v5822_v52 = vpack.c.bf16 %v7108_v8, %v7111_v23  ;;  %v1775_v54 = vpop.permute.xlu1 %1774 }
 0x7cc   : > { %v7116_v2 = vadd.f32 %v1708_v38, %v8788_v50  ;;  %v1770_v50 = vpop.permute.xlu0 %1769 }
 0x7cd   : > { %v7119_v42 = vadd.f32 %v1703_v56, %v8790_v60  ;;  %5823 = vmatprep.subr.bf16.mxu0 %v5822_v52 }
 0x7ce   : > { %8789 = vst [vmem:[#allocation15_spill] sm:$0xff] %v7116_v2  ;;  %5825 = vmatpush3.bf16.msra.mxu0 %v5822_v52 }
 0x7cf   : > { %8791 = vst [vmem:[#allocation16_spill] sm:$0xff] %v7119_v42  ;;  %v5826_v22 = vpack.c.bf16 %v7116_v2, %v7119_v42 }
 0x7d1   : > { %5827 = vmatprep.subr.bf16.mxu0 %v5826_v22 }
 0x7d2   : > { %5829 = vmatpush3.bf16.msra.mxu0 %v5826_v22 }
 0x7d5   : > { %5573 = vmatmul.mubr.msk.f32.vlgmr.msra.gmra.mrb[16].mxu0 %vm824_vm2, %v5157_v19 }
 0x7d6   : > { %5575 = vmatprep.mubr.msk.f32.mxu0 %vm824_vm2, %v5158_v13 }
 0x7d9   : > { %5576 = vmatmul.mubr.msk.f32.gmra.mrb[18].mxu0 %vm824_vm2, %v5159_v63 }
 0x7da   : > { %5578 = vmatprep.mubr.msk.f32.mxu0 %vm824_vm2, %v5160_v10 }
 0x7dd   : > { %5579 = vmatmul.mubr.msk.f32.gmra.mrb[20].mxu0 %vm824_vm2, %v5161_v20 }
 0x7de   : > { %5581 = vmatprep.mubr.msk.f32.mxu0 %vm824_vm2, %v5162_v11 }
 0x7e1   : > { %5582 = vmatmul.mubr.msk.f32.gmra.mrb[22].mxu0 %vm824_vm2, %v5163_v1 }
 0x8a8   : > { %v5574_v62 = vpop.f32.mrb[16].mxu0 }
 0x8a9   : > { %v1873_v55 = vadd.f32 %v5574_v62, %v1745_v16  ;;  %v1867_v41 = vpop.f32.mrb[17].mxu0 }
 0x8aa   : > { %v1868_v31 = vadd.f32 %v1867_v41, %v1740_v14 }
 0x8ab   : > { %vm1907_vm7 = vcmp.ge.f32.partialorder %v1873_v55, 0.0  ;;  %v1915_v26 = vmul.f32 0.25, %v1873_v55 }
 0x8ac   : > { %vm1906_vm8 = vcmp.ge.f32.partialorder %v1868_v31, 0.0  ;;  %v1914_v3 = vmul.f32 0.25, %v1868_v31  ;;  %v5577_v7 = vpop.f32.mrb[18].mxu0 }
 0x8ad   : > { %v7151_v47 = vsel %vm1907_vm7, %v1873_v55, %v1915_v26  ;;  %v1883_v25 = vadd.f32 %v5577_v7, %v1755_v33  ;;  %v1877_v35 = vpop.f32.mrb[19].mxu0 }
 0x8ae   : > { %v1947_v57 = vmul.f32 %v7151_v47, %v7151_v47  ;;  %v7155_v15 = vsel %vm1906_vm8, %v1868_v31, %v1914_v3  ;;  %v1878_v21 = vadd.f32 %v1877_v35, %v1750_v48 }
 0x8af   : > { %v1946_v37 = vmul.f32 %v7155_v15, %v7155_v15  ;;  %vm1909_vm9 = vcmp.ge.f32.partialorder %v1883_v25, 0.0  ;;  %v1917_v6 = vmul.f32 0.25, %v1883_v25  ;;  %v1930_v4 = vadd.f32 %v7151_v47, %v7155_v15 }
 0x8b0   : > { %vm1908_vm10 = vcmp.ge.f32.partialorder %v1878_v21, 0.0  ;;  %v1916_v17 = vmul.f32 0.25, %v1878_v21  ;;  %v5580_v18 = vpop.f32.mrb[20].mxu0 }
 0x8b1   : > { %v1893_v58 = vadd.f32 %v5580_v18, %v1765_v9  ;;  %v1887_v30 = vpop.f32.mrb[21].mxu0  ;;  %v1954_v0 = vadd.f32 %v1947_v57, %v1946_v37  ;;  %v7161_v61 = vsel %vm1909_vm9, %v1883_v25, %v1917_v6  ;;  %v8793_v37 = vmov 3  }
 0x8b2   : > { %v7163_v51 = vsel %vm1908_vm10, %v1878_v21, %v1916_v17  ;;  %v1888_v28 = vadd.f32 %v1887_v30, %v1760_v5  ;;  %v1949_v60 = vmul.f32 %v7161_v61, %v7161_v61  ;;  %v8792_v5 = vmov 2  }
 0x8b3   : > { %v1931_v34 = vadd.f32 %v1930_v4, %v7163_v51  ;;  %v1948_v32 = vmul.f32 %v7163_v51, %v7163_v51  ;;  %vm1911_vm13 = vcmp.ge.f32.partialorder %v1893_v58, 0.0  ;;  %v1919_v38 = vmul.f32 0.25, %v1893_v58 }
 0x8b4   : > { %vm1910_vm14 = vcmp.ge.f32.partialorder %v1888_v28, 0.0  ;;  %v1918_v56 = vmul.f32 0.25, %v1888_v28  ;;  %v5583_v52 = vpop.f32.mrb[22].mxu0  ;;  %v8794_v6 = vmov 4   ;;  %v8795_v17 = vmov 5  }
 0x8b5   : > { %v1955_v22 = vadd.f32 %v1954_v0, %v1948_v32  ;;  %v1932_v19 = vadd.f32 %v1931_v34, %v7161_v61  ;;  %v1903_v13 = vadd.f32 %v5583_v52, %v1775_v54  ;;  %v1897_v63 = vpop.f32.mrb[23].mxu0  ;;  %v7171_v10 = vsel %vm1911_vm13, %v1893_v58, %v1919_v38 }
 0x8b6   : > { %v7173_v20 = vsel %vm1910_vm14, %v1888_v28, %v1918_v56  ;;  %v1898_v11 = vadd.f32 %v1897_v63, %v1770_v50  ;;  %v1951_v62 = vmul.f32 %v7171_v10, %v7171_v10  ;;  %v8796_v18 = vmov 6  }
 0x8b7   : > { %v1933_v1 = vadd.f32 %v1932_v19, %v7173_v20  ;;  %v1950_v14 = vmul.f32 %v7173_v20, %v7173_v20  ;;  %v1956_v48 = vadd.f32 %v1955_v22, %v1949_v60  ;;  %vm1913_vm15 = vcmp.ge.f32.partialorder %v1903_v13, 0.0 }
 0x8b8   : > { %v1921_v16 = vmul.f32 0.25, %v1903_v13  ;;  %vm1912_vm0 = vcmp.ge.f32.partialorder %v1898_v11, 0.0  ;;  %v1920_v33 = vmul.f32 0.25, %v1898_v11 }
 0x8b9   : > { %v1957_v55 = vadd.f32 %v1956_v48, %v1950_v14  ;;  %v1934_v41 = vadd.f32 %v1933_v1, %v7171_v10 }
 0x8ba   : > { %v7181_v31 = vsel %vm1912_vm0, %v1898_v11, %v1920_v33  ;;  %v7183_v26 = vsel %vm1913_vm15, %v1903_v13, %v1921_v16 }
 0x8bb   : > { %v1952_v3 = vmul.f32 %v7181_v31, %v7181_v31  ;;  %v1935_v7 = vadd.f32 %v1934_v41, %v7181_v31  ;;  %v1958_v25 = vadd.f32 %v1957_v55, %v1951_v62  ;;  %v1953_v9 = vmul.f32 %v7183_v26, %v7183_v26 }
 0x8bd   : > { %v1936_v35 = vadd.f32 %v1935_v7, %v7183_v26  ;;  %v1959_v57 = vadd.f32 %v1958_v25, %v1952_v3 }
 0x8bf   : > { %1937 = vadd.xlane.f32.xlu0 %v1936_v35  ;;  %v1960_v21 = vadd.f32 %v1959_v57, %v1953_v9 }
 0x8c1   : > { %1961 = vadd.xlane.f32.xlu1 %v1960_v21 }
 0x8d2   : > { %2006 = vperm.xlu1 %6097, %v7066_v46  }
 0x8d5   : > { %2002 = vperm.xlu0 %6096, %v7060_v43  }
 0x8d6   : > { %2010 = vperm.xlu1 %6097, %v7071_v29  }
 0x8d9   : > { %2026 = vperm.xlu0 %6096, %v7089_v36  }
 0x8da   : > { %6098 = vset.pattern.permute.xlu1 %v8792_v5 }
 0x8db   : > { %2042 = vperm.xlu1 %6098, %v7060_v43  }
 0x8dd   : > { %6103 = vset.pattern.permute.xlu0 %v8792_v5 }
 0x8de   : > { %2054 = vperm.xlu0 %6103, %v7083_v39  }
 0x8df   : > { %2046 = vperm.xlu1 %6098, %v7066_v46  }
 0x8e2   : > { %2066 = vperm.xlu0 %6103, %v7089_v36  }
 0x8e3   : > { %6099 = vset.pattern.permute.xlu1 %v8783_v53 }
 0x8e4   : > { %2014 = vperm.xlu1 %6099, %v7083_v39  }
 0x8e6   : > { %6107 = vset.pattern.permute.xlu0 %v8793_v37 }
 0x8e7   : > { %2113 = vperm.xlu0 %6107, %v7066_v46  }
 0x8e8   : > { %6100 = vset.pattern.permute.xlu1 %v8792_v5 }
 0x8e9   : > { %2050 = vperm.xlu1 %6100, %v7071_v29  }
 0x8eb   : > { %2117 = vperm.xlu0 %6107, %v7071_v29  }
 0x8ed   : > { %6101 = vset.pattern.permute.xlu1 %v8783_v53 }
 0x8ee   : > { %2018 = vperm.xlu1 %6101, %v7077_v59  }
 0x8ef   : > { %2129 = vperm.xlu0 %6107, %v7095_v27  }
 0x8f2   : > { %2022 = vperm.xlu1 %6101, %v7095_v27  }
 0x8f3   : > { %6115 = vset.pattern.permute.xlu0 %v8794_v6 }
 0x8f4   : > { %2169 = vperm.xlu0 %6115, %v7083_v39  }
 0x8f6   : > { %6102 = vset.pattern.permute.xlu1 %v8792_v5 }
 0x8f7   : > { %2058 = vperm.xlu1 %6102, %v7077_v59  }
 0x8f8   : > { %2173 = vperm.xlu0 %6115, %v7077_v59  }
 0x8fb   : > { %2062 = vperm.xlu1 %6102, %v7095_v27  }
 0x8fc   : > { %2181 = vperm.xlu0 %6115, %v7089_v36  }
 0x8ff   : > { %6104 = vset.pattern.permute.xlu1 %v8783_v53 }
 0x900   : > { %2030 = vperm.xlu1 %6104, %v7102_v40   ;;  %2185 = vperm.xlu0 %6115, %v7102_v40  }
 0x904   : > { %6105 = vset.pattern.permute.xlu1 %v8792_v5  ;;  %6121 = vset.pattern.permute.xlu0 %v8795_v17 }
 0x905   : > { %2070 = vperm.xlu1 %6105, %v7102_v40   ;;  %2232 = vperm.xlu0 %6121, %v7060_v43  }
 0x909   : > { %6106 = vset.pattern.permute.xlu1 %v8793_v37  ;;  %2260 = vperm.xlu0 %6121, %v7102_v40  }
 0x90a   : > { %2109 = vperm.xlu1 %6106, %v7060_v43  }
 0x90d   : > { %6123 = vset.pattern.permute.xlu0 %v8796_v18 }
 0x90e   : > { %6108 = vset.pattern.permute.xlu1 %v8794_v6  ;;  %2280 = vperm.xlu0 %6123, %v7060_v43  }
 0x90f   : > { %2157 = vperm.xlu1 %6108, %v7060_v43  }
 0x912   : > { %2288 = vperm.xlu0 %6123, %v7071_v29  }
 0x913   : > { %2161 = vperm.xlu1 %6108, %v7066_v46  }
 0x916   : > { %2292 = vperm.xlu0 %6123, %v7083_v39  }
 0x917   : > { %2165 = vperm.xlu1 %6108, %v7071_v29  }
 0x91a   : > { %2296 = vperm.xlu0 %6123, %v7077_v59  }
 0x91b   : > { %6109 = vset.pattern.permute.xlu1 %v8795_v17 }
 0x91c   : > { %2236 = vperm.xlu1 %6109, %v7066_v46  }
 0x920   : > { %6110 = vset.pattern.permute.xlu1 %v8793_v37 }
 0x921   : > { %2121 = vperm.xlu1 %6110, %v7083_v39  }
 0x925   : > { %6111 = vset.pattern.permute.xlu1 %v8795_v17 }
 0x926   : > { %2240 = vperm.xlu1 %6111, %v7071_v29  }
 0x92a   : > { %6112 = vset.pattern.permute.xlu1 %v8793_v37 }
 0x92b   : > { %2125 = vperm.xlu1 %6112, %v7077_v59  }
 0x92f   : > { %6113 = vset.pattern.permute.xlu1 %v8795_v17 }
 0x930   : > { %2244 = vperm.xlu1 %6113, %v7083_v39  }
 0x934   : > { %6114 = vset.pattern.permute.xlu1 %v8796_v18 }
 0x935   : > { %2284 = vperm.xlu1 %6114, %v7066_v46  }
 0x939   : > { %6116 = vset.pattern.permute.xlu1 %v8794_v6 }
 0x93a   : > { %2177 = vperm.xlu1 %6116, %v7095_v27  }
 0x93e   : > { %6117 = vset.pattern.permute.xlu1 %v8795_v17 }
 0x93f   : > { %2248 = vperm.xlu1 %6117, %v7077_v59  }
 0x943   : > { %6118 = vset.pattern.permute.xlu1 %v8793_v37 }
 0x944   : > { %2133 = vperm.xlu1 %6118, %v7089_v36  }
 0x948   : > { %6119 = vset.pattern.permute.xlu1 %v8795_v17 }
 0x949   : > { %2252 = vperm.xlu1 %6119, %v7095_v27  }
 0x94c   : > { %v1938_v4 = vpop.xlane.xlu0 %1937 }
 0x94d   : > { %v1939_v58 = vrot.slane %v1938_v4, 4  ;;  %6120 = vset.pattern.permute.xlu1 %v8793_v37 }
 0x94e   : > { %v1962_v30 = vpop.xlane.xlu1 %1961  ;;  %2137 = vperm.xlu1 %6120, %v7102_v40  }
 0x94f   : > { %v1940_v0 = vadd.f32 %v1939_v58, %v1938_v4  ;;  %v1963_v28 = vrot.slane %v1962_v30, 4 }
 0x951   : > { %v1964_v34 = vadd.f32 %v1963_v28, %v1962_v30  ;;  %v1941_v32 = vrot.slane %v1940_v0, 2 }
 0x952   : > { %6122 = vset.pattern.permute.xlu1 %v8795_v17  ;;  %v2007_v13 = vpop.permute.xlu1 %2006 }
 0x953   : > { %v1942_v38 = vadd.f32 %v1941_v32, %v1940_v0  ;;  %v1965_v54 = vrot.slane %v1964_v34, 2  ;;  %2256 = vperm.xlu1 %6122, %v7089_v36  }
 0x954   : > { %v2003_v58 = vpop.permute.xlu0 %2002 }
 0x955   : > { %v1943_v56 = vrot.slane %v1942_v38, 1  ;;  %v1966_v52 = vadd.f32 %v1965_v54, %v1964_v34 }
 0x956   : > { %v2011_v11 = vpop.permute.xlu1 %2010 }
 0x957   : > { %v1944_v50 = vadd.f32 %v1943_v56, %v1942_v38  ;;  %v1967_v60 = vrot.slane %v1966_v52, 1  ;;  %6124 = vset.pattern.permute.xlu1 %v8796_v18 }
 0x958   : > { %2300 = vperm.xlu1 %6124, %v7095_v27  }
 0x959   : > { %5980 = vpush %v1944_v50  ;;  %v1968_v22 = vadd.f32 %v1967_v60, %v1966_v52  ;;  %v2027_v60 = vpop.permute.xlu0 %2026 }
 0x95a   : > { %v2043_v1 = vpop.permute.xlu1 %2042 }
 0x95b   : > { %5982 = vpush %v1968_v22 }
 0x95c   : > { %2304 = vperm.xlu1 %6124, %v7089_v36  }
 0x95e   : > { %v2047_v14 = vpop.permute.xlu1 %2046 }
 0x960   : > { %6126 = vset.pattern.permute.xlu1 %v8773_v45 }
 0x963   : > { %v2015_v48 = vpop.permute.xlu1 %2014 }
 0x968   : > { %v2051_v16 = vpop.permute.xlu1 %2050 }
 0x96d   : > { %v2019_v33 = vpop.permute.xlu1 %2018 }
 0x971   : > { %v2023_v62 = vpop.permute.xlu1 %2022 }
 0x976   : > { %v2059_v55 = vpop.permute.xlu1 %2058 }
 0x97a   : > { %v2063_v7 = vpop.permute.xlu1 %2062 }
 0x97f   : > { %v2031_v38 = vpop.permute.xlu1 %2030 }
 0x98a   : > { %s5981_s15 = spop %5980 }
 0x98b   : > { %s1972_s16 = smul.f32 0.00012207031, %s5981_s15 }
 0x98c   : > { %s5983_s17 = spop %5982 }
 0x98d   : > { %s1976_s21 = smul.f32 %s1972_s16, %s1972_s16  ;;  %v1983_v41 = vstv %s1972_s16 }
 0x98e   : > { %s1975_s22 = smul.f32 0.00012207031, %s5983_s17  ;;  %v1985_v3 = vsub.f32 %v7151_v47, %v1983_v41  ;;  %v1984_v35 = vsub.f32 %v7155_v15, %v1983_v41  ;;  %v1986_v9 = vsub.f32 %v7163_v51, %v1983_v41  ;;  %v1989_v30 = vsub.f32 %v7171_v10, %v1983_v41 }
 0x98f   : > { %v1991_v56 = vsub.f32 %v7183_v26, %v1983_v41  ;;  %v1987_v15 = vsub.f32 %v7161_v61, %v1983_v41  ;;  %v2071_v26 = vpop.permute.xlu1 %2070  ;;  %v1988_v61 = vsub.f32 %v7173_v20, %v1983_v41 }
 0x990   : > { %s1977_s23 = ssub.f32 %s1975_s22, %s1976_s21 }
 0x992   : > { %s1978_s24 = smax.f32 %s6341_s19, %s1977_s23 }
 0x993   : > { %s1979_s25 = sadd.f32 1e-08, %s1978_s24 }
 0x995   : > { %v1980_v19 = vstv %s1979_s25 }
 0x996   : > { %6234 = vrsqrt.f32 %v1980_v19 }
 0x9a0   : > { %v6235_v63 = vpop.eup %6234 }
 0x9a1   : > { %5984 = vpush %v6235_v63  ;;  %v2055_v63 = vpop.permute.xlu0 %2054 }
 0x9d2   : > { %s5985_s26 = spop %5984 }
 0x9d3   : > { %v1992_v25 = vstv %s5985_s26 }
 0x9d4   : > { %v1994_v57 = vmul.f32 %v1992_v25, %v1985_v3  ;;  %v1993_v21 = vmul.f32 %v1992_v25, %v1984_v35  ;;  %v1995_v4 = vmul.f32 %v1992_v25, %v1986_v9  ;;  %v1998_v34 = vmul.f32 %v1992_v25, %v1989_v30 }
 0x9d5   : > { %v2000_v10 = vmul.f32 %v1992_v25, %v1991_v56  ;;  %v1996_v50 = vmul.f32 %v1992_v25, %v1987_v15 }
 0x9d6   : > { %v2034_v0 = vmul.f32 %v2007_v13, %v1994_v57  ;;  %v2033_v28 = vmul.f32 %v2003_v58, %v1993_v21  ;;  %v2035_v47 = vmul.f32 %v2011_v11, %v1995_v4  ;;  %v2038_v51 = vmul.f32 %v2023_v62, %v1998_v34 }
 0x9d7   : > { %v2040_v19 = vmul.f32 %v2031_v38, %v2000_v10  ;;  %v2036_v13 = vmul.f32 %v2015_v48, %v1996_v50 }
 0x9d8   : > { %v7271_v32 = vadd.f32 %v2047_v14, %v2034_v0  ;;  %v7273_v54 = vadd.f32 %v2043_v1, %v2033_v28  ;;  %v7281_v52 = vadd.f32 %v2051_v16, %v2035_v47  ;;  %v7287_v22 = vadd.f32 %v2063_v7, %v2038_v51  ;;  %v7296_v1 = vpop.permute.xlu1 %2109 }
 0x9d9   : > { %v7294_v11 = vadd.f32 %v2071_v26, %v2040_v19  ;;  %v7298_v14 = vadd.f32 %v2055_v63, %v2036_v13  ;;  %v1997_v16 = vmul.f32 %v1992_v25, %v1988_v61  ;;  %v1990_v7 = vsub.f32 %v7181_v31, %v1983_v41 }
 0x9da   : > { %2083 = vrot.lane.b32.xlu0 %v7271_v32, %s6351_s27  ;;  %2081 = vrot.lane.b32.xlu1 %v7273_v54, %s6351_s27 }
 0x9db   : > { %v2037_v48 = vmul.f32 %v2019_v33, %v1997_v16  ;;  %v1999_v33 = vmul.f32 %v1992_v25, %v1990_v7 }
 0x9dc   : > { %v7305_v62 = vpop.permute.xlu1 %2157 }
 0x9dd   : > { %v7309_v20 = vadd.f32 %v2059_v55, %v2037_v48  ;;  %v2039_v9 = vmul.f32 %v2027_v60, %v1999_v33  ;;  %v2067_v55 = vpop.permute.xlu0 %2066 }
 0x9de   : > { %2206 = vrot.lane.b32.xlu0 %v7271_v32, %s6352_s28  ;;  %2085 = vrot.lane.b32.xlu1 %v7281_v52, %s6351_s27 }
 0x9df   : > { %v7321_v21 = vadd.f32 %v2067_v55, %v2039_v9 }
 0x9e0   : > { %v2162_v3 = vpop.permute.xlu1 %2161 }
 0x9e1   : > { %v2114_v41 = vpop.permute.xlu0 %2113 }
 0x9e2   : > { %2214 = vrot.lane.b32.xlu0 %v7287_v22, %s6352_s28  ;;  %2204 = vrot.lane.b32.xlu1 %v7273_v54, %s6352_s28 }
 0x9e4   : > { %v2166_v35 = vpop.permute.xlu1 %2165 }
 0x9e5   : > { %v2118_v4 = vpop.permute.xlu0 %2117 }
 0x9e6   : > { %2095 = vrot.lane.b32.xlu0 %v7294_v11, %s6351_s27  ;;  %2087 = vrot.lane.b32.xlu1 %v7298_v14, %s6351_s27 }
 0x9e8   : > { %v2237_v57 = vpop.permute.xlu1 %2236 }
 0x9e9   : > { %v7331_v30 = vpop.permute.xlu0 %2129 }
 0x9ea   : > { %2308 = vperm.xlu0 %6123, %v7102_v40   ;;  %2208 = vrot.lane.b32.xlu1 %v7281_v52, %s6352_s28 }
 0x9ec   : > { %v2122_v31 = vpop.permute.xlu1 %2121 }
 0x9ed   : > { %v2170_v28 = vpop.permute.xlu0 %2169 }
 0x9ee   : > { %6125 = vset.pattern.permute.xlu0 %v8773_v45  ;;  %2089 = vrot.lane.b32.xlu1 %v7309_v20, %s6351_s27 }
 0x9f0   : > { %v2241_v25 = vpop.permute.xlu1 %2240 }
 0x9f1   : > { %v7333_v38 = vpop.permute.xlu0 %2173 }
 0x9f2   : > { %2210 = vrot.lane.b32.xlu1 %v7298_v14, %s6352_s28 }
 0x9f4   : > { %v7329_v58 = vpop.permute.xlu1 %2125 }
 0x9f5   : > { %v7337_v15 = vpop.permute.xlu0 %2181 }
 0x9f6   : > { %2091 = vrot.lane.b32.xlu1 %v7287_v22, %s6351_s27 }
 0x9f8   : > { %v2245_v0 = vpop.permute.xlu1 %2244 }
 0x9f9   : > { %v7341_v10 = vpop.permute.xlu0 %2185 }
 0x9fa   : > { %2212 = vrot.lane.b32.xlu1 %v7309_v20, %s6352_s28 }
 0x9fc   : > { %v2285_v34 = vpop.permute.xlu1 %2284 }
 0x9fd   : > { %v2233_v50 = vpop.permute.xlu0 %2232 }
 0x9fe   : > { %2093 = vrot.lane.b32.xlu1 %v7321_v21, %s6351_s27 }
 0xa00   : > { %v2178_v47 = vpop.permute.xlu1 %2177 }
 0xa01   : > { %v7345_v26 = vpop.permute.xlu0 %2260 }
 0xa02   : > { %2216 = vrot.lane.b32.xlu1 %v7321_v21, %s6352_s28 }
 0xa04   : > { %v7335_v56 = vpop.permute.xlu1 %2248 }
 0xa05   : > { %v2281_v13 = vpop.permute.xlu0 %2280 }
 0xa06   : > { %2218 = vrot.lane.b32.xlu1 %v7294_v11, %s6352_s28 }
 0xa08   : > { %v7339_v51 = vpop.permute.xlu1 %2133 }
 0xa09   : > { %v2289_v63 = vpop.permute.xlu0 %2288 }
 0xa0c   : > { %v7343_v60 = vpop.permute.xlu1 %2252 }
 0xa0d   : > { %v2293_v48 = vpop.permute.xlu0 %2292 }
 0xa10   : > { %v7347_v19 = vpop.permute.xlu1 %2137 }
 0xa11   : > { %v7355_v9 = vpop.permute.xlu0 %2296 }
 0xa14   : > { %v7349_v61 = vpop.permute.xlu1 %2256 }
 0xa18   : > { %v7351_v16 = vpop.permute.xlu1 %2300 }
 0xa1c   : > { %v7353_v7 = vpop.permute.xlu1 %2304 }
 0xa4c   : > { %v2082_v33 = vpop.permute.xlu1 %2081  ;;  %v2084_v44 = vpop.permute.xlu0 %2083 }
 0xa4d   : > { %v2100_v6 = vsel %vm2097_vm3, %v2082_v33, 0.0  ;;  %v2101_v37 = vsel %vm2097_vm3, %v2084_v44, 0.0  ;;  %v2189_v33 = vmul.f32 %v2162_v3, %v7271_v32  ;;  %v2188_v44 = vmul.f32 %v7305_v62, %v7273_v54 }
 0xa4e   : > { %v2140_v8 = vmul.f32 %v7296_v1, %v2100_v6  ;;  %v2141_v53 = vmul.f32 %v2114_v41, %v2101_v37 }
 0xa50   : > { %v2086_v55 = vpop.permute.xlu1 %2085  ;;  %v2207_v17 = vpop.permute.xlu0 %2206  ;;  %v2196_v6 = vadd.f32 %v2188_v44, %v2140_v8  ;;  %v2197_v37 = vadd.f32 %v2189_v33, %v2141_v53 }
 0xa51   : > { %v2102_v5 = vsel %vm2097_vm3, %v2086_v55, 0.0  ;;  %v2224_v42 = vsel %vm2220_vm4, %v2207_v17, 0.0 }
 0xa52   : > { %v2142_v49 = vmul.f32 %v2118_v4, %v2102_v5  ;;  %v2264_v55 = vmul.f32 %v2237_v57, %v2224_v42  ;;  %v2191_v5 = vmul.f32 %v2170_v28, %v7298_v14 }
 0xa54   : > { %v2205_v24 = vpop.permute.xlu1 %2204  ;;  %v2215_v8 = vpop.permute.xlu0 %2214 }
 0xa55   : > { %v2223_v2 = vsel %vm2220_vm4, %v2205_v24, 0.0  ;;  %v2190_v24 = vmul.f32 %v2166_v35, %v7281_v52  ;;  %v2192_v35 = vmul.f32 %v7333_v38, %v7309_v20 }
 0xa56   : > { %v2263_v27 = vmul.f32 %v2233_v50, %v2223_v2 }
 0xa57   : > { %v2198_v1 = vadd.f32 %v2190_v24, %v2142_v49  ;;  %v2194_v24 = vmul.f32 %v7337_v15, %v7321_v21 }
 0xa58   : > { %v2088_v18 = vpop.permute.xlu1 %2087  ;;  %v2271_v29 = vadd.f32 %v2263_v27, %v2196_v6 }
 0xa59   : > { %v2103_v17 = vsel %vm2097_vm3, %v2088_v18, 0.0 }
 0xa5a   : > { %v2143_v41 = vmul.f32 %v2122_v31, %v2103_v17  ;;  %v2311_v62 = vadd.f32 %v2281_v13, %v2271_v29 }
 0xa5c   : > { %v2209_v23 = vpop.permute.xlu1 %2208  ;;  %v2199_v42 = vadd.f32 %v2191_v5, %v2143_v41  ;;  %v2327_v31 = vmul.f32 0.25, %v2311_v62  ;;  %vm2319_vm6 = vcmp.ge.f32.partialorder %v2311_v62, 0.0 }
 0xa5d   : > { %v2225_v36 = vsel %vm2220_vm4, %v2209_v23, 0.0  ;;  %v2272_v23 = vadd.f32 %v2264_v55, %v2197_v37 }
 0xa5e   : > { %v2265_v40 = vmul.f32 %v2241_v25, %v2225_v36  ;;  %v7398_v38 = vsel %vm2319_vm6, %v2311_v62, %v2327_v31 }
 0xa5f   : > { %v2312_v18 = vadd.f32 %v2285_v34, %v2272_v23 }
 0xa60   : > { %v2090_v39 = vpop.permute.xlu1 %2089  ;;  %v2273_v32 = vadd.f32 %v2265_v40, %v2198_v1  ;;  %v2193_v40 = vmul.f32 %v2178_v47, %v7287_v22  ;;  %v2096_v47 = vpop.permute.xlu0 %2095 }
 0xa61   : > { %v2104_v36 = vsel %vm2097_vm3, %v2090_v39, 0.0  ;;  %vm2320_vm5 = vcmp.ge.f32.partialorder %v2312_v18, 0.0  ;;  %v2328_v29 = vmul.f32 0.25, %v2312_v18  ;;  %v2228_v39 = vsel %vm2220_vm4, %v2215_v8, 0.0 }
 0xa62   : > { %v2313_v53 = vadd.f32 %v2289_v63, %v2273_v32  ;;  %v2144_v14 = vmul.f32 %v7329_v58, %v2104_v36  ;;  %v2268_v58 = vmul.f32 %v7343_v60, %v2228_v39  ;;  %v2359_v60 = vmul.f32 %v7398_v38, %v7398_v38 }
 0xa63   : > { %v7396_v34 = vsel %vm2320_vm5, %v2312_v18, %v2328_v29 }
 0xa64   : > { %v2211_v3 = vpop.permute.xlu1 %2210  ;;  %v2329_v25 = vmul.f32 0.25, %v2313_v53  ;;  %vm2321_vm7 = vcmp.ge.f32.partialorder %v2313_v53, 0.0  ;;  %v2200_v20 = vadd.f32 %v2192_v35, %v2144_v14  ;;  %v2360_v6 = vmul.f32 %v7396_v34, %v7396_v34 }
 0xa65   : > { %v2226_v2 = vsel %vm2220_vm4, %v2211_v3, 0.0 }
 0xa66   : > { %v2266_v54 = vmul.f32 %v2245_v0, %v2226_v2  ;;  %v7400_v50 = vsel %vm2321_vm7, %v2313_v53, %v2329_v25  ;;  %v2367_v15 = vadd.f32 %v2360_v6, %v2359_v60  ;;  %v8804_v60 = vld [vmem:[#allocation10_spill] sm:$0xff] }
 0xa67   : > { %v2361_v37 = vmul.f32 %v7400_v50, %v7400_v50 }
 0xa68   : > { %v2274_v49 = vadd.f32 %v2266_v54, %v2199_v42  ;;  %v2092_v52 = vpop.permute.xlu1 %2091  ;;  %v2195_v54 = vmul.f32 %v7341_v10, %v7294_v11 }
 0xa69   : > { %v2105_v27 = vsel %vm2097_vm3, %v2092_v52, 0.0  ;;  %v2368_v36 = vadd.f32 %v2367_v15, %v2361_v37 }
 0xa6a   : > { %v2145_v57 = vmul.f32 %v7331_v30, %v2105_v27  ;;  %v2314_v4 = vadd.f32 %v2293_v48, %v2274_v49 }
 0xa6c   : > { %v2201_v0 = vadd.f32 %v2193_v40, %v2145_v57  ;;  %v2213_v28 = vpop.permute.xlu1 %2212  ;;  %v2330_v13 = vmul.f32 0.25, %v2314_v4  ;;  %vm2322_vm8 = vcmp.ge.f32.partialorder %v2314_v4, 0.0  ;;  %v2309_v57 = vpop.permute.xlu0 %2308 }
 0xa6d   : > { %v2227_v22 = vsel %vm2220_vm4, %v2213_v28, 0.0 }
 0xa6e   : > { %v2267_v30 = vmul.f32 %v7335_v56, %v2227_v22  ;;  %v2276_v63 = vadd.f32 %v2268_v58, %v2201_v0  ;;  %v2107_v56 = vsel %vm2097_vm3, %v2096_v47, 0.0  ;;  %v7416_v1 = vsel %vm2322_vm8, %v2314_v4, %v2330_v13 }
 0xa6f   : > { %v8797_v13 = vmov 8  }
 0xa70   : > { %v2275_v48 = vadd.f32 %v2267_v30, %v2200_v20  ;;  %v2094_v33 = vpop.permute.xlu1 %2093  ;;  %v2316_v41 = vadd.f32 %v7351_v16, %v2276_v63  ;;  %v2362_v16 = vmul.f32 %v7416_v1, %v7416_v1  ;;  %v8798_v63 = vld [vmem:[#allocation12_spill] sm:$0xff] }
 0xa71   : > { %v2106_v44 = vsel %vm2097_vm3, %v2094_v33, 0.0  ;;  %v8800_v33 = vld [vmem:[#allocation18_spill] sm:$0xff] }
 0xa72   : > { %v2315_v55 = vadd.f32 %v7355_v9, %v2275_v48  ;;  %v2146_v17 = vmul.f32 %v7339_v51, %v2106_v44  ;;  %v2343_v9 = vadd.f32 %v7396_v34, %v7398_v38  ;;  %v2147_v51 = vmul.f32 %v7347_v19, %v2107_v56  ;;  %v8799_v48 = vld [vmem:[#allocation11_spill] sm:$0xff] }
 0xa73   : > { %v2332_v18 = vmul.f32 0.25, %v2316_v41  ;;  %vm2324_vm10 = vcmp.ge.f32.partialorder %v2316_v41, 0.0  ;;  %v2369_v10 = vadd.f32 %v2368_v36, %v2362_v16  ;;  %v8803_v44 = vmov 0  }
 0xa74   : > { %vm2323_vm9 = vcmp.ge.f32.partialorder %v2315_v55, 0.0  ;;  %v2331_v23 = vmul.f32 0.25, %v2315_v55  ;;  %v2217_v5 = vpop.permute.xlu1 %2216  ;;  %v2202_v3 = vadd.f32 %v2194_v24, %v2146_v17  ;;  %v2344_v42 = vadd.f32 %v2343_v9, %v7400_v50 }
 0xa75   : > { %v2229_v21 = vsel %vm2220_vm4, %v2217_v5, 0.0  ;;  %v2203_v49 = vadd.f32 %v2195_v54, %v2147_v51  ;;  %v7440_v35 = vsel %vm2324_vm10, %v2316_v41, %v2332_v18 }
 0xa76   : > { %v7424_v32 = vsel %vm2323_vm9, %v2315_v55, %v2331_v23  ;;  %v2269_v2 = vmul.f32 %v7349_v61, %v2229_v21  ;;  %v2345_v53 = vadd.f32 %v2344_v42, %v7416_v1 }
 0xa77   : > { %v2363_v61 = vmul.f32 %v7424_v32, %v7424_v32 }
 0xa78   : > { %v2277_v62 = vadd.f32 %v2269_v2, %v2202_v3  ;;  %v2219_v19 = vpop.permute.xlu1 %2218  ;;  %v2346_v11 = vadd.f32 %v2345_v53, %v7424_v32  ;;  %v5172_v3 = vld [vmem:[%s8651_s6 + $0x40] sm:$0xff] }
 0xa79   : > { %v2230_v8 = vsel %vm2220_vm4, %v2219_v19, 0.0  ;;  %v2370_v29 = vadd.f32 %v2369_v10, %v2363_v61  ;;  %5600 = vmatprep.mubr.msk.f32.mxu1 %vm668_vm1, %v5172_v3  ;;  %v5175_v3 = vld [vmem:[%s8651_s6 + $0x58] sm:$0xff] }
 0xa7a   : > { %v2317_v52 = vadd.f32 %v7353_v7, %v2277_v62  ;;  %v2270_v27 = vmul.f32 %v7345_v26, %v2230_v8  ;;  %v2347_v25 = vadd.f32 %v2346_v11, %v7440_v35  ;;  %v2364_v7 = vmul.f32 %v7440_v35, %v7440_v35 }
 0xa7c   : > { %v2333_v40 = vmul.f32 0.25, %v2317_v52  ;;  %v2278_v14 = vadd.f32 %v2270_v27, %v2203_v49  ;;  %vm2325_vm13 = vcmp.ge.f32.partialorder %v2317_v52, 0.0  ;;  %v2371_v28 = vadd.f32 %v2370_v29, %v2364_v7 }
 0xa7e   : > { %v2318_v31 = vadd.f32 %v2309_v57, %v2278_v14  ;;  %v7442_v39 = vsel %vm2325_vm13, %v2317_v52, %v2333_v40 }
 0xa7f   : > { %v2365_v26 = vmul.f32 %v7442_v39, %v7442_v39  ;;  %v2348_v0 = vadd.f32 %v2347_v25, %v7442_v39 }
 0xa80   : > { %vm2326_vm14 = vcmp.ge.f32.partialorder %v2318_v31, 0.0  ;;  %v2334_v4 = vmul.f32 0.25, %v2318_v31 }
 0xa81   : > { %v2372_v30 = vadd.f32 %v2371_v28, %v2365_v26 }
 0xa82   : > { %v7450_v22 = vsel %vm2326_vm14, %v2318_v31, %v2334_v4 }
 0xa83   : > { %v2349_v58 = vadd.f32 %v2348_v0, %v7450_v22  ;;  %v2366_v20 = vmul.f32 %v7450_v22, %v7450_v22 }
 0xa85   : > { %2350 = vadd.xlane.f32.xlu1 %v2349_v58  ;;  %v2373_v47 = vadd.f32 %v2372_v30, %v2366_v20 }
 0xa87   : > { %2374 = vadd.xlane.f32.xlu0 %v2373_v47 }
 0xa96   : > { %2419 = vperm.xlu1 %6126, %v7066_v46  }
 0xa9a   : > { %6127 = vset.pattern.permute.xlu1 %v8797_v13 }
 0xa9b   : > { %2455 = vperm.xlu1 %6127, %v7060_v43  }
 0xa9d   : > { %2415 = vperm.xlu0 %6125, %v7060_v43   ;;  %v8801_v43 = vmov 9  }
 0xa9f   : > { %2459 = vperm.xlu1 %6127, %v7066_v46   ;;  %v8802_v46 = vld [vmem:[#allocation17_spill] sm:$0xff] }
 0xaa1   : > { %6131 = vset.pattern.permute.xlu0 %v8797_v13 }
 0xaa2   : > { %2471 = vperm.xlu0 %6131, %v7077_v59  }
 0xaa3   : > { %6128 = vset.pattern.permute.xlu1 %v8773_v45 }
 0xaa4   : > { %2423 = vperm.xlu1 %6128, %v8798_v63  }
 0xaa6   : > { %6132 = vset.pattern.permute.xlu0 %v8773_v45 }
 0xaa7   : > { %2431 = vperm.xlu0 %6132, %v7077_v59  }
 0xaa8   : > { %2427 = vperm.xlu1 %6128, %v8799_v48  }
 0xaab   : > { %2443 = vperm.xlu0 %6132, %v8800_v33  }
 0xaac   : > { %6129 = vset.pattern.permute.xlu1 %v8797_v13 }
 0xaad   : > { %2463 = vperm.xlu1 %6129, %v8798_v63  }
 0xaaf   : > { %6136 = vset.pattern.permute.xlu0 %v8801_v43 }
 0xab0   : > { %2520 = vperm.xlu0 %6136, %v7077_v59  }
 0xab1   : > { %2467 = vperm.xlu1 %6129, %v8799_v48  }
 0xab4   : > { %2532 = vperm.xlu0 %6136, %v8800_v33  }
 0xab5   : > { %6130 = vset.pattern.permute.xlu1 %v8773_v45 }
 0xab6   : > { %2435 = vperm.xlu1 %6130, %v8802_v46  }
 0xab8   : > { %6139 = vset.pattern.permute.xlu0 %v8803_v44 }
 0xaba   : > { %6133 = vset.pattern.permute.xlu1 %v8797_v13 }
 0xabb   : > { %2475 = vperm.xlu1 %6133, %v8802_v46  }
 0xabf   : > { %6134 = vset.pattern.permute.xlu1 %v8773_v45 }
 0xac0   : > { %2439 = vperm.xlu1 %6134, %v8804_v60  }
 0xac4   : > { %6135 = vset.pattern.permute.xlu1 %v8797_v13 }
 0xac5   : > { %2479 = vperm.xlu1 %6135, %v8804_v60  }
 0xac9   : > { %2483 = vperm.xlu1 %6135, %v8800_v33  }
 0xacd   : > { %6137 = vset.pattern.permute.xlu1 %v8801_v43 }
 0xace   : > { %2524 = vperm.xlu1 %6137, %v8802_v46  }
 0xad2   : > { %2528 = vperm.xlu1 %6137, %v8804_v60  }
 0xad6   : > { %6138 = vset.pattern.permute.xlu1 %v8803_v44 }
 0xb12   : > { %v2351_v59 = vpop.xlane.xlu1 %2350 }
 0xb13   : > { %v2352_v56 = vrot.slane %v2351_v59, 4 }
 0xb14   : > { %v2375_v55 = vpop.xlane.xlu0 %2374 }
 0xb15   : > { %v2353_v17 = vadd.f32 %v2352_v56, %v2351_v59  ;;  %v2376_v24 = vrot.slane %v2375_v55, 4 }
 0xb16   : > { %v2420_v42 = vpop.permute.xlu1 %2419 }
 0xb17   : > { %v2377_v6 = vadd.f32 %v2376_v24, %v2375_v55  ;;  %v2354_v37 = vrot.slane %v2353_v17, 2 }
 0xb19   : > { %v2355_v41 = vadd.f32 %v2354_v37, %v2353_v17  ;;  %v2378_v23 = vrot.slane %v2377_v6, 2 }
 0xb1a   : > { %v2456_v54 = vpop.permute.xlu1 %2455 }
 0xb1b   : > { %v2356_v5 = vrot.slane %v2355_v41, 1  ;;  %v2379_v9 = vadd.f32 %v2378_v23, %v2377_v6 }
 0xb1c   : > { %v2416_v61 = vpop.permute.xlu0 %2415 }
 0xb1d   : > { %v2357_v51 = vadd.f32 %v2356_v5, %v2355_v41  ;;  %v2380_v21 = vrot.slane %v2379_v9, 1 }
 0xb1e   : > { %v2460_v18 = vpop.permute.xlu1 %2459 }
 0xb1f   : > { %5986 = vpush %v2357_v51  ;;  %v2381_v15 = vadd.f32 %v2380_v21, %v2379_v9  ;;  %v5173_v21 = vld [vmem:[%s8651_s6 + $0x48] sm:$0xff] }
 0xb21   : > { %5988 = vpush %v2381_v15  ;;  %v2472_v52 = vpop.permute.xlu0 %2471  ;;  %v5174_v15 = vld [vmem:[%s8651_s6 + $0x50] sm:$0xff] }
 0xb23   : > { %v2424_v62 = vpop.permute.xlu1 %2423 }
 0xb26   : > { %v2432_v57 = vpop.permute.xlu0 %2431 }
 0xb27   : > { %v2428_v19 = vpop.permute.xlu1 %2427 }
 0xb2c   : > { %v2464_v36 = vpop.permute.xlu1 %2463 }
 0xb30   : > { %v2468_v8 = vpop.permute.xlu1 %2467 }
 0xb35   : > { %v2436_v53 = vpop.permute.xlu1 %2435 }
 0xb3a   : > { %v2476_v49 = vpop.permute.xlu1 %2475 }
 0xb3f   : > { %v2440_v11 = vpop.permute.xlu1 %2439 }
 0xb44   : > { %v2480_v63 = vpop.permute.xlu1 %2479 }
 0xb48   : > { %v2484_v41 = vpop.permute.xlu1 %2483 }
 0xb50   : > { %s5987_s12 = spop %5986 }
 0xb51   : > { %s2385_s14 = smul.f32 0.00012207031, %s5987_s12 }
 0xb52   : > { %s5989_s15 = spop %5988 }
 0xb53   : > { %s2389_s16 = smul.f32 %s2385_s14, %s2385_s14  ;;  %v2396_v27 = vstv %s2385_s14 }
 0xb54   : > { %s2388_s17 = smul.f32 0.00012207031, %s5989_s15  ;;  %v2397_v10 = vsub.f32 %v7398_v38, %v2396_v27  ;;  %v2398_v40 = vsub.f32 %v7396_v34, %v2396_v27  ;;  %v2399_v14 = vsub.f32 %v7400_v50, %v2396_v27  ;;  %v2400_v31 = vsub.f32 %v7416_v1, %v2396_v27 }
 0xb55   : > { %v2401_v25 = vsub.f32 %v7424_v32, %v2396_v27  ;;  %v2402_v7 = vsub.f32 %v7440_v35, %v2396_v27  ;;  %v2403_v26 = vsub.f32 %v7442_v39, %v2396_v27  ;;  %v2404_v4 = vsub.f32 %v7450_v22, %v2396_v27  ;;  %v2444_v39 = vpop.permute.xlu0 %2443 }
 0xb56   : > { %s2390_s21 = ssub.f32 %s2388_s17, %s2389_s16  ;;  %v8810_v27 = vmov 1  }
 0xb58   : > { %s2391_s22 = smax.f32 %s6341_s19, %s2390_s21 }
 0xb59   : > { %s2392_s23 = sadd.f32 1e-08, %s2391_s22 }
 0xb5b   : > { %v2393_v2 = vstv %s2392_s23 }
 0xb5c   : > { %6236 = vrsqrt.f32 %v2393_v2  ;;  %v5176_v2 = vld [vmem:[%s8651_s6 + $0x60] sm:$0xff] }
 0xb66   : > { %v6237_v16 = vpop.eup %6236 }
 0xb67   : > { %5990 = vpush %v6237_v16  ;;  %v5178_v16 = vld [vmem:[%s8651_s6 + $0x70] sm:$0xff] }
 0xb98   : > { %s5991_s24 = spop %5990 }
 0xb99   : > { %v2405_v29 = vstv %s5991_s24 }
 0xb9a   : > { %v2406_v0 = vmul.f32 %v2405_v29, %v2397_v10  ;;  %v2407_v28 = vmul.f32 %v2405_v29, %v2398_v40  ;;  %v2408_v58 = vmul.f32 %v2405_v29, %v2399_v14  ;;  %v2409_v38 = vmul.f32 %v2405_v29, %v2400_v31  ;;  %v2525_v10 = vpop.permute.xlu1 %2524  ;;  %v8811_v31 = vld [vmem:[#allocation13_spill] sm:$0xff] }
 0xb9b   : > { %v2410_v20 = vmul.f32 %v2405_v29, %v2401_v25  ;;  %v2411_v34 = vmul.f32 %v2405_v29, %v2402_v7  ;;  %v2412_v47 = vmul.f32 %v2405_v29, %v2403_v26  ;;  %v2413_v48 = vmul.f32 %v2405_v29, %v2404_v4  ;;  %v8813_v26 = vld [vmem:[#allocation14_spill] sm:$0xff] }
 0xb9c   : > { %v2446_v30 = vmul.f32 %v2416_v61, %v2406_v0  ;;  %v2447_v50 = vmul.f32 %v2420_v42, %v2407_v28  ;;  %v2448_v1 = vmul.f32 %v2424_v62, %v2408_v58  ;;  %v2449_v33 = vmul.f32 %v2428_v19, %v2409_v38  ;;  %v5177_v42 = vld [vmem:[%s8651_s6 + $0x68] sm:$0xff]  ;;  %v7536_v62 = vld [vmem:[%s8650_s5 + $0x80] sm:$0xff]  ;;  %v7565_v61 = vld [vmem:[%s8650_s5 + $0xb0] sm:$0xff] }
 0xb9d   : > { %v2450_v35 = vmul.f32 %v2432_v57, %v2410_v20  ;;  %v2451_v60 = vmul.f32 %v2436_v53, %v2411_v34  ;;  %v2452_v55 = vmul.f32 %v2440_v11, %v2412_v47  ;;  %v2453_v17 = vmul.f32 %v2444_v39, %v2413_v48  ;;  %2692 = vperm.xlu1 %6138, %v7536_v62   ;;  %v7542_v19 = vld [vmem:[%s8650_s5 + $0x88] sm:$0xff]  ;;  %v7559_v53 = vld [vmem:[%s8650_s5 + $0x98] sm:$0xff]  ;;  %v2521_v11 = vpop.permute.xlu0 %2520  ;;  %v8817_v47 = vld [vmem:[#allocation16_spill] sm:$0xff] }
 0xb9e   : > { %v2486_v32 = vadd.f32 %v2456_v54, %v2446_v30  ;;  %v2487_v46 = vadd.f32 %v2460_v18, %v2447_v50  ;;  %v2488_v59 = vadd.f32 %v2464_v36, %v2448_v1  ;;  %v2489_v22 = vadd.f32 %v2468_v8, %v2449_v33  ;;  %v5179_v54 = vld [vmem:[%s8651_s6 + $0x78] sm:$0xff]  ;;  %v5196_v18 = vld [vmem:[%s8649_s4 + $0x80] sm:$0xff]  ;;  %v7547_v36 = vld [vmem:[%s8650_s5 + $0x90] sm:$0xff]  ;;  %2697 = vperm.xlu0 %6139, %v7542_v19   ;;  %v2529_v28 = vpop.permute.xlu1 %2528 }
 0xb9f   : > { %v2490_v6 = vadd.f32 %v2472_v52, %v2450_v35  ;;  %v2491_v37 = vadd.f32 %v2476_v49, %v2451_v60  ;;  %v2492_v23 = vadd.f32 %v2480_v63, %v2452_v55  ;;  %v2493_v5 = vadd.f32 %v2484_v41, %v2453_v17  ;;  %5620 = vmatprep.mubr.msk.f32.mxu0 %vm824_vm2, %v5196_v18  ;;  %v7553_v8 = vld [vmem:[%s8650_s5 + $0xa0] sm:$0xff]  ;;  %v7571_v49 = vld [vmem:[%s8650_s5 + $0xa8] sm:$0xff]  ;;  %v7578_v52 = vld [vmem:[%s8650_s5 + $0xb8] sm:$0xff] }
 0xba0   : > { %v5830_v56 = vpack.c.bf16 %v2487_v46, %v2486_v32  ;;  %v5834_v24 = vpack.c.bf16 %v2489_v22, %v2488_v59  ;;  %8805 = vst [vmem:[#allocation12_spill] sm:$0xff] %v7547_v36  ;;  %8806 = vst [vmem:[#allocation11_spill] sm:$0xff] %v7559_v53  ;;  %v8815_v30 = vld [vmem:[#allocation15_spill] sm:$0xff]  ;;  %v5198_v33 = vld [vmem:[%s8649_s4 + $0x90] sm:$0xff] }
 0xba1   : > { %v5838_v9 = vpack.c.bf16 %v2491_v37, %v2490_v6  ;;  %v5842_v51 = vpack.c.bf16 %v2493_v5, %v2492_v23  ;;  %2702 = vperm.xlu1 %6138, %v7547_v36   ;;  %8807 = vst [vmem:[#allocation18_spill] sm:$0xff] %v7565_v61  ;;  %8808 = vst [vmem:[#allocation17_spill] sm:$0xff] %v7571_v49  ;;  %v2533_v7 = vpop.permute.xlu0 %2532  ;;  %v5197_v1 = vld [vmem:[%s8649_s4 + $0x88] sm:$0xff]  ;;  %v5199_v32 = vld [vmem:[%s8649_s4 + $0x98] sm:$0xff] }
 0xba2   : > { %5831 = vmatprep.subr.bf16.mxu1 %v5830_v56  ;;  %2712 = vperm.xlu0 %6139, %v7553_v8   ;;  %8809 = vst [vmem:[#allocation10_spill] sm:$0xff] %v7578_v52  ;;  %v5200_v46 = vld [vmem:[%s8649_s4 + $0xa0] sm:$0xff]  ;;  %v5201_v35 = vld [vmem:[%s8649_s4 + $0xa8] sm:$0xff]  ;;  %v5202_v60 = vld [vmem:[%s8649_s4 + $0xb0] sm:$0xff] }
 0xba3   : > { %5833 = vmatpush3.bf16.msra.mxu1 %v5830_v56  ;;  %v5203_v39 = vld [vmem:[%s8649_s4 + $0xb8] sm:$0xff] }
 0xba4   : > { %5835 = vmatprep.subr.bf16.mxu1 %v5834_v24 }
 0xba5   : > { %2707 = vperm.xlu1 %6138, %v7559_v53  }
 0xba6   : > { %2722 = vperm.xlu0 %6139, %v7565_v61  }
 0xba7   : > { %5837 = vmatpush3.bf16.msra.mxu1 %v5834_v24 }
 0xba8   : > { %5839 = vmatprep.subr.bf16.mxu1 %v5838_v9 }
 0xba9   : > { %2717 = vperm.xlu1 %6138, %v7571_v49  }
 0xbaa   : > { %6140 = vset.pattern.permute.xlu0 %v8810_v27 }
 0xbab   : > { %5841 = vmatpush3.bf16.msra.mxu1 %v5838_v9 }
 0xbac   : > { %5843 = vmatprep.subr.bf16.mxu1 %v5842_v51 }
 0xbad   : > { %2727 = vperm.xlu1 %6138, %v7578_v52  }
 0xbaf   : > { %5845 = vmatpush3.bf16.msra.mxu1 %v5842_v51 }
 0xbb1   : > { %6141 = vset.pattern.permute.xlu1 %v8810_v27 }
 0xbb2   : > { %5601 = vmatmul.mubr.msk.f32.vlgmr.msra.gmra.mrb[4].mxu1 %vm668_vm1, %v5173_v21 }
 0xbb3   : > { %5603 = vmatprep.mubr.msk.f32.mxu1 %vm668_vm1, %v5174_v15 }
 0xbb6   : > { %5604 = vmatmul.mubr.msk.f32.gmra.mrb[6].mxu1 %vm668_vm1, %v5175_v3 }
 0xbb7   : > { %5606 = vmatprep.mubr.msk.f32.mxu1 %vm668_vm1, %v5176_v2 }
 0xbba   : > { %5607 = vmatmul.mubr.msk.f32.gmra.mrb[12].mxu1 %vm668_vm1, %v5177_v42 }
 0xbbb   : > { %5609 = vmatprep.mubr.msk.f32.mxu1 %vm668_vm1, %v5178_v16 }
 0xbbe   : > { %5610 = vmatmul.mubr.msk.f32.gmra.mrb[14].mxu1 %vm668_vm1, %v5179_v54 }
 0xc1c   : > { %v2693_v59 = vpop.permute.xlu1 %2692 }
 0xc1d   : > { %v2698_v56 = vpop.permute.xlu0 %2697 }
 0xc20   : > { %v2703_v22 = vpop.permute.xlu1 %2702 }
 0xc21   : > { %v2713_v16 = vpop.permute.xlu0 %2712 }
 0xc24   : > { %v2708_v55 = vpop.permute.xlu1 %2707 }
 0xc28   : > { %v2718_v15 = vpop.permute.xlu1 %2717 }
 0xc8d   : > { %v5608_v40 = vpop.f32.mrb[12].mxu1 }
 0xc8e   : > { %v2651_v14 = vadd.f32 %v5608_v40, %v2525_v10  ;;  %v2645_v57 = vpop.f32.mrb[13].mxu1 }
 0xc8f   : > { %v2646_v29 = vadd.f32 %v2645_v57, %v2521_v11 }
 0xc90   : > { %v7584_v25 = vadd.f32 %v2651_v14, %v8811_v31 }
 0xc91   : > { %v7587_v4 = vadd.f32 %v2646_v29, %v8813_v26  ;;  %v5611_v0 = vpop.f32.mrb[14].mxu1 }
 0xc92   : > { %8812 = vst [vmem:[#allocation13_spill] sm:$0xff] %v7584_v25  ;;  %v2661_v58 = vadd.f32 %v5611_v0, %v2533_v7  ;;  %v2655_v38 = vpop.f32.mrb[15].mxu1 }
 0xc93   : > { %8814 = vst [vmem:[#allocation14_spill] sm:$0xff] %v7587_v4  ;;  %v2656_v20 = vadd.f32 %v2655_v38, %v2529_v28  ;;  %v5846_v34 = vpack.c.bf16 %v7584_v25, %v7587_v4  ;;  %v2728_v38 = vpop.permute.xlu1 %2727 }
 0xc94   : > { %v7592_v50 = vadd.f32 %v2661_v58, %v8815_v30  ;;  %v2723_v30 = vpop.permute.xlu0 %2722 }
 0xc95   : > { %v7595_v63 = vadd.f32 %v2656_v20, %v8817_v47  ;;  %5847 = vmatprep.subr.bf16.mxu0 %v5846_v34 }
 0xc96   : > { %8816 = vst [vmem:[#allocation15_spill] sm:$0xff] %v7592_v50  ;;  %5849 = vmatpush3.bf16.msra.mxu0 %v5846_v34 }
 0xc97   : > { %8818 = vst [vmem:[#allocation16_spill] sm:$0xff] %v7595_v63  ;;  %v5850_v48 = vpack.c.bf16 %v7592_v50, %v7595_v63 }
 0xc99   : > { %5851 = vmatprep.subr.bf16.mxu0 %v5850_v48 }
 0xc9a   : > { %5853 = vmatpush3.bf16.msra.mxu0 %v5850_v48 }
 0xc9d   : > { %5621 = vmatmul.mubr.msk.f32.vlgmr.msra.gmra.mrb[24].mxu0 %vm824_vm2, %v5197_v1 }
 0xc9e   : > { %5623 = vmatprep.mubr.msk.f32.mxu0 %vm824_vm2, %v5198_v33 }
 0xca1   : > { %5624 = vmatmul.mubr.msk.f32.gmra.mrb[26].mxu0 %vm824_vm2, %v5199_v32 }
 0xca2   : > { %5626 = vmatprep.mubr.msk.f32.mxu0 %vm824_vm2, %v5200_v46 }
 0xca5   : > { %5627 = vmatmul.mubr.msk.f32.gmra.mrb[28].mxu0 %vm824_vm2, %v5201_v35 }
 0xca6   : > { %5629 = vmatprep.mubr.msk.f32.mxu0 %vm824_vm2, %v5202_v60 }
 0xca9   : > { %5630 = vmatmul.mubr.msk.f32.gmra.mrb[30].mxu0 %vm824_vm2, %v5203_v39 }
 0xd70   : > { %v5622_v17 = vpop.f32.mrb[24].mxu0 }
 0xd71   : > { %v2826_v24 = vadd.f32 %v5622_v17, %v2698_v56  ;;  %v2820_v6 = vpop.f32.mrb[25].mxu0 }
 0xd72   : > { %v2821_v37 = vadd.f32 %v2820_v6, %v2693_v59 }
 0xd73   : > { %vm2860_vm15 = vcmp.ge.f32.partialorder %v2826_v24, 0.0  ;;  %v2868_v41 = vmul.f32 0.25, %v2826_v24 }
 0xd74   : > { %vm2859_vm0 = vcmp.ge.f32.partialorder %v2821_v37, 0.0  ;;  %v2867_v23 = vmul.f32 0.25, %v2821_v37  ;;  %v5625_v5 = vpop.f32.mrb[26].mxu0 }
 0xd75   : > { %v7627_v9 = vsel %vm2860_vm15, %v2826_v24, %v2868_v41  ;;  %v2836_v51 = vadd.f32 %v5625_v5, %v2708_v55  ;;  %v2830_v21 = vpop.f32.mrb[27].mxu0 }
 0xd76   : > { %v2900_v3 = vmul.f32 %v7627_v9, %v7627_v9  ;;  %v7631_v2 = vsel %vm2859_vm0, %v2821_v37, %v2867_v23  ;;  %v2831_v42 = vadd.f32 %v2830_v21, %v2703_v22 }
 0xd77   : > { %v2899_v54 = vmul.f32 %v7631_v2, %v7631_v2  ;;  %vm2862_vm5 = vcmp.ge.f32.partialorder %v2836_v51, 0.0  ;;  %v2870_v18 = vmul.f32 0.25, %v2836_v51  ;;  %v2883_v40 = vadd.f32 %v7627_v9, %v7631_v2 }
 0xd78   : > { %vm2861_vm6 = vcmp.ge.f32.partialorder %v2831_v42, 0.0  ;;  %v2869_v11 = vmul.f32 0.25, %v2831_v42  ;;  %v5628_v10 = vpop.f32.mrb[28].mxu0 }
 0xd79   : > { %v2846_v14 = vadd.f32 %v5628_v10, %v2718_v15  ;;  %v2840_v57 = vpop.f32.mrb[29].mxu0  ;;  %v2907_v29 = vadd.f32 %v2900_v3, %v2899_v54  ;;  %v7637_v31 = vsel %vm2862_vm5, %v2836_v51, %v2870_v18  ;;  %v8820_v54 = vmov 3  }
 0xd7a   : > { %v7639_v7 = vsel %vm2861_vm6, %v2831_v42, %v2869_v11  ;;  %v2841_v26 = vadd.f32 %v2840_v57, %v2713_v16  ;;  %v2902_v47 = vmul.f32 %v7637_v31, %v7637_v31  ;;  %v8819_v16 = vmov 2  }
 0xd7b   : > { %v2884_v0 = vadd.f32 %v2883_v40, %v7639_v7  ;;  %v2901_v28 = vmul.f32 %v7639_v7, %v7639_v7  ;;  %vm2864_vm7 = vcmp.ge.f32.partialorder %v2846_v14, 0.0  ;;  %v2872_v58 = vmul.f32 0.25, %v2846_v14 }
 0xd7c   : > { %vm2863_vm8 = vcmp.ge.f32.partialorder %v2841_v26, 0.0  ;;  %v2871_v20 = vmul.f32 0.25, %v2841_v26  ;;  %v5631_v34 = vpop.f32.mrb[30].mxu0  ;;  %v8821_v18 = vmov 4   ;;  %v8822_v11 = vmov 5  }
 0xd7d   : > { %v2908_v48 = vadd.f32 %v2907_v29, %v2901_v28  ;;  %v2885_v1 = vadd.f32 %v2884_v0, %v7637_v31  ;;  %v2856_v33 = vadd.f32 %v5631_v34, %v2728_v38  ;;  %v2850_v32 = vpop.f32.mrb[31].mxu0  ;;  %v7647_v46 = vsel %vm2864_vm7, %v2846_v14, %v2872_v58 }
 0xd7e   : > { %v7649_v35 = vsel %vm2863_vm8, %v2841_v26, %v2871_v20  ;;  %v2851_v60 = vadd.f32 %v2850_v32, %v2723_v30  ;;  %v2904_v17 = vmul.f32 %v7647_v46, %v7647_v46  ;;  %v8823_v10 = vmov 6  }
 0xd7f   : > { %v2886_v39 = vadd.f32 %v2885_v1, %v7649_v35  ;;  %v2903_v59 = vmul.f32 %v7649_v35, %v7649_v35  ;;  %v2909_v22 = vadd.f32 %v2908_v48, %v2902_v47  ;;  %vm2866_vm9 = vcmp.ge.f32.partialorder %v2856_v33, 0.0 }
 0xd80   : > { %v2874_v56 = vmul.f32 0.25, %v2856_v33  ;;  %vm2865_vm10 = vcmp.ge.f32.partialorder %v2851_v60, 0.0  ;;  %v2873_v55 = vmul.f32 0.25, %v2851_v60 }
 0xd81   : > { %v2910_v24 = vadd.f32 %v2909_v22, %v2903_v59  ;;  %v2887_v6 = vadd.f32 %v2886_v39, %v7647_v46 }
 0xd82   : > { %v7657_v37 = vsel %vm2866_vm9, %v2856_v33, %v2874_v56  ;;  %v7659_v41 = vsel %vm2865_vm10, %v2851_v60, %v2873_v55 }
 0xd83   : > { %v2905_v23 = vmul.f32 %v7659_v41, %v7659_v41  ;;  %v2888_v5 = vadd.f32 %v2887_v6, %v7659_v41  ;;  %v2911_v51 = vadd.f32 %v2910_v24, %v2904_v17  ;;  %v2906_v15 = vmul.f32 %v7657_v37, %v7657_v37 }
 0xd85   : > { %v2889_v21 = vadd.f32 %v2888_v5, %v7657_v37  ;;  %v2912_v3 = vadd.f32 %v2911_v51, %v2905_v23 }
 0xd87   : > { %2890 = vadd.xlane.f32.xlu0 %v2889_v21  ;;  %v2913_v42 = vadd.f32 %v2912_v3, %v2906_v15 }
 0xd89   : > { %2914 = vadd.xlane.f32.xlu1 %v2913_v42 }
 0xd9a   : > { %2959 = vperm.xlu1 %6141, %v7542_v19  }
 0xd9d   : > { %2955 = vperm.xlu0 %6140, %v7536_v62  }
 0xd9e   : > { %2963 = vperm.xlu1 %6141, %v7547_v36  }
 0xda1   : > { %2979 = vperm.xlu0 %6140, %v7565_v61  }
 0xda2   : > { %6142 = vset.pattern.permute.xlu1 %v8819_v16 }
 0xda3   : > { %2995 = vperm.xlu1 %6142, %v7536_v62  }
 0xda5   : > { %6147 = vset.pattern.permute.xlu0 %v8819_v16 }
 0xda6   : > { %3007 = vperm.xlu0 %6147, %v7559_v53  }
 0xda7   : > { %2999 = vperm.xlu1 %6142, %v7542_v19  }
 0xdaa   : > { %3019 = vperm.xlu0 %6147, %v7565_v61  }
 0xdab   : > { %6143 = vset.pattern.permute.xlu1 %v8810_v27 }
 0xdac   : > { %2967 = vperm.xlu1 %6143, %v7559_v53  }
 0xdae   : > { %6151 = vset.pattern.permute.xlu0 %v8820_v54 }
 0xdaf   : > { %3063 = vperm.xlu0 %6151, %v7542_v19  }
 0xdb0   : > { %6144 = vset.pattern.permute.xlu1 %v8819_v16 }
 0xdb1   : > { %3003 = vperm.xlu1 %6144, %v7547_v36  }
 0xdb3   : > { %3067 = vperm.xlu0 %6151, %v7547_v36  }
 0xdb5   : > { %6145 = vset.pattern.permute.xlu1 %v8810_v27 }
 0xdb6   : > { %2971 = vperm.xlu1 %6145, %v7553_v8  }
 0xdb7   : > { %3079 = vperm.xlu0 %6151, %v7571_v49  }
 0xdba   : > { %2975 = vperm.xlu1 %6145, %v7571_v49  }
 0xdbb   : > { %6159 = vset.pattern.permute.xlu0 %v8821_v18 }
 0xdbc   : > { %3119 = vperm.xlu0 %6159, %v7559_v53  }
 0xdbe   : > { %6146 = vset.pattern.permute.xlu1 %v8819_v16 }
 0xdbf   : > { %3011 = vperm.xlu1 %6146, %v7553_v8  }
 0xdc0   : > { %3123 = vperm.xlu0 %6159, %v7553_v8  }
 0xdc3   : > { %3015 = vperm.xlu1 %6146, %v7571_v49  }
 0xdc4   : > { %3131 = vperm.xlu0 %6159, %v7565_v61  }
 0xdc7   : > { %6148 = vset.pattern.permute.xlu1 %v8810_v27 }
 0xdc8   : > { %2983 = vperm.xlu1 %6148, %v7578_v52   ;;  %3135 = vperm.xlu0 %6159, %v7578_v52  }
 0xdcc   : > { %6149 = vset.pattern.permute.xlu1 %v8819_v16  ;;  %6165 = vset.pattern.permute.xlu0 %v8822_v11 }
 0xdcd   : > { %3023 = vperm.xlu1 %6149, %v7578_v52   ;;  %3179 = vperm.xlu0 %6165, %v7536_v62  }
 0xdd1   : > { %6150 = vset.pattern.permute.xlu1 %v8820_v54  ;;  %3207 = vperm.xlu0 %6165, %v7578_v52  }
 0xdd2   : > { %3059 = vperm.xlu1 %6150, %v7536_v62  }
 0xdd5   : > { %6167 = vset.pattern.permute.xlu0 %v8823_v10 }
 0xdd6   : > { %6152 = vset.pattern.permute.xlu1 %v8821_v18  ;;  %3227 = vperm.xlu0 %6167, %v7536_v62  }
 0xdd7   : > { %3107 = vperm.xlu1 %6152, %v7536_v62  }
 0xdda   : > { %3235 = vperm.xlu0 %6167, %v7547_v36  }
 0xddb   : > { %3111 = vperm.xlu1 %6152, %v7542_v19  }
 0xdde   : > { %3239 = vperm.xlu0 %6167, %v7559_v53  }
 0xddf   : > { %3115 = vperm.xlu1 %6152, %v7547_v36  }
 0xde2   : > { %3243 = vperm.xlu0 %6167, %v7553_v8  }
 0xde3   : > { %6153 = vset.pattern.permute.xlu1 %v8822_v11 }
 0xde4   : > { %3183 = vperm.xlu1 %6153, %v7542_v19  }
 0xde8   : > { %6154 = vset.pattern.permute.xlu1 %v8820_v54 }
 0xde9   : > { %3071 = vperm.xlu1 %6154, %v7559_v53  }
 0xded   : > { %6155 = vset.pattern.permute.xlu1 %v8822_v11 }
 0xdee   : > { %3187 = vperm.xlu1 %6155, %v7547_v36  }
 0xdf2   : > { %6156 = vset.pattern.permute.xlu1 %v8820_v54 }
 0xdf3   : > { %3075 = vperm.xlu1 %6156, %v7553_v8  }
 0xdf7   : > { %6157 = vset.pattern.permute.xlu1 %v8822_v11 }
 0xdf8   : > { %3191 = vperm.xlu1 %6157, %v7559_v53  }
 0xdfc   : > { %6158 = vset.pattern.permute.xlu1 %v8823_v10 }
 0xdfd   : > { %3231 = vperm.xlu1 %6158, %v7542_v19  }
 0xe01   : > { %6160 = vset.pattern.permute.xlu1 %v8821_v18 }
 0xe02   : > { %3127 = vperm.xlu1 %6160, %v7571_v49  }
 0xe06   : > { %6161 = vset.pattern.permute.xlu1 %v8822_v11 }
 0xe07   : > { %3195 = vperm.xlu1 %6161, %v7553_v8  }
 0xe0b   : > { %6162 = vset.pattern.permute.xlu1 %v8820_v54 }
 0xe0c   : > { %3083 = vperm.xlu1 %6162, %v7565_v61  }
 0xe10   : > { %6163 = vset.pattern.permute.xlu1 %v8822_v11 }
 0xe11   : > { %3199 = vperm.xlu1 %6163, %v7571_v49  }
 0xe14   : > { %v2891_v40 = vpop.xlane.xlu0 %2890 }
 0xe15   : > { %v2892_v14 = vrot.slane %v2891_v40, 4  ;;  %6164 = vset.pattern.permute.xlu1 %v8820_v54 }
 0xe16   : > { %v2915_v57 = vpop.xlane.xlu1 %2914  ;;  %3087 = vperm.xlu1 %6164, %v7578_v52  }
 0xe17   : > { %v2893_v29 = vadd.f32 %v2892_v14, %v2891_v40  ;;  %v2916_v26 = vrot.slane %v2915_v57, 4 }
 0xe19   : > { %v2917_v0 = vadd.f32 %v2916_v26, %v2915_v57  ;;  %v2894_v28 = vrot.slane %v2893_v29, 2 }
 0xe1a   : > { %6166 = vset.pattern.permute.xlu1 %v8822_v11  ;;  %v2960_v33 = vpop.permute.xlu1 %2959 }
 0xe1b   : > { %v2895_v58 = vadd.f32 %v2894_v28, %v2893_v29  ;;  %v2918_v38 = vrot.slane %v2917_v0, 2  ;;  %3203 = vperm.xlu1 %6166, %v7565_v61  }
 0xe1c   : > { %v2956_v14 = vpop.permute.xlu0 %2955 }
 0xe1d   : > { %v2896_v20 = vrot.slane %v2895_v58, 1  ;;  %v2919_v34 = vadd.f32 %v2918_v38, %v2917_v0 }
 0xe1e   : > { %v2964_v60 = vpop.permute.xlu1 %2963 }
 0xe1f   : > { %v2897_v30 = vadd.f32 %v2896_v20, %v2895_v58  ;;  %v2920_v47 = vrot.slane %v2919_v34, 1  ;;  %6168 = vset.pattern.permute.xlu1 %v8823_v10 }
 0xe20   : > { %3247 = vperm.xlu1 %6168, %v7571_v49  }
 0xe21   : > { %5992 = vpush %v2897_v30  ;;  %v2921_v48 = vadd.f32 %v2920_v47, %v2919_v34  ;;  %v2980_v47 = vpop.permute.xlu0 %2979 }
 0xe22   : > { %v2996_v39 = vpop.permute.xlu1 %2995 }
 0xe23   : > { %5994 = vpush %v2921_v48 }
 0xe24   : > { %3251 = vperm.xlu1 %6168, %v7565_v61  }
 0xe26   : > { %v3000_v59 = vpop.permute.xlu1 %2999 }
 0xe28   : > { %6170 = vset.pattern.permute.xlu1 %v8773_v45 }
 0xe2b   : > { %v2968_v22 = vpop.permute.xlu1 %2967 }
 0xe30   : > { %v3004_v56 = vpop.permute.xlu1 %3003 }
 0xe35   : > { %v2972_v55 = vpop.permute.xlu1 %2971 }
 0xe39   : > { %v2976_v17 = vpop.permute.xlu1 %2975 }
 0xe3e   : > { %v3012_v24 = vpop.permute.xlu1 %3011 }
 0xe42   : > { %v3016_v5 = vpop.permute.xlu1 %3015 }
 0xe47   : > { %v2984_v58 = vpop.permute.xlu1 %2983 }
 0xe4c   : > { %v3024_v48 = vpop.permute.xlu1 %3023 }
 0xe52   : > { %s5993_s16 = spop %5992 }
 0xe53   : > { %s2925_s17 = smul.f32 0.00012207031, %s5993_s16 }
 0xe54   : > { %s5995_s21 = spop %5994 }
 0xe55   : > { %s2929_s22 = smul.f32 %s2925_s17, %s2925_s17  ;;  %v2936_v6 = vstv %s2925_s17 }
 0xe56   : > { %s2928_s23 = smul.f32 0.00012207031, %s5995_s21  ;;  %v2938_v23 = vsub.f32 %v7627_v9, %v2936_v6  ;;  %v2937_v21 = vsub.f32 %v7631_v2, %v2936_v6  ;;  %v2939_v15 = vsub.f32 %v7639_v7, %v2936_v6  ;;  %v2942_v57 = vsub.f32 %v7647_v46, %v2936_v6 }
 0xe57   : > { %v2944_v20 = vsub.f32 %v7657_v37, %v2936_v6  ;;  %v2940_v2 = vsub.f32 %v7637_v31, %v2936_v6  ;;  %v2941_v31 = vsub.f32 %v7649_v35, %v2936_v6 }
 0xe58   : > { %s2930_s24 = ssub.f32 %s2928_s23, %s2929_s22 }
 0xe5a   : > { %s2931_s25 = smax.f32 %s6341_s19, %s2930_s24 }
 0xe5b   : > { %s2932_s26 = sadd.f32 1e-08, %s2931_s25 }
 0xe5d   : > { %v2933_v1 = vstv %s2932_s26 }
 0xe5e   : > { %6238 = vrsqrt.f32 %v2933_v1 }
 0xe68   : > { %v6239_v32 = vpop.eup %6238 }
 0xe69   : > { %5996 = vpush %v6239_v32  ;;  %v3008_v32 = vpop.permute.xlu0 %3007 }
 0xe9a   : > { %s5997_s29 = spop %5996 }
 0xe9b   : > { %v2945_v51 = vstv %s5997_s29 }
 0xe9c   : > { %v2947_v3 = vmul.f32 %v2945_v51, %v2938_v23  ;;  %v2946_v42 = vmul.f32 %v2945_v51, %v2937_v21  ;;  %v2948_v40 = vmul.f32 %v2945_v51, %v2939_v15  ;;  %v2951_v0 = vmul.f32 %v2945_v51, %v2942_v57 }
 0xe9d   : > { %v2953_v46 = vmul.f32 %v2945_v51, %v2944_v20  ;;  %v2949_v30 = vmul.f32 %v2945_v51, %v2940_v2 }
 0xe9e   : > { %v2987_v29 = vmul.f32 %v2960_v33, %v2947_v3  ;;  %v2986_v26 = vmul.f32 %v2956_v14, %v2946_v42  ;;  %v2988_v9 = vmul.f32 %v2964_v60, %v2948_v40  ;;  %v2991_v7 = vmul.f32 %v2976_v17, %v2951_v0 }
 0xe9f   : > { %v2993_v1 = vmul.f32 %v2984_v58, %v2953_v46  ;;  %v2989_v33 = vmul.f32 %v2968_v22, %v2949_v30 }
 0xea0   : > { %v7747_v28 = vadd.f32 %v3000_v59, %v2987_v29  ;;  %v7749_v38 = vadd.f32 %v2996_v39, %v2986_v26  ;;  %v7757_v34 = vadd.f32 %v3004_v56, %v2988_v9  ;;  %v7763_v37 = vadd.f32 %v3016_v5, %v2991_v7  ;;  %v7772_v39 = vpop.permute.xlu1 %3059 }
 0xea1   : > { %v7770_v60 = vadd.f32 %v3024_v48, %v2993_v1  ;;  %v7774_v59 = vadd.f32 %v3008_v32, %v2989_v33  ;;  %v2950_v56 = vmul.f32 %v2945_v51, %v2941_v31  ;;  %v2943_v5 = vsub.f32 %v7659_v41, %v2936_v6 }
 0xea2   : > { %3036 = vrot.lane.b32.xlu0 %v7747_v28, %s6346_s18  ;;  %3034 = vrot.lane.b32.xlu1 %v7749_v38, %s6346_s18 }
 0xea3   : > { %v2990_v22 = vmul.f32 %v2972_v55, %v2950_v56  ;;  %v2952_v55 = vmul.f32 %v2945_v51, %v2943_v5 }
 0xea4   : > { %v3108_v17 = vpop.permute.xlu1 %3107 }
 0xea5   : > { %v7783_v35 = vadd.f32 %v3012_v24, %v2990_v22  ;;  %v2992_v15 = vmul.f32 %v2980_v47, %v2952_v55  ;;  %v3020_v24 = vpop.permute.xlu0 %3019 }
 0xea6   : > { %3156 = vrot.lane.b32.xlu0 %v7747_v28, %s6347_s20  ;;  %3038 = vrot.lane.b32.xlu1 %v7757_v34, %s6346_s18 }
 0xea7   : > { %v7795_v42 = vadd.f32 %v3020_v24, %v2992_v15 }
 0xea8   : > { %v3112_v23 = vpop.permute.xlu1 %3111 }
 0xea9   : > { %v3064_v6 = vpop.permute.xlu0 %3063 }
 0xeaa   : > { %3164 = vrot.lane.b32.xlu0 %v7763_v37, %s6347_s20  ;;  %3154 = vrot.lane.b32.xlu1 %v7749_v38, %s6347_s20 }
 0xeac   : > { %v3116_v21 = vpop.permute.xlu1 %3115 }
 0xead   : > { %v3068_v40 = vpop.permute.xlu0 %3067  ;;  %v3140_v53 = vmul.f32 %v3116_v21, %v7757_v34 }
 0xeae   : > { %3048 = vrot.lane.b32.xlu0 %v7770_v60, %s6346_s18  ;;  %3040 = vrot.lane.b32.xlu1 %v7774_v59, %s6346_s18 }
 0xeb0   : > { %v3184_v3 = vpop.permute.xlu1 %3183 }
 0xeb1   : > { %v7805_v57 = vpop.permute.xlu0 %3079 }
 0xeb2   : > { %3255 = vperm.xlu0 %6167, %v7578_v52   ;;  %3158 = vrot.lane.b32.xlu1 %v7757_v34, %s6347_s20 }
 0xeb4   : > { %v3072_v41 = vpop.permute.xlu1 %3071 }
 0xeb5   : > { %v3120_v26 = vpop.permute.xlu0 %3119 }
 0xeb6   : > { %6169 = vset.pattern.permute.xlu0 %v8773_v45  ;;  %3042 = vrot.lane.b32.xlu1 %v7783_v35, %s6346_s18 }
 0xeb8   : > { %v3188_v51 = vpop.permute.xlu1 %3187 }
 0xeb9   : > { %v7807_v58 = vpop.permute.xlu0 %3123 }
 0xeba   : > { %3160 = vrot.lane.b32.xlu1 %v7774_v59, %s6347_s20 }
 0xebc   : > { %v7803_v14 = vpop.permute.xlu1 %3075 }
 0xebd   : > { %v7811_v2 = vpop.permute.xlu0 %3131 }
 0xebe   : > { %3044 = vrot.lane.b32.xlu1 %v7763_v37, %s6346_s18 }
 0xec0   : > { %v3192_v29 = vpop.permute.xlu1 %3191 }
 0xec1   : > { %v7815_v46 = vpop.permute.xlu0 %3135 }
 0xec2   : > { %3162 = vrot.lane.b32.xlu1 %v7783_v35, %s6347_s20 }
 0xec4   : > { %v3232_v0 = vpop.permute.xlu1 %3231 }
 0xec5   : > { %v3180_v30 = vpop.permute.xlu0 %3179 }
 0xec6   : > { %3046 = vrot.lane.b32.xlu1 %v7795_v42, %s6346_s18  ;;  %s332_s18 = scalar_lea.vmem %s8654_s9, %s5302_s13 }
 0xec8   : > { %v3128_v9 = vpop.permute.xlu1 %3127 }
 0xec9   : > { %v7819_v48 = vpop.permute.xlu0 %3207 }
 0xeca   : > { %3166 = vrot.lane.b32.xlu1 %v7795_v42, %s6347_s20 }
 0xecc   : > { %v7809_v20 = vpop.permute.xlu1 %3195 }
 0xecd   : > { %v3228_v33 = vpop.permute.xlu0 %3227 }
 0xece   : > { %3168 = vrot.lane.b32.xlu1 %v7770_v60, %s6347_s20 }
 0xed0   : > { %v7813_v7 = vpop.permute.xlu1 %3083 }
 0xed1   : > { %v3236_v32 = vpop.permute.xlu0 %3235 }
 0xed4   : > { %v7817_v47 = vpop.permute.xlu1 %3199 }
 0xed5   : > { %v3240_v22 = vpop.permute.xlu0 %3239 }
 0xed8   : > { %v7821_v1 = vpop.permute.xlu1 %3087 }
 0xed9   : > { %v7829_v15 = vpop.permute.xlu0 %3243 }
 0xedc   : > { %v7823_v31 = vpop.permute.xlu1 %3203 }
 0xee0   : > { %v7825_v56 = vpop.permute.xlu1 %3247 }
 0xee4   : > { %v7827_v5 = vpop.permute.xlu1 %3251 }
 0xf14   : > { %v3035_v55 = vpop.permute.xlu1 %3034  ;;  %v3037_v10 = vpop.permute.xlu0 %3036 }
 0xf15   : > { %v3050_v16 = vsel %vm1145_vm11, %v3035_v55, 0.0  ;;  %v3051_v63 = vsel %vm1145_vm11, %v3037_v10, 0.0  ;;  %v3139_v55 = vmul.f32 %v3112_v23, %v7747_v28  ;;  %v3138_v10 = vmul.f32 %v3108_v17, %v7749_v38 }
 0xf16   : > { %v3090_v61 = vmul.f32 %v7772_v39, %v3050_v16  ;;  %v3091_v44 = vmul.f32 %v3064_v6, %v3051_v63  ;;  %v3141_v28 = vmul.f32 %v3120_v26, %v7774_v59  ;;  %v3142_v59 = vmul.f32 %v7807_v58, %v7783_v35 }
 0xf18   : > { %v3039_v24 = vpop.permute.xlu1 %3038  ;;  %v3157_v54 = vpop.permute.xlu0 %3156  ;;  %v3146_v45 = vadd.f32 %v3138_v10, %v3090_v61  ;;  %v3147_v16 = vadd.f32 %v3139_v55, %v3091_v44 }
 0xf19   : > { %v3052_v50 = vsel %vm1145_vm11, %v3039_v24, 0.0  ;;  %v3171_v4 = vsel %vm1268_vm12, %v3157_v54, 0.0 }
 0xf1a   : > { %v3092_v43 = vmul.f32 %v3068_v40, %v3052_v50  ;;  %v3211_v52 = vmul.f32 %v3184_v3, %v3171_v4 }
 0xf1c   : > { %v3155_v11 = vpop.permute.xlu1 %3154  ;;  %v3148_v63 = vadd.f32 %v3140_v53, %v3092_v43  ;;  %v3219_v6 = vadd.f32 %v3211_v52, %v3147_v16  ;;  %v3165_v61 = vpop.permute.xlu0 %3164  ;;  %v3143_v52 = vmul.f32 %v3128_v9, %v7763_v37 }
 0xf1d   : > { %v3170_v25 = vsel %vm1268_vm12, %v3155_v11, 0.0 }
 0xf1e   : > { %v3210_v24 = vmul.f32 %v3180_v30, %v3170_v25 }
 0xf20   : > { %v3041_v18 = vpop.permute.xlu1 %3040  ;;  %v3049_v9 = vpop.permute.xlu0 %3048 }
 0xf21   : > { %v3053_v54 = vsel %vm1145_vm11, %v3041_v18, 0.0  ;;  %v3259_v18 = vadd.f32 %v3232_v0, %v3219_v6 }
 0xf22   : > { %v3093_v39 = vmul.f32 %v3072_v41, %v3053_v54 }
 0xf23   : > { %vm3267_vm13 = vcmp.ge.f32.partialorder %v3259_v18, 0.0  ;;  %v3275_v3 = vmul.f32 0.25, %v3259_v18 }
 0xf24   : > { %v3159_v27 = vpop.permute.xlu1 %3158  ;;  %v3149_v4 = vadd.f32 %v3141_v28, %v3093_v39 }
 0xf25   : > { %v3172_v49 = vsel %vm1268_vm12, %v3159_v27, 0.0  ;;  %v3218_v27 = vadd.f32 %v3210_v24, %v3146_v45  ;;  %v7867_v0 = vsel %vm3267_vm13, %v3259_v18, %v3275_v3 }
 0xf26   : > { %v3212_v11 = vmul.f32 %v3188_v51, %v3172_v49  ;;  %v3307_v16 = vmul.f32 %v7867_v0, %v7867_v0 }
 0xf27   : > { %v3258_v17 = vadd.f32 %v3228_v33, %v3218_v27 }
 0xf28   : > { %v3043_v36 = vpop.permute.xlu1 %3042  ;;  %v3220_v50 = vadd.f32 %v3212_v11, %v3148_v63  ;;  %v3144_v11 = vmul.f32 %v7811_v2, %v7795_v42 }
 0xf29   : > { %v3054_v49 = vsel %vm1145_vm11, %v3043_v36, 0.0  ;;  %v3274_v41 = vmul.f32 0.25, %v3258_v17  ;;  %v3175_v36 = vsel %vm1268_vm12, %v3165_v61, 0.0  ;;  %vm3266_vm14 = vcmp.ge.f32.partialorder %v3258_v17, 0.0 }
 0xf2a   : > { %v3260_v44 = vadd.f32 %v3236_v32, %v3220_v50  ;;  %v3094_v34 = vmul.f32 %v7803_v14, %v3054_v49  ;;  %v3215_v14 = vmul.f32 %v7817_v47, %v3175_v36 }
 0xf2b   : > { %v7869_v58 = vsel %vm3266_vm14, %v3258_v17, %v3274_v41 }
 0xf2c   : > { %v3161_v23 = vpop.permute.xlu1 %3160  ;;  %v3276_v51 = vmul.f32 0.25, %v3260_v44  ;;  %vm3268_vm15 = vcmp.ge.f32.partialorder %v3260_v44, 0.0  ;;  %v3150_v35 = vadd.f32 %v3142_v59, %v3094_v34  ;;  %v3306_v47 = vmul.f32 %v7869_v58, %v7869_v58 }
 0xf2d   : > { %v3173_v25 = vsel %vm1268_vm12, %v3161_v23, 0.0 }
 0xf2e   : > { %v3213_v38 = vmul.f32 %v3192_v29, %v3173_v25  ;;  %v7871_v30 = vsel %vm3268_vm15, %v3260_v44, %v3276_v51  ;;  %v3314_v2 = vadd.f32 %v3307_v16, %v3306_v47  ;;  %v8831_v47 = vld [vmem:[#allocation18_spill] sm:$0xff] }
 0xf2f   : > { %v3308_v63 = vmul.f32 %v7871_v30, %v7871_v30 }
 0xf30   : > { %v3221_v43 = vadd.f32 %v3213_v38, %v3149_v4  ;;  %v3045_v53 = vpop.permute.xlu1 %3044  ;;  %v3145_v38 = vmul.f32 %v7815_v46, %v7770_v60 }
 0xf31   : > { %v3055_v45 = vsel %vm1145_vm11, %v3045_v53, 0.0  ;;  %v3315_v49 = vadd.f32 %v3314_v2, %v3308_v63 }
 0xf32   : > { %v3095_v21 = vmul.f32 %v7805_v57, %v3055_v45  ;;  %v3261_v40 = vadd.f32 %v3240_v22, %v3221_v43 }
 0xf34   : > { %v3151_v29 = vadd.f32 %v3143_v52, %v3095_v21  ;;  %v3163_v26 = vpop.permute.xlu1 %3162  ;;  %v3277_v33 = vmul.f32 0.25, %v3261_v40  ;;  %vm3269_vm0 = vcmp.ge.f32.partialorder %v3261_v40, 0.0  ;;  %v3256_v21 = vpop.permute.xlu0 %3255 }
 0xf35   : > { %v3174_v37 = vsel %vm1268_vm12, %v3163_v26, 0.0 }
 0xf36   : > { %v3214_v57 = vmul.f32 %v7809_v20, %v3174_v37  ;;  %v3223_v32 = vadd.f32 %v3215_v14, %v3151_v29  ;;  %v3057_v20 = vsel %vm1145_vm11, %v3049_v9, 0.0  ;;  %v7887_v39 = vsel %vm3269_vm0, %v3261_v40, %v3277_v33 }
 0xf37   : > { %v8824_v33 = vmov 7  }
 0xf38   : > { %v3222_v22 = vadd.f32 %v3214_v57, %v3150_v35  ;;  %v3047_v55 = vpop.permute.xlu1 %3046  ;;  %v3263_v6 = vadd.f32 %v7825_v56, %v3223_v32  ;;  %v3309_v56 = vmul.f32 %v7887_v39, %v7887_v39  ;;  %v8825_v32 = vld [vmem:[#allocation12_spill] sm:$0xff] }
 0xf39   : > { %v3056_v10 = vsel %vm1145_vm11, %v3047_v55, 0.0  ;;  %v8827_v55 = vld [vmem:[#allocation10_spill] sm:$0xff] }
 0xf3a   : > { %v3262_v24 = vadd.f32 %v7829_v15, %v3222_v22  ;;  %v3096_v54 = vmul.f32 %v7813_v7, %v3056_v10  ;;  %v3290_v15 = vadd.f32 %v7867_v0, %v7869_v58  ;;  %v3097_v7 = vmul.f32 %v7821_v1, %v3057_v20  ;;  %v8826_v22 = vld [vmem:[#allocation11_spill] sm:$0xff] }
 0xf3b   : > { %v3279_v18 = vmul.f32 0.25, %v3263_v6  ;;  %vm3271_vm11 = vcmp.ge.f32.partialorder %v3263_v6, 0.0  ;;  %v3316_v46 = vadd.f32 %v3315_v49, %v3309_v56  ;;  %v8830_v10 = vmov 0  }
 0xf3c   : > { %vm3270_vm5 = vcmp.ge.f32.partialorder %v3262_v24, 0.0  ;;  %v3278_v27 = vmul.f32 0.25, %v3262_v24  ;;  %v3167_v28 = vpop.permute.xlu1 %3166  ;;  %v3152_v23 = vadd.f32 %v3144_v11, %v3096_v54  ;;  %v3291_v4 = vadd.f32 %v3290_v15, %v7871_v30 }
 0xf3d   : > { %v3176_v42 = vsel %vm1268_vm12, %v3167_v28, 0.0  ;;  %v3153_v43 = vadd.f32 %v3145_v38, %v3097_v7  ;;  %v7911_v59 = vsel %vm3271_vm11, %v3263_v6, %v3279_v18 }
 0xf3e   : > { %v7895_v50 = vsel %vm3270_vm5, %v3262_v24, %v3278_v27  ;;  %v3216_v25 = vmul.f32 %v7823_v31, %v3176_v42  ;;  %v3292_v44 = vadd.f32 %v3291_v4, %v7887_v39 }
 0xf3f   : > { %v3310_v31 = vmul.f32 %v7895_v50, %v7895_v50 }
 0xf40   : > { %v3224_v17 = vadd.f32 %v3216_v25, %v3152_v23  ;;  %v3169_v1 = vpop.permute.xlu1 %3168  ;;  %v3293_v60 = vadd.f32 %v3292_v44, %v7895_v50  ;;  %v5212_v23 = vld [vmem:[%s8651_s6 + $0x80] sm:$0xff] }
 0xf41   : > { %v3177_v61 = vsel %vm1268_vm12, %v3169_v1, 0.0  ;;  %v3317_v3 = vadd.f32 %v3316_v46, %v3310_v31  ;;  %5648 = vmatprep.mubr.msk.f32.mxu1 %vm668_vm1, %v5212_v23  ;;  %v5216_v23 = vld [vmem:[%s8651_s6 + $0xa0] sm:$0xff] }
 0xf42   : > { %v3264_v53 = vadd.f32 %v7827_v5, %v3224_v17  ;;  %v3217_v45 = vmul.f32 %v7819_v48, %v3177_v61  ;;  %v3294_v51 = vadd.f32 %v3293_v60, %v7911_v59  ;;  %v3311_v5 = vmul.f32 %v7911_v59, %v7911_v59 }
 0xf44   : > { %v3280_v52 = vmul.f32 0.25, %v3264_v53  ;;  %v3225_v34 = vadd.f32 %v3217_v45, %v3153_v43  ;;  %vm3272_vm6 = vcmp.ge.f32.partialorder %v3264_v53, 0.0  ;;  %v3318_v26 = vadd.f32 %v3317_v3, %v3311_v5 }
 0xf46   : > { %v3265_v41 = vadd.f32 %v3256_v21, %v3225_v34  ;;  %v7913_v36 = vsel %vm3272_vm6, %v3264_v53, %v3280_v52 }
 0xf47   : > { %v3312_v48 = vmul.f32 %v7913_v36, %v7913_v36  ;;  %v3295_v29 = vadd.f32 %v3294_v51, %v7913_v36 }
 0xf48   : > { %vm3273_vm12 = vcmp.ge.f32.partialorder %v3265_v41, 0.0  ;;  %v3281_v40 = vmul.f32 0.25, %v3265_v41 }
 0xf49   : > { %v3319_v57 = vadd.f32 %v3318_v26, %v3312_v48 }
 0xf4a   : > { %v7921_v37 = vsel %vm3273_vm12, %v3265_v41, %v3281_v40 }
 0xf4b   : > { %v3296_v14 = vadd.f32 %v3295_v29, %v7921_v37  ;;  %v3313_v35 = vmul.f32 %v7921_v37, %v7921_v37 }
 0xf4d   : > { %3297 = vadd.xlane.f32.xlu1 %v3296_v14  ;;  %v3320_v9 = vadd.f32 %v3319_v57, %v3313_v35 }
 0xf4f   : > { %3321 = vadd.xlane.f32.xlu0 %v3320_v9 }
 0xf5e   : > { %3366 = vperm.xlu1 %6170, %v7542_v19  }
 0xf62   : > { %6171 = vset.pattern.permute.xlu1 %v8797_v13 }
 0xf63   : > { %3402 = vperm.xlu1 %6171, %v7536_v62  }
 0xf65   : > { %3362 = vperm.xlu0 %6169, %v7536_v62   ;;  %v8828_v62 = vmov 9  }
 0xf67   : > { %3406 = vperm.xlu1 %6171, %v7542_v19   ;;  %v8829_v19 = vld [vmem:[#allocation17_spill] sm:$0xff] }
 0xf69   : > { %6175 = vset.pattern.permute.xlu0 %v8797_v13 }
 0xf6a   : > { %3418 = vperm.xlu0 %6175, %v7553_v8  }
 0xf6b   : > { %6172 = vset.pattern.permute.xlu1 %v8824_v33 }
 0xf6c   : > { %3370 = vperm.xlu1 %6172, %v8825_v32  }
 0xf6e   : > { %6176 = vset.pattern.permute.xlu0 %v8824_v33 }
 0xf6f   : > { %3378 = vperm.xlu0 %6176, %v7553_v8  }
 0xf70   : > { %3374 = vperm.xlu1 %6172, %v8826_v22  }
 0xf73   : > { %3390 = vperm.xlu0 %6176, %v8827_v55  }
 0xf74   : > { %6173 = vset.pattern.permute.xlu1 %v8797_v13 }
 0xf75   : > { %3410 = vperm.xlu1 %6173, %v8825_v32  }
 0xf77   : > { %6180 = vset.pattern.permute.xlu0 %v8828_v62 }
 0xf78   : > { %3467 = vperm.xlu0 %6180, %v7553_v8  }
 0xf79   : > { %3414 = vperm.xlu1 %6173, %v8826_v22  }
 0xf7c   : > { %3479 = vperm.xlu0 %6180, %v8827_v55  }
 0xf7d   : > { %6174 = vset.pattern.permute.xlu1 %v8824_v33 }
 0xf7e   : > { %3382 = vperm.xlu1 %6174, %v8829_v19  }
 0xf80   : > { %6183 = vset.pattern.permute.xlu0 %v8830_v10 }
 0xf82   : > { %6177 = vset.pattern.permute.xlu1 %v8797_v13 }
 0xf83   : > { %3422 = vperm.xlu1 %6177, %v8829_v19  }
 0xf87   : > { %6178 = vset.pattern.permute.xlu1 %v8824_v33 }
 0xf88   : > { %3386 = vperm.xlu1 %6178, %v8831_v47  }
 0xf8c   : > { %6179 = vset.pattern.permute.xlu1 %v8797_v13 }
 0xf8d   : > { %3426 = vperm.xlu1 %6179, %v8831_v47  }
 0xf91   : > { %3430 = vperm.xlu1 %6179, %v8827_v55  }
 0xf95   : > { %6181 = vset.pattern.permute.xlu1 %v8828_v62 }
 0xf96   : > { %3471 = vperm.xlu1 %6181, %v8829_v19  }
 0xf9a   : > { %3475 = vperm.xlu1 %6181, %v8831_v47  }
 0xf9e   : > { %6182 = vset.pattern.permute.xlu1 %v8830_v10 }
 0xfda   : > { %v3298_v8 = vpop.xlane.xlu1 %3297 }
 0xfdb   : > { %v3299_v20 = vrot.slane %v3298_v8, 4 }
 0xfdc   : > { %v3322_v24 = vpop.xlane.xlu0 %3321 }
 0xfdd   : > { %v3300_v54 = vadd.f32 %v3299_v20, %v3298_v8  ;;  %v3323_v11 = vrot.slane %v3322_v24, 4 }
 0xfde   : > { %v3367_v4 = vpop.permute.xlu1 %3366 }
 0xfdf   : > { %v3324_v16 = vadd.f32 %v3323_v11, %v3322_v24  ;;  %v3301_v63 = vrot.slane %v3300_v54, 2 }
 0xfe1   : > { %v3302_v6 = vadd.f32 %v3301_v63, %v3300_v54  ;;  %v3325_v27 = vrot.slane %v3324_v16, 2 }
 0xfe2   : > { %v3403_v38 = vpop.permute.xlu1 %3402 }
 0xfe3   : > { %v3303_v28 = vrot.slane %v3302_v6, 1  ;;  %v3326_v15 = vadd.f32 %v3325_v27, %v3324_v16 }
 0xfe4   : > { %v3363_v31 = vpop.permute.xlu0 %3362 }
 0xfe5   : > { %v3304_v7 = vadd.f32 %v3303_v28, %v3302_v6  ;;  %v3327_v42 = vrot.slane %v3326_v15, 1 }
 0xfe6   : > { %v3407_v18 = vpop.permute.xlu1 %3406 }
 0xfe7   : > { %5998 = vpush %v3304_v7  ;;  %v3328_v2 = vadd.f32 %v3327_v42, %v3326_v15  ;;  %v5213_v7 = vld [vmem:[%s8651_s6 + $0x88] sm:$0xff]  ;;  %v5214_v42 = vld [vmem:[%s8651_s6 + $0x90] sm:$0xff] }
 0xfe9   : > { %6000 = vpush %v3328_v2  ;;  %v3419_v53 = vpop.permute.xlu0 %3418  ;;  %v5215_v2 = vld [vmem:[%s8651_s6 + $0x98] sm:$0xff] }
 0xfeb   : > { %v3371_v17 = vpop.permute.xlu1 %3370 }
 0xfee   : > { %v3379_v21 = vpop.permute.xlu0 %3378 }
 0xfef   : > { %v3375_v1 = vpop.permute.xlu1 %3374 }
 0xff4   : > { %v3411_v49 = vpop.permute.xlu1 %3410 }
 0xff8   : > { %v3415_v61 = vpop.permute.xlu1 %3414 }
 0xffd   : > { %v3383_v44 = vpop.permute.xlu1 %3382 }
0x1002   : > { %v3423_v43 = vpop.permute.xlu1 %3422 }
0x1007   : > { %v3387_v60 = vpop.permute.xlu1 %3386 }
0x100c   : > { %v3427_v32 = vpop.permute.xlu1 %3426 }
0x1010   : > { %v3431_v63 = vpop.permute.xlu1 %3430 }
0x1018   : > { %s5999_s12 = spop %5998 }
0x1019   : > { %s3332_s14 = smul.f32 0.00012207031, %s5999_s12 }
0x101a   : > { %s6001_s15 = spop %6000 }
0x101b   : > { %s3336_s16 = smul.f32 %s3332_s14, %s3332_s14  ;;  %v3343_v45 = vstv %s3332_s14 }
0x101c   : > { %s3335_s17 = smul.f32 0.00012207031, %s6001_s15  ;;  %v3344_v46 = vsub.f32 %v7869_v58, %v3343_v45  ;;  %v3345_v52 = vsub.f32 %v7867_v0, %v3343_v45  ;;  %v3346_v34 = vsub.f32 %v7871_v30, %v3343_v45  ;;  %v3347_v41 = vsub.f32 %v7887_v39, %v3343_v45 }
0x101d   : > { %v3348_v51 = vsub.f32 %v7895_v50, %v3343_v45  ;;  %v3349_v5 = vsub.f32 %v7911_v59, %v3343_v45  ;;  %v3350_v48 = vsub.f32 %v7913_v36, %v3343_v45  ;;  %v3351_v40 = vsub.f32 %v7921_v37, %v3343_v45  ;;  %v3391_v36 = vpop.permute.xlu0 %3390 }
0x101e   : > { %s3337_s21 = ssub.f32 %s3335_s17, %s3336_s16 }
0x1020   : > { %s3338_s22 = smax.f32 %s6341_s19, %s3337_s21 }
0x1021   : > { %s3339_s23 = sadd.f32 1e-08, %s3338_s22  ;;  %v3468_v45 = vpop.permute.xlu0 %3467 }
0x1023   : > { %v3340_v25 = vstv %s3339_s23 }
0x1024   : > { %6240 = vrsqrt.f32 %v3340_v25  ;;  %v5217_v25 = vld [vmem:[%s8651_s6 + $0xa8] sm:$0xff] }
0x102e   : > { %v6241_v56 = vpop.eup %6240 }
0x102f   : > { %6002 = vpush %v6241_v56  ;;  %v5219_v56 = vld [vmem:[%s8651_s6 + $0xb8] sm:$0xff] }
0x1060   : > { %s6003_s24 = spop %6002 }
0x1061   : > { %v3352_v3 = vstv %s6003_s24 }
0x1062   : > { %v3353_v29 = vmul.f32 %v3352_v3, %v3344_v46  ;;  %v3354_v26 = vmul.f32 %v3352_v3, %v3345_v52  ;;  %v3355_v14 = vmul.f32 %v3352_v3, %v3346_v34  ;;  %v3356_v58 = vmul.f32 %v3352_v3, %v3347_v41 }
0x1063   : > { %v3357_v35 = vmul.f32 %v3352_v3, %v3348_v51  ;;  %v3358_v0 = vmul.f32 %v3352_v3, %v3349_v5  ;;  %v3359_v9 = vmul.f32 %v3352_v3, %v3350_v48  ;;  %v3360_v22 = vmul.f32 %v3352_v3, %v3351_v40  ;;  %v8838_v3 = vld [vmem:[#allocation13_spill] sm:$0xff]  ;;  %v3480_v51 = vpop.permute.xlu0 %3479  ;;  %v8839_v5 = vld [vmem:[#allocation14_spill] sm:$0xff] }
0x1064   : > { %v3393_v57 = vmul.f32 %v3363_v31, %v3353_v29  ;;  %v3394_v30 = vmul.f32 %v3367_v4, %v3354_v26  ;;  %v3395_v39 = vmul.f32 %v3371_v17, %v3355_v14  ;;  %v3396_v55 = vmul.f32 %v3375_v1, %v3356_v58  ;;  %v5218_v4 = vld [vmem:[%s8651_s6 + $0xb0] sm:$0xff]  ;;  %v8013_v17 = vld [vmem:[%s8650_s5 + $0xc8] sm:$0xff] }
0x1065   : > { %v3397_v59 = vmul.f32 %v3379_v21, %v3357_v35  ;;  %v3398_v10 = vmul.f32 %v3383_v44, %v3358_v0  ;;  %v3399_v20 = vmul.f32 %v3387_v60, %v3359_v9  ;;  %v3400_v24 = vmul.f32 %v3391_v36, %v3360_v22  ;;  %v8018_v1 = vld [vmem:[%s8650_s5 + $0xd0] sm:$0xff]  ;;  %3644 = vperm.xlu0 %6183, %v8013_v17   ;;  %v8042_v31 = vld [vmem:[%s8650_s5 + $0xe8] sm:$0xff]  ;;  %v3472_v60 = vpop.permute.xlu1 %3471 }
0x1066   : > { %v3433_v50 = vadd.f32 %v3403_v38, %v3393_v57  ;;  %v3434_v19 = vadd.f32 %v3407_v18, %v3394_v30  ;;  %v3435_v47 = vadd.f32 %v3411_v49, %v3395_v39  ;;  %v3436_v37 = vadd.f32 %v3415_v61, %v3396_v55  ;;  %v5236_v38 = vld [vmem:[%s8649_s4 + $0xc0] sm:$0xff]  ;;  %8832 = vst [vmem:[#allocation12_spill] sm:$0xff] %v8018_v1  ;;  %v8030_v61 = vld [vmem:[%s8650_s5 + $0xd8] sm:$0xff]  ;;  %v8036_v44 = vld [vmem:[%s8650_s5 + $0xf0] sm:$0xff] }
0x1067   : > { %v3437_v11 = vadd.f32 %v3419_v53, %v3397_v59  ;;  %v3438_v16 = vadd.f32 %v3423_v43, %v3398_v10  ;;  %v3439_v6 = vadd.f32 %v3427_v32, %v3399_v20  ;;  %v3440_v27 = vadd.f32 %v3431_v63, %v3400_v24  ;;  %5668 = vmatprep.mubr.msk.f32.mxu0 %vm824_vm2, %v5236_v38  ;;  %v8007_v18 = vld [vmem:[%s8650_s5 + $0xc0] sm:$0xff]  ;;  %v8049_v43 = vld [vmem:[%s8650_s5 + $0xf8] sm:$0xff]  ;;  %v8840_v0 = vld [vmem:[#allocation15_spill] sm:$0xff] }
0x1068   : > { %v5854_v8 = vpack.c.bf16 %v3434_v19, %v3433_v50  ;;  %v5858_v54 = vpack.c.bf16 %v3436_v37, %v3435_v47  ;;  %3639 = vperm.xlu1 %6182, %v8007_v18   ;;  %v8024_v49 = vld [vmem:[%s8650_s5 + $0xe0] sm:$0xff]  ;;  %8833 = vst [vmem:[#allocation11_spill] sm:$0xff] %v8030_v61  ;;  %8834 = vst [vmem:[#allocation10_spill] sm:$0xff] %v8036_v44  ;;  %v8837_v53 = vmov 1   ;;  %v8841_v30 = vld [vmem:[#allocation16_spill] sm:$0xff] }
0x1069   : > { %v5862_v28 = vpack.c.bf16 %v3438_v16, %v3437_v11  ;;  %v5866_v15 = vpack.c.bf16 %v3440_v27, %v3439_v6  ;;  %3659 = vperm.xlu0 %6183, %v8024_v49   ;;  %8835 = vst [vmem:[#allocation17_spill] sm:$0xff] %v8042_v31  ;;  %8836 = vst [vmem:[#allocation18_spill] sm:$0xff] %v8049_v43  ;;  %v3476_v29 = vpop.permute.xlu1 %3475  ;;  %v5237_v22 = vld [vmem:[%s8649_s4 + $0xc8] sm:$0xff]  ;;  %v5238_v39 = vld [vmem:[%s8649_s4 + $0xd0] sm:$0xff] }
0x106a   : > { %5855 = vmatprep.subr.bf16.mxu1 %v5854_v8  ;;  %v5239_v55 = vld [vmem:[%s8649_s4 + $0xd8] sm:$0xff]  ;;  %v5240_v50 = vld [vmem:[%s8649_s4 + $0xe0] sm:$0xff]  ;;  %v5241_v19 = vld [vmem:[%s8649_s4 + $0xe8] sm:$0xff] }
0x106b   : > { %5857 = vmatpush3.bf16.msra.mxu1 %v5854_v8  ;;  %v5242_v59 = vld [vmem:[%s8649_s4 + $0xf0] sm:$0xff]  ;;  %v5243_v10 = vld [vmem:[%s8649_s4 + $0xf8] sm:$0xff] }
0x106c   : > { %5859 = vmatprep.subr.bf16.mxu1 %v5858_v54  ;;  %3649 = vperm.xlu1 %6182, %v8018_v1  }
0x106d   : > { %3669 = vperm.xlu0 %6183, %v8036_v44  }
0x106f   : > { %5861 = vmatpush3.bf16.msra.mxu1 %v5858_v54 }
0x1070   : > { %5863 = vmatprep.subr.bf16.mxu1 %v5862_v28  ;;  %3654 = vperm.xlu1 %6182, %v8030_v61  }
0x1071   : > { %6184 = vset.pattern.permute.xlu0 %v8837_v53 }
0x1073   : > { %5865 = vmatpush3.bf16.msra.mxu1 %v5862_v28 }
0x1074   : > { %5867 = vmatprep.subr.bf16.mxu1 %v5866_v15  ;;  %3664 = vperm.xlu1 %6182, %v8042_v31  }
0x1077   : > { %5869 = vmatpush3.bf16.msra.mxu1 %v5866_v15 }
0x1078   : > { %3674 = vperm.xlu1 %6182, %v8049_v43  }
0x107a   : > { %5649 = vmatmul.mubr.msk.f32.vlgmr.msra.gmra.mrb[4].mxu1 %vm668_vm1, %v5213_v7 }
0x107b   : > { %5651 = vmatprep.mubr.msk.f32.mxu1 %vm668_vm1, %v5214_v42 }
0x107c   : > { %6185 = vset.pattern.permute.xlu1 %v8837_v53 }
0x107e   : > { %5652 = vmatmul.mubr.msk.f32.gmra.mrb[6].mxu1 %vm668_vm1, %v5215_v2 }
0x107f   : > { %5654 = vmatprep.mubr.msk.f32.mxu1 %vm668_vm1, %v5216_v23 }
0x1082   : > { %5655 = vmatmul.mubr.msk.f32.gmra.mrb[16].mxu1 %vm668_vm1, %v5217_v25 }
0x1083   : > { %5657 = vmatprep.mubr.msk.f32.mxu1 %vm668_vm1, %v5218_v4 }
0x1086   : > { %5658 = vmatmul.mubr.msk.f32.gmra.mrb[18].mxu1 %vm668_vm1, %v5219_v56 }
0x10e4   : > { %v3645_v37 = vpop.permute.xlu0 %3644 }
0x10e7   : > { %v3640_v36 = vpop.permute.xlu1 %3639 }
0x10e8   : > { %v3660_v25 = vpop.permute.xlu0 %3659 }
0x10eb   : > { %v3650_v47 = vpop.permute.xlu1 %3649 }
0x10ef   : > { %v3655_v8 = vpop.permute.xlu1 %3654 }
0x10f3   : > { %v3665_v7 = vpop.permute.xlu1 %3664 }
0x1155   : > { %v5656_v46 = vpop.f32.mrb[16].mxu1 }
0x1156   : > { %v3598_v52 = vadd.f32 %v5656_v46, %v3472_v60  ;;  %v3592_v34 = vpop.f32.mrb[17].mxu1 }
0x1157   : > { %v3593_v21 = vadd.f32 %v3592_v34, %v3468_v45 }
0x1158   : > { %v3616_v41 = vadd.f32 %v3598_v52, %v8838_v3 }
0x1159   : > { %v3615_v48 = vadd.f32 %v3593_v21, %v8839_v5  ;;  %v5659_v40 = vpop.f32.mrb[18].mxu1 }
0x115a   : > { %v3608_v26 = vadd.f32 %v5659_v40, %v3480_v51  ;;  %v3602_v14 = vpop.f32.mrb[19].mxu1  ;;  %v3675_v40 = vpop.permute.xlu1 %3674 }
0x115b   : > { %v3603_v58 = vadd.f32 %v3602_v14, %v3476_v29  ;;  %v5870_v35 = vpack.c.bf16 %v3616_v41, %v3615_v48  ;;  %v3670_v14 = vpop.permute.xlu0 %3669 }
0x115c   : > { %v3618_v57 = vadd.f32 %v3608_v26, %v8840_v0 }
0x115d   : > { %v3617_v9 = vadd.f32 %v3603_v58, %v8841_v30  ;;  %5871 = vmatprep.subr.bf16.mxu0 %v5870_v35 }
0x115e   : > { %5873 = vmatpush3.bf16.msra.mxu0 %v5870_v35 }
0x115f   : > { %v5874_v32 = vpack.c.bf16 %v3618_v57, %v3617_v9 }
0x1161   : > { %5875 = vmatprep.subr.bf16.mxu0 %v5874_v32 }
0x1162   : > { %5877 = vmatpush3.bf16.msra.mxu0 %v5874_v32 }
0x1165   : > { %5669 = vmatmul.mubr.msk.f32.vlgmr.msra.gmra.mrb[32].mxu0 %vm824_vm2, %v5237_v22 }
0x1166   : > { %5671 = vmatprep.mubr.msk.f32.mxu0 %vm824_vm2, %v5238_v39 }
0x1169   : > { %5672 = vmatmul.mubr.msk.f32.gmra.mrb[34].mxu0 %vm824_vm2, %v5239_v55 }
0x116a   : > { %5674 = vmatprep.mubr.msk.f32.mxu0 %vm824_vm2, %v5240_v50 }
0x116d   : > { %5675 = vmatmul.mubr.msk.f32.gmra.mrb[36].mxu0 %vm824_vm2, %v5241_v19 }
0x116e   : > { %5677 = vmatprep.mubr.msk.f32.mxu0 %vm824_vm2, %v5242_v59 }
0x1171   : > { %5678 = vmatmul.mubr.msk.f32.gmra.mrb[38].mxu0 %vm824_vm2, %v5243_v10 }
0x1238   : > { %v5670_v20 = vpop.f32.mrb[32].mxu0 }
0x1239   : > { %v3773_v24 = vadd.f32 %v5670_v20, %v3645_v37  ;;  %v3767_v54 = vpop.f32.mrb[33].mxu0 }
0x123a   : > { %v3768_v11 = vadd.f32 %v3767_v54, %v3640_v36 }
0x123b   : > { %vm3807_vm7 = vcmp.ge.f32.partialorder %v3773_v24, 0.0  ;;  %v3815_v16 = vmul.f32 0.25, %v3773_v24 }
0x123c   : > { %vm3806_vm8 = vcmp.ge.f32.partialorder %v3768_v11, 0.0  ;;  %v3814_v63 = vmul.f32 0.25, %v3768_v11  ;;  %v5673_v6 = vpop.f32.mrb[34].mxu0 }
0x123d   : > { %v8086_v27 = vsel %vm3807_vm7, %v3773_v24, %v3815_v16  ;;  %v3783_v28 = vadd.f32 %v5673_v6, %v3655_v8  ;;  %v3777_v15 = vpop.f32.mrb[35].mxu0 }
0x123e   : > { %v3847_v42 = vmul.f32 %v8086_v27, %v8086_v27  ;;  %v8090_v2 = vsel %vm3806_vm8, %v3768_v11, %v3814_v63  ;;  %v3778_v23 = vadd.f32 %v3777_v15, %v3650_v47  ;;  %v8843_v15 = vmov 3  }
0x123f   : > { %v3846_v4 = vmul.f32 %v8090_v2, %v8090_v2  ;;  %vm3809_vm9 = vcmp.ge.f32.partialorder %v3783_v28, 0.0  ;;  %v3817_v56 = vmul.f32 0.25, %v3783_v28  ;;  %v3830_v60 = vadd.f32 %v8086_v27, %v8090_v2 }
0x1240   : > { %vm3808_vm10 = vcmp.ge.f32.partialorder %v3778_v23, 0.0  ;;  %v3816_v38 = vmul.f32 0.25, %v3778_v23  ;;  %v5676_v45 = vpop.f32.mrb[36].mxu0 }
0x1241   : > { %v3793_v46 = vadd.f32 %v5676_v45, %v3665_v7  ;;  %v3787_v52 = vpop.f32.mrb[37].mxu0  ;;  %v3854_v34 = vadd.f32 %v3847_v42, %v3846_v4  ;;  %v8096_v21 = vsel %vm3809_vm9, %v3783_v28, %v3817_v56  ;;  %v8842_v28 = vmov 2  }
0x1242   : > { %v8098_v3 = vsel %vm3808_vm10, %v3778_v23, %v3816_v38  ;;  %v3788_v41 = vadd.f32 %v3787_v52, %v3660_v25  ;;  %v3849_v58 = vmul.f32 %v8096_v21, %v8096_v21  ;;  %v8844_v7 = vmov 4  }
0x1243   : > { %v3831_v51 = vadd.f32 %v3830_v60, %v8098_v3  ;;  %v3848_v5 = vmul.f32 %v8098_v3, %v8098_v3  ;;  %vm3811_vm13 = vcmp.ge.f32.partialorder %v3793_v46, 0.0  ;;  %v3819_v48 = vmul.f32 0.25, %v3793_v46 }
0x1244   : > { %vm3810_vm14 = vcmp.ge.f32.partialorder %v3788_v41, 0.0  ;;  %v3818_v29 = vmul.f32 0.25, %v3788_v41  ;;  %v5679_v26 = vpop.f32.mrb[38].mxu0  ;;  %v8845_v42 = vmov 5   ;;  %v8846_v23 = vmov 6  }
0x1245   : > { %v3855_v35 = vadd.f32 %v3854_v34, %v3848_v5  ;;  %v3832_v0 = vadd.f32 %v3831_v51, %v8096_v21  ;;  %v3803_v57 = vadd.f32 %v5679_v26, %v3675_v40  ;;  %v3797_v30 = vpop.f32.mrb[39].mxu0  ;;  %v8106_v9 = vsel %vm3811_vm13, %v3793_v46, %v3819_v48 }
0x1246   : > { %v8108_v32 = vsel %vm3810_vm14, %v3788_v41, %v3818_v29  ;;  %v3798_v22 = vadd.f32 %v3797_v30, %v3670_v14  ;;  %v3851_v10 = vmul.f32 %v8106_v9, %v8106_v9 }
0x1247   : > { %v3833_v39 = vadd.f32 %v3832_v0, %v8108_v32  ;;  %v3850_v55 = vmul.f32 %v8108_v32, %v8108_v32  ;;  %v3856_v50 = vadd.f32 %v3855_v35, %v3849_v58  ;;  %vm3813_vm15 = vcmp.ge.f32.partialorder %v3803_v57, 0.0 }
0x1248   : > { %v3821_v19 = vmul.f32 0.25, %v3803_v57  ;;  %vm3812_vm0 = vcmp.ge.f32.partialorder %v3798_v22, 0.0  ;;  %v3820_v59 = vmul.f32 0.25, %v3798_v22 }
0x1249   : > { %v3857_v36 = vadd.f32 %v3856_v50, %v3850_v55  ;;  %v3834_v47 = vadd.f32 %v3833_v39, %v8106_v9 }
0x124a   : > { %v8116_v37 = vsel %vm3813_vm15, %v3803_v57, %v3821_v19  ;;  %v8118_v8 = vsel %vm3812_vm0, %v3798_v22, %v3820_v59 }
0x124b   : > { %v3852_v20 = vmul.f32 %v8118_v8, %v8118_v8  ;;  %v3835_v24 = vadd.f32 %v3834_v47, %v8118_v8  ;;  %v3858_v54 = vadd.f32 %v3857_v36, %v3851_v10  ;;  %v3853_v16 = vmul.f32 %v8116_v37, %v8116_v37 }
0x124d   : > { %v3836_v11 = vadd.f32 %v3835_v24, %v8116_v37  ;;  %v3859_v63 = vadd.f32 %v3858_v54, %v3852_v20 }
0x124f   : > { %3837 = vadd.xlane.f32.xlu0 %v3836_v11  ;;  %v3860_v6 = vadd.f32 %v3859_v63, %v3853_v16 }
0x1251   : > { %3861 = vadd.xlane.f32.xlu1 %v3860_v6 }
0x1262   : > { %3906 = vperm.xlu1 %6185, %v8013_v17  }
0x1265   : > { %3902 = vperm.xlu0 %6184, %v8007_v18  }
0x1266   : > { %3910 = vperm.xlu1 %6185, %v8018_v1  }
0x1269   : > { %3926 = vperm.xlu0 %6184, %v8036_v44  }
0x126a   : > { %6186 = vset.pattern.permute.xlu1 %v8842_v28 }
0x126b   : > { %3942 = vperm.xlu1 %6186, %v8007_v18  }
0x126d   : > { %6191 = vset.pattern.permute.xlu0 %v8842_v28 }
0x126e   : > { %3954 = vperm.xlu0 %6191, %v8030_v61  }
0x126f   : > { %3946 = vperm.xlu1 %6186, %v8013_v17  }
0x1272   : > { %3966 = vperm.xlu0 %6191, %v8036_v44  }
0x1273   : > { %6187 = vset.pattern.permute.xlu1 %v8837_v53 }
0x1274   : > { %3914 = vperm.xlu1 %6187, %v8030_v61  }
0x1276   : > { %6195 = vset.pattern.permute.xlu0 %v8843_v15 }
0x1277   : > { %4010 = vperm.xlu0 %6195, %v8013_v17  }
0x1278   : > { %6188 = vset.pattern.permute.xlu1 %v8842_v28 }
0x1279   : > { %3950 = vperm.xlu1 %6188, %v8018_v1  }
0x127b   : > { %4014 = vperm.xlu0 %6195, %v8018_v1  }
0x127d   : > { %6189 = vset.pattern.permute.xlu1 %v8837_v53 }
0x127e   : > { %3918 = vperm.xlu1 %6189, %v8024_v49  }
0x127f   : > { %4026 = vperm.xlu0 %6195, %v8042_v31  }
0x1282   : > { %3922 = vperm.xlu1 %6189, %v8042_v31  }
0x1283   : > { %6203 = vset.pattern.permute.xlu0 %v8844_v7 }
0x1284   : > { %4066 = vperm.xlu0 %6203, %v8030_v61  }
0x1286   : > { %6190 = vset.pattern.permute.xlu1 %v8842_v28 }
0x1287   : > { %3958 = vperm.xlu1 %6190, %v8024_v49  }
0x1288   : > { %4070 = vperm.xlu0 %6203, %v8024_v49  }
0x128b   : > { %3962 = vperm.xlu1 %6190, %v8042_v31  }
0x128c   : > { %4078 = vperm.xlu0 %6203, %v8036_v44  }
0x128f   : > { %6192 = vset.pattern.permute.xlu1 %v8837_v53 }
0x1290   : > { %3930 = vperm.xlu1 %6192, %v8049_v43   ;;  %4082 = vperm.xlu0 %6203, %v8049_v43  }
0x1294   : > { %6193 = vset.pattern.permute.xlu1 %v8842_v28  ;;  %6209 = vset.pattern.permute.xlu0 %v8845_v42 }
0x1295   : > { %3970 = vperm.xlu1 %6193, %v8049_v43   ;;  %4126 = vperm.xlu0 %6209, %v8007_v18  }
0x1299   : > { %6194 = vset.pattern.permute.xlu1 %v8843_v15  ;;  %4154 = vperm.xlu0 %6209, %v8049_v43  }
0x129a   : > { %4006 = vperm.xlu1 %6194, %v8007_v18  }
0x129d   : > { %6211 = vset.pattern.permute.xlu0 %v8846_v23 }
0x129e   : > { %6196 = vset.pattern.permute.xlu1 %v8844_v7  ;;  %4174 = vperm.xlu0 %6211, %v8007_v18  }
0x129f   : > { %4054 = vperm.xlu1 %6196, %v8007_v18  }
0x12a2   : > { %4182 = vperm.xlu0 %6211, %v8018_v1  }
0x12a3   : > { %4058 = vperm.xlu1 %6196, %v8013_v17  }
0x12a6   : > { %4186 = vperm.xlu0 %6211, %v8030_v61  }
0x12a7   : > { %4062 = vperm.xlu1 %6196, %v8018_v1  }
0x12aa   : > { %4190 = vperm.xlu0 %6211, %v8024_v49  }
0x12ab   : > { %6197 = vset.pattern.permute.xlu1 %v8845_v42 }
0x12ac   : > { %4130 = vperm.xlu1 %6197, %v8013_v17  }
0x12b0   : > { %6198 = vset.pattern.permute.xlu1 %v8843_v15 }
0x12b1   : > { %4018 = vperm.xlu1 %6198, %v8030_v61  }
0x12b5   : > { %6199 = vset.pattern.permute.xlu1 %v8845_v42 }
0x12b6   : > { %4134 = vperm.xlu1 %6199, %v8018_v1  }
0x12ba   : > { %6200 = vset.pattern.permute.xlu1 %v8843_v15 }
0x12bb   : > { %4022 = vperm.xlu1 %6200, %v8024_v49  }
0x12bf   : > { %6201 = vset.pattern.permute.xlu1 %v8845_v42 }
0x12c0   : > { %4138 = vperm.xlu1 %6201, %v8030_v61  }
0x12c4   : > { %6202 = vset.pattern.permute.xlu1 %v8846_v23 }
0x12c5   : > { %4178 = vperm.xlu1 %6202, %v8013_v17  }
0x12c9   : > { %6204 = vset.pattern.permute.xlu1 %v8844_v7 }
0x12ca   : > { %4074 = vperm.xlu1 %6204, %v8042_v31  }
0x12ce   : > { %6205 = vset.pattern.permute.xlu1 %v8845_v42 }
0x12cf   : > { %4142 = vperm.xlu1 %6205, %v8024_v49  }
0x12d3   : > { %6206 = vset.pattern.permute.xlu1 %v8843_v15 }
0x12d4   : > { %4030 = vperm.xlu1 %6206, %v8036_v44  }
0x12d8   : > { %6207 = vset.pattern.permute.xlu1 %v8845_v42 }
0x12d9   : > { %4146 = vperm.xlu1 %6207, %v8042_v31  }
0x12dc   : > { %v3838_v53 = vpop.xlane.xlu0 %3837 }
0x12dd   : > { %v3839_v25 = vrot.slane %v3838_v53, 4  ;;  %6208 = vset.pattern.permute.xlu1 %v8843_v15 }
0x12de   : > { %v3862_v4 = vpop.xlane.xlu1 %3861  ;;  %4034 = vperm.xlu1 %6208, %v8049_v43  }
0x12df   : > { %v3840_v56 = vadd.f32 %v3839_v25, %v3838_v53  ;;  %v3863_v38 = vrot.slane %v3862_v4, 4 }
0x12e1   : > { %v3841_v45 = vrot.slane %v3840_v56, 2  ;;  %v3864_v60 = vadd.f32 %v3863_v38, %v3862_v4 }
0x12e2   : > { %6210 = vset.pattern.permute.xlu1 %v8845_v42  ;;  %v3907_v29 = vpop.permute.xlu1 %3906 }
0x12e3   : > { %v3842_v46 = vadd.f32 %v3841_v45, %v3840_v56  ;;  %v3865_v52 = vrot.slane %v3864_v60, 2  ;;  %4150 = vperm.xlu1 %6210, %v8036_v44  }
0x12e4   : > { %v3903_v54 = vpop.permute.xlu0 %3902 }
0x12e5   : > { %v3843_v34 = vrot.slane %v3842_v46, 1  ;;  %v3866_v41 = vadd.f32 %v3865_v52, %v3864_v60 }
0x12e6   : > { %v3911_v14 = vpop.permute.xlu1 %3910 }
0x12e7   : > { %v3844_v51 = vadd.f32 %v3843_v34, %v3842_v46  ;;  %v3867_v5 = vrot.slane %v3866_v41, 1  ;;  %6212 = vset.pattern.permute.xlu1 %v8846_v23 }
0x12e8   : > { %4194 = vperm.xlu1 %6212, %v8042_v31   ;;  %v3927_v4 = vpop.permute.xlu0 %3926 }
0x12e9   : > { %6004 = vpush %v3844_v51  ;;  %v3868_v48 = vadd.f32 %v3867_v5, %v3866_v41 }
0x12ea   : > { %v3943_v58 = vpop.permute.xlu1 %3942 }
0x12eb   : > { %6006 = vpush %v3868_v48 }
0x12ec   : > { %4198 = vperm.xlu1 %6212, %v8036_v44  }
0x12ed   : > { %v3955_v60 = vpop.permute.xlu0 %3954 }
0x12ee   : > { %v3947_v35 = vpop.permute.xlu1 %3946 }
0x12f0   : > { %6214 = vset.pattern.permute.xlu1 %v8824_v33 }
0x12f3   : > { %v3915_v0 = vpop.permute.xlu1 %3914 }
0x12f8   : > { %v3951_v57 = vpop.permute.xlu1 %3950 }
0x12fd   : > { %v3919_v30 = vpop.permute.xlu1 %3918 }
0x1301   : > { %v3923_v22 = vpop.permute.xlu1 %3922 }
0x1306   : > { %v3959_v39 = vpop.permute.xlu1 %3958 }
0x130a   : > { %v3963_v19 = vpop.permute.xlu1 %3962 }
0x130f   : > { %v3931_v7 = vpop.permute.xlu1 %3930 }
0x1314   : > { %v3971_v56 = vpop.permute.xlu1 %3970 }
0x1319   : > { %v8231_v52 = vpop.permute.xlu1 %4006 }
0x131a   : > { %s6005_s11 = spop %6004 }
0x131b   : > { %s3872_s12 = smul.f32 0.00012207031, %s6005_s11 }
0x131c   : > { %s6007_s14 = spop %6006 }
0x131d   : > { %s3876_s15 = smul.f32 %s3872_s12, %s3872_s12  ;;  %v3883_v55 = vstv %s3872_s12 }
0x131e   : > { %s3875_s16 = smul.f32 0.00012207031, %s6007_s14  ;;  %v3885_v50 = vsub.f32 %v8086_v27, %v3883_v55  ;;  %v3884_v10 = vsub.f32 %v8090_v2, %v3883_v55  ;;  %v3886_v36 = vsub.f32 %v8098_v3, %v3883_v55  ;;  %v3889_v11 = vsub.f32 %v8106_v9, %v3883_v55  ;;  %v4055_v5 = vpop.permute.xlu1 %4054 }
0x131f   : > { %v3891_v23 = vsub.f32 %v8116_v37, %v3883_v55  ;;  %v3887_v2 = vsub.f32 %v8096_v21, %v3883_v55  ;;  %v3888_v21 = vsub.f32 %v8108_v32, %v3883_v55 }
0x1320   : > { %s3877_s17 = ssub.f32 %s3875_s16, %s3876_s15 }
0x1322   : > { %s3878_s21 = smax.f32 %s6341_s19, %s3877_s17  ;;  %v4059_v48 = vpop.permute.xlu1 %4058 }
0x1323   : > { %s3879_s22 = sadd.f32 1e-08, %s3878_s21 }
0x1325   : > { %v3880_v40 = vstv %s3879_s22 }
0x1326   : > { %6242 = vrsqrt.f32 %v3880_v40  ;;  %v3890_v40 = vsub.f32 %v8118_v8, %v3883_v55 }
0x1330   : > { %v6243_v26 = vpop.eup %6242 }
0x1331   : > { %6008 = vpush %v6243_v26  ;;  %v4063_v26 = vpop.permute.xlu1 %4062 }
0x1362   : > { %s6009_s23 = spop %6008 }
0x1363   : > { %v3892_v59 = vstv %s6009_s23 }
0x1364   : > { %v3894_v47 = vmul.f32 %v3892_v59, %v3885_v50  ;;  %v3893_v20 = vmul.f32 %v3892_v59, %v3884_v10  ;;  %v3895_v24 = vmul.f32 %v3892_v59, %v3886_v36  ;;  %v3898_v6 = vmul.f32 %v3892_v59, %v3889_v11 }
0x1365   : > { %v3900_v9 = vmul.f32 %v3892_v59, %v3891_v23  ;;  %v3896_v25 = vmul.f32 %v3892_v59, %v3887_v2  ;;  %v3897_v41 = vmul.f32 %v3892_v59, %v3888_v21 }
0x1366   : > { %v3934_v16 = vmul.f32 %v3907_v29, %v3894_v47  ;;  %v3933_v63 = vmul.f32 %v3903_v54, %v3893_v20  ;;  %v3935_v27 = vmul.f32 %v3911_v14, %v3895_v24  ;;  %v3938_v3 = vmul.f32 %v3923_v22, %v3898_v6 }
0x1367   : > { %v3940_v38 = vmul.f32 %v3931_v7, %v3900_v9  ;;  %v3936_v45 = vmul.f32 %v3915_v0, %v3896_v25  ;;  %v3937_v51 = vmul.f32 %v3919_v30, %v3897_v41  ;;  %v3899_v29 = vmul.f32 %v3892_v59, %v3890_v40 }
0x1368   : > { %v8206_v28 = vadd.f32 %v3947_v35, %v3934_v16  ;;  %v8208_v42 = vadd.f32 %v3943_v58, %v3933_v63  ;;  %v8216_v53 = vadd.f32 %v3951_v57, %v3935_v27  ;;  %v8222_v37 = vadd.f32 %v3963_v19, %v3938_v3  ;;  %v3967_v58 = vpop.permute.xlu0 %3966  ;;  %v4131_v35 = vpop.permute.xlu1 %4130 }
0x1369   : > { %v8229_v46 = vadd.f32 %v3971_v56, %v3940_v38  ;;  %v8233_v34 = vadd.f32 %v3955_v60, %v3936_v45  ;;  %v8242_v32 = vadd.f32 %v3959_v39, %v3937_v51  ;;  %v3939_v14 = vmul.f32 %v3927_v4, %v3899_v29 }
0x136a   : > { %3983 = vrot.lane.b32.xlu0 %v8206_v28, %s6351_s27  ;;  %3981 = vrot.lane.b32.xlu1 %v8208_v42, %s6351_s27  ;;  %v4087_v61 = vmul.f32 %v4063_v26, %v8216_v53 }
0x136b   : > { %v8254_v0 = vadd.f32 %v3967_v58, %v3939_v14 }
0x136c   : > { %v4019_v8 = vpop.permute.xlu1 %4018  ;;  %v4011_v57 = vpop.permute.xlu0 %4010 }
0x136e   : > { %4103 = vrot.lane.b32.xlu0 %v8206_v28, %s6352_s28  ;;  %3985 = vrot.lane.b32.xlu1 %v8216_v53, %s6351_s27 }
0x1370   : > { %v4135_v30 = vpop.permute.xlu1 %4134  ;;  %v4015_v22 = vpop.permute.xlu0 %4014 }
0x1372   : > { %4111 = vrot.lane.b32.xlu0 %v8222_v37, %s6352_s28  ;;  %4101 = vrot.lane.b32.xlu1 %v8208_v42, %s6352_s28 }
0x1374   : > { %v8262_v39 = vpop.permute.xlu1 %4022  ;;  %v8264_v55 = vpop.permute.xlu0 %4026 }
0x1376   : > { %3995 = vrot.lane.b32.xlu0 %v8229_v46, %s6351_s27  ;;  %3987 = vrot.lane.b32.xlu1 %v8233_v34, %s6351_s27 }
0x1378   : > { %v4139_v50 = vpop.permute.xlu1 %4138  ;;  %v4067_v19 = vpop.permute.xlu0 %4066 }
0x137a   : > { %4202 = vperm.xlu0 %6211, %v8049_v43   ;;  %4105 = vrot.lane.b32.xlu1 %v8216_v53, %s6352_s28 }
0x137c   : > { %v4179_v59 = vpop.permute.xlu1 %4178  ;;  %v8266_v10 = vpop.permute.xlu0 %4070 }
0x137e   : > { %6213 = vset.pattern.permute.xlu0 %v8824_v33  ;;  %3989 = vrot.lane.b32.xlu1 %v8242_v32, %s6351_s27 }
0x1380   : > { %v4075_v36 = vpop.permute.xlu1 %4074  ;;  %v8270_v20 = vpop.permute.xlu0 %4078 }
0x1382   : > { %4107 = vrot.lane.b32.xlu1 %v8233_v34, %s6352_s28 }
0x1384   : > { %v8268_v47 = vpop.permute.xlu1 %4142  ;;  %v8274_v54 = vpop.permute.xlu0 %4082 }
0x1386   : > { %3991 = vrot.lane.b32.xlu1 %v8222_v37, %s6351_s27 }
0x1388   : > { %v8272_v24 = vpop.permute.xlu1 %4030  ;;  %v4127_v11 = vpop.permute.xlu0 %4126 }
0x138a   : > { %4109 = vrot.lane.b32.xlu1 %v8242_v32, %s6352_s28 }
0x138c   : > { %v8276_v16 = vpop.permute.xlu1 %4146  ;;  %v8278_v63 = vpop.permute.xlu0 %4154 }
0x138e   : > { %3993 = vrot.lane.b32.xlu1 %v8254_v0, %s6351_s27 }
0x1390   : > { %v8280_v6 = vpop.permute.xlu1 %4034  ;;  %v4175_v7 = vpop.permute.xlu0 %4174 }
0x1392   : > { %4113 = vrot.lane.b32.xlu1 %v8254_v0, %s6352_s28 }
0x1394   : > { %v8282_v27 = vpop.permute.xlu1 %4150  ;;  %v4183_v23 = vpop.permute.xlu0 %4182 }
0x1396   : > { %4115 = vrot.lane.b32.xlu1 %v8229_v46, %s6352_s28 }
0x1398   : > { %v8284_v2 = vpop.permute.xlu1 %4194  ;;  %v4187_v3 = vpop.permute.xlu0 %4186 }
0x139c   : > { %v8286_v9 = vpop.permute.xlu1 %4198  ;;  %v8288_v4 = vpop.permute.xlu0 %4190 }
0x13dc   : > { %v3982_v25 = vpop.permute.xlu1 %3981  ;;  %v3984_v38 = vpop.permute.xlu0 %3983 }
0x13dd   : > { %v3997_v41 = vsel %vm2097_vm3, %v3982_v25, 0.0  ;;  %v3998_v51 = vsel %vm2097_vm3, %v3984_v38, 0.0  ;;  %v4086_v25 = vmul.f32 %v4059_v48, %v8206_v28  ;;  %v4085_v38 = vmul.f32 %v4055_v5, %v8208_v42 }
0x13de   : > { %v4037_v15 = vmul.f32 %v8231_v52, %v3997_v41  ;;  %v4038_v44 = vmul.f32 %v4011_v57, %v3998_v51  ;;  %v4088_v28 = vmul.f32 %v4067_v19, %v8233_v34  ;;  %v4089_v34 = vmul.f32 %v8266_v10, %v8242_v32 }
0x13e0   : > { %v3986_v56 = vpop.permute.xlu1 %3985  ;;  %v4104_v60 = vpop.permute.xlu0 %4103  ;;  %v4093_v33 = vadd.f32 %v4085_v38, %v4037_v15  ;;  %v4094_v52 = vadd.f32 %v4086_v25, %v4038_v44 }
0x13e1   : > { %v3999_v40 = vsel %vm2097_vm3, %v3986_v56, 0.0  ;;  %v4118_v29 = vsel %vm2220_vm4, %v4104_v60, 0.0 }
0x13e2   : > { %v4039_v62 = vmul.f32 %v4015_v22, %v3999_v40  ;;  %v4158_v43 = vmul.f32 %v4131_v35, %v4118_v29 }
0x13e4   : > { %v4102_v45 = vpop.permute.xlu1 %4101  ;;  %v4095_v57 = vadd.f32 %v4087_v61, %v4039_v62  ;;  %v4166_v51 = vadd.f32 %v4158_v43, %v4094_v52  ;;  %v4112_v15 = vpop.permute.xlu0 %4111  ;;  %v4090_v43 = vmul.f32 %v4075_v36, %v8222_v37 }
0x13e5   : > { %v4117_v14 = vsel %vm2220_vm4, %v4102_v45, 0.0 }
0x13e6   : > { %v4157_v56 = vmul.f32 %v4127_v11, %v4117_v14  ;;  %v4206_v11 = vadd.f32 %v4179_v59, %v4166_v51 }
0x13e8   : > { %v3988_v21 = vpop.permute.xlu1 %3987  ;;  %vm4214_vm5 = vcmp.ge.f32.partialorder %v4206_v11, 0.0 }
0x13e9   : > { %v4000_v60 = vsel %vm2097_vm3, %v3988_v21, 0.0 }
0x13ea   : > { %v4040_v41 = vmul.f32 %v4019_v8, %v4000_v60  ;;  %v4222_v8 = vmul.f32 0.25, %v4206_v11 }
0x13ec   : > { %v4106_v58 = vpop.permute.xlu1 %4105  ;;  %v4096_v5 = vadd.f32 %v4088_v28, %v4040_v41  ;;  %v8326_v10 = vsel %vm4214_vm5, %v4206_v11, %v4222_v8 }
0x13ed   : > { %v4119_v31 = vsel %vm2220_vm4, %v4106_v58, 0.0  ;;  %v4165_v58 = vadd.f32 %v4157_v56, %v4093_v33 }
0x13ee   : > { %v4159_v45 = vmul.f32 %v4135_v30, %v4119_v31 }
0x13ef   : > { %v4205_v21 = vadd.f32 %v4175_v7, %v4165_v58 }
0x13f0   : > { %v3990_v1 = vpop.permute.xlu1 %3989  ;;  %v4167_v48 = vadd.f32 %v4159_v45, %v4095_v57  ;;  %v4254_v45 = vmul.f32 %v8326_v10, %v8326_v10 }
0x13f1   : > { %v4001_v31 = vsel %vm2097_vm3, %v3990_v1, 0.0  ;;  %v4221_v30 = vmul.f32 0.25, %v4205_v21  ;;  %v4122_v1 = vsel %vm2220_vm4, %v4112_v15, 0.0  ;;  %vm4213_vm11 = vcmp.ge.f32.partialorder %v4205_v21, 0.0 }
0x13f2   : > { %v4207_v44 = vadd.f32 %v4183_v23, %v4167_v48  ;;  %v4041_v53 = vmul.f32 %v8262_v39, %v4001_v31  ;;  %v4162_v39 = vmul.f32 %v8276_v16, %v4122_v1  ;;  %v4091_v16 = vmul.f32 %v8270_v20, %v8254_v0 }
0x13f3   : > { %v8328_v36 = vsel %vm4213_vm11, %v4205_v21, %v4221_v30 }
0x13f4   : > { %v4108_v22 = vpop.permute.xlu1 %4107  ;;  %v4223_v19 = vmul.f32 0.25, %v4207_v44  ;;  %vm4215_vm6 = vcmp.ge.f32.partialorder %v4207_v44, 0.0  ;;  %v4097_v32 = vadd.f32 %v4089_v34, %v4041_v53 }
0x13f5   : > { %v4120_v42 = vsel %vm2220_vm4, %v4108_v22, 0.0 }
0x13f6   : > { %v4160_v35 = vmul.f32 %v4139_v50, %v4120_v42  ;;  %v8330_v40 = vsel %vm4215_vm6, %v4207_v44, %v4223_v19 }
0x13f7   : > { %v4255_v57 = vmul.f32 %v8330_v40, %v8330_v40 }
0x13f8   : > { %v4168_v62 = vadd.f32 %v4160_v35, %v4096_v5  ;;  %v3992_v61 = vpop.permute.xlu1 %3991  ;;  %v4092_v35 = vmul.f32 %v8274_v54, %v8229_v46 }
0x13f9   : > { %v4002_v33 = vsel %vm2097_vm3, %v3992_v61, 0.0 }
0x13fa   : > { %v4042_v26 = vmul.f32 %v8264_v55, %v4002_v33  ;;  %v4208_v50 = vadd.f32 %v4187_v3, %v4168_v62  ;;  %v3996_v3 = vpop.permute.xlu0 %3995 }
0x13fb   : > { %v4004_v52 = vsel %vm2097_vm3, %v3996_v3, 0.0  ;;  %v8848_v3 = vld [vmem:[#allocation12_spill] sm:$0xff] }
0x13fc   : > { %v4098_v59 = vadd.f32 %v4090_v43, %v4042_v26  ;;  %v4110_v7 = vpop.permute.xlu1 %4109  ;;  %v4224_v23 = vmul.f32 0.25, %v4208_v50  ;;  %vm4216_vm12 = vcmp.ge.f32.partialorder %v4208_v50, 0.0  ;;  %v4044_v48 = vmul.f32 %v8280_v6, %v4004_v52  ;;  %v6315_v52 = vld [vmem:[%s8650_s5 + $0x98] sm:$0xff] }
0x13fd   : > { %v4121_v37 = vsel %vm2220_vm4, %v4110_v7, 0.0 }
0x13fe   : > { %v4161_v55 = vmul.f32 %v8268_v47, %v4121_v37  ;;  %v4170_v29 = vadd.f32 %v4162_v39, %v4098_v59  ;;  %v4253_v47 = vmul.f32 %v8328_v36, %v8328_v36  ;;  %v8346_v41 = vsel %vm4216_vm12, %v4208_v50, %v4224_v23  ;;  %v4203_v12 = vpop.permute.xlu0 %4202 }
0x13ff   : > { %v4100_v62 = vadd.f32 %v4092_v35, %v4044_v48  ;;  %v8847_v23 = vmov 7   ;;  %v6325_v48 = vld [vmem:[%s8647_s2] sm:$0xff] }
0x1400   : > { %v4169_v14 = vadd.f32 %v4161_v55, %v4097_v32  ;;  %v3994_v25 = vpop.permute.xlu1 %3993  ;;  %v4210_v0 = vadd.f32 %v8284_v2, %v4170_v29  ;;  %v4261_v28 = vadd.f32 %v4254_v45, %v4253_v47  ;;  %v4256_v2 = vmul.f32 %v8346_v41, %v8346_v41  ;;  %v8849_v29 = vld [vmem:[#allocation11_spill] sm:$0xff]  ;;  %v6314_v45 = vld [vmem:[%s8650_s5 + $0x58] sm:$0xff] }
0x1401   : > { %v4003_v38 = vsel %vm2097_vm3, %v3994_v25, 0.0  ;;  %v8851_v25 = vmov 9   ;;  %v6312_v47 = vld [vmem:[%s8650_s5 + $0x88] sm:$0xff] }
0x1402   : > { %v4209_v56 = vadd.f32 %v8288_v4, %v4169_v14  ;;  %v4043_v60 = vmul.f32 %v8272_v24, %v4003_v38  ;;  %v4237_v24 = vadd.f32 %v8326_v10, %v8328_v36  ;;  %v4226_v11 = vmul.f32 0.25, %v4210_v0  ;;  %v8850_v14 = vld [vmem:[#allocation18_spill] sm:$0xff] }
0x1403   : > { %v4262_v15 = vadd.f32 %v4261_v28, %v4255_v57  ;;  %vm4218_vm3 = vcmp.ge.f32.partialorder %v4210_v0, 0.0  ;;  %v6310_v38 = vld [vmem:[%s8650_s5] sm:$0xff]  ;;  %v6316_v57 = vld [vmem:[%s8650_s5 + $0x8] sm:$0xff]  ;;  %v6324_v28 = vld [vmem:[%s8650_s5 + $0x90] sm:$0xff] }
0x1404   : > { %vm4217_vm7 = vcmp.ge.f32.partialorder %v4209_v56, 0.0  ;;  %v4225_v20 = vmul.f32 0.25, %v4209_v56  ;;  %v4099_v51 = vadd.f32 %v4091_v16, %v4043_v60  ;;  %v4114_v58 = vpop.permute.xlu1 %4113  ;;  %v4238_v5 = vadd.f32 %v4237_v24, %v8330_v40  ;;  %v8852_v16 = vld [vmem:[#allocation17_spill] sm:$0xff]  ;;  %v8853_v60 = vld [vmem:[#allocation10_spill] sm:$0xff]  ;;  %v6322_v24 = vld [vmem:[%s8650_s5 + $0x10] sm:$0xff] }
0x1405   : > { %v4123_v4 = vsel %vm2220_vm4, %v4114_v58, 0.0  ;;  %v4263_v54 = vadd.f32 %v4262_v15, %v4256_v2  ;;  %v8370_v34 = vsel %vm4218_vm3, %v4210_v0, %v4226_v11  ;;  %v6318_v0 = vld [vmem:[%s8650_s5 + $0x40] sm:$0xff]  ;;  %v6321_v58 = vld [vmem:[%s8647_s2 + $0x30] sm:$0xff]  ;;  %v6329_v2 = vld [vmem:[%s8647_s2 + $0x38] sm:$0xff] }
0x1406   : > { %v8354_v22 = vsel %vm4217_vm7, %v4209_v56, %v4225_v20  ;;  %v4163_v42 = vmul.f32 %v8282_v27, %v4123_v4  ;;  %v4239_v44 = vadd.f32 %v4238_v5, %v8346_v41  ;;  %v6313_v56 = vld [vmem:[%s8650_s5 + $0x18] sm:$0xff]  ;;  %v6319_v20 = vld [vmem:[%s8647_s2 + $0x20] sm:$0xff]  ;;  %v6323_v4 = vld [vmem:[%s8650_s5 + $0x50] sm:$0xff] }
0x1407   : > { %v4257_v27 = vmul.f32 %v8354_v22, %v8354_v22  ;;  %v6328_v5 = vld [vmem:[%s8647_s2 + $0x28] sm:$0xff] }
0x1408   : > { %v4171_v21 = vadd.f32 %v4163_v42, %v4099_v51  ;;  %v4116_v31 = vpop.permute.xlu1 %4115  ;;  %v4240_v46 = vadd.f32 %v4239_v44, %v8354_v22  ;;  %v6320_v51 = vld [vmem:[%s8650_s5 + $0x80] sm:$0xff]  ;;  %v6326_v42 = vld [vmem:[%s8647_s2 + $0x10] sm:$0xff] }
0x1409   : > { %v4124_v6 = vsel %vm2220_vm4, %v4116_v31, 0.0  ;;  %v4264_v26 = vadd.f32 %v4263_v54, %v4257_v27 }
0x140a   : > { %v4211_v61 = vadd.f32 %v8286_v9, %v4171_v21  ;;  %v4164_v33 = vmul.f32 %v8278_v63, %v4124_v6  ;;  %v4241_v1 = vadd.f32 %v4240_v46, %v8370_v34  ;;  %v4258_v9 = vmul.f32 %v8370_v34, %v8370_v34 }
0x140c   : > { %vm4219_vm8 = vcmp.ge.f32.partialorder %v4211_v61, 0.0  ;;  %v4227_v43 = vmul.f32 0.25, %v4211_v61  ;;  %v4172_v53 = vadd.f32 %v4164_v33, %v4100_v62  ;;  %v4265_v59 = vadd.f32 %v4264_v26, %v4258_v9 }
0x140e   : > { %v4212_v8 = vadd.f32 %v4203_v12, %v4172_v53  ;;  %v8372_v30 = vsel %vm4219_vm8, %v4211_v61, %v4227_v43  ;;  %v5252_v53 = vld [vmem:[%s8651_s6 + $0xc0] sm:$0xff] }
0x140f   : > { %v4259_v63 = vmul.f32 %v8372_v30, %v8372_v30  ;;  %v4242_v19 = vadd.f32 %v4241_v1, %v8372_v30  ;;  %5696 = vmatprep.mubr.msk.f32.mxu1 %vm668_vm1, %v5252_v53  ;;  %v483_v53 = vld [vmem:[%s8647_s2 + $0x50] sm:$0xff] }
0x1410   : > { %v4228_v50 = vmul.f32 0.25, %v4212_v8  ;;  %vm4220_vm4 = vcmp.ge.f32.partialorder %v4212_v8, 0.0 }
0x1411   : > { %v4266_v32 = vadd.f32 %v4265_v59, %v4259_v63 }
0x1412   : > { %v8380_v7 = vsel %vm4220_vm4, %v4212_v8, %v4228_v50 }
0x1413   : > { %v4243_v37 = vadd.f32 %v4242_v19, %v8380_v7  ;;  %v4260_v39 = vmul.f32 %v8380_v7, %v8380_v7 }
0x1415   : > { %4244 = vadd.xlane.f32.xlu1 %v4243_v37  ;;  %v4267_v55 = vadd.f32 %v4266_v32, %v4260_v39 }
0x1417   : > { %4268 = vadd.xlane.f32.xlu0 %v4267_v55 }
0x1426   : > { %4313 = vperm.xlu1 %6214, %v8013_v17  }
0x142a   : > { %6215 = vset.pattern.permute.xlu1 %v8797_v13 }
0x142b   : > { %4349 = vperm.xlu1 %6215, %v8007_v18  }
0x142d   : > { %4309 = vperm.xlu0 %6213, %v8007_v18  }
0x142f   : > { %4353 = vperm.xlu1 %6215, %v8013_v17  }
0x1431   : > { %6219 = vset.pattern.permute.xlu0 %v8797_v13 }
0x1432   : > { %4365 = vperm.xlu0 %6219, %v8024_v49  }
0x1433   : > { %6216 = vset.pattern.permute.xlu1 %v8847_v23 }
0x1434   : > { %4317 = vperm.xlu1 %6216, %v8848_v3  }
0x1436   : > { %6220 = vset.pattern.permute.xlu0 %v8847_v23 }
0x1437   : > { %4325 = vperm.xlu0 %6220, %v8024_v49   ;;  %v6311_v49 = vld [vmem:[%s8650_s5 + $0x48] sm:$0xff] }
0x1438   : > { %4321 = vperm.xlu1 %6216, %v8849_v29  }
0x143b   : > { %4337 = vperm.xlu0 %6220, %v8850_v14  }
0x143c   : > { %6217 = vset.pattern.permute.xlu1 %v8797_v13 }
0x143d   : > { %4357 = vperm.xlu1 %6217, %v8848_v3  }
0x143f   : > { %6224 = vset.pattern.permute.xlu0 %v8851_v25 }
0x1440   : > { %1551 = vperm.xlu0 %6224, %v6310_v38  }
0x1441   : > { %4361 = vperm.xlu1 %6217, %v8849_v29  }
0x1444   : > { %2508 = vperm.xlu0 %6224, %v6311_v49  }
0x1445   : > { %6218 = vset.pattern.permute.xlu1 %v8847_v23 }
0x1446   : > { %4329 = vperm.xlu1 %6218, %v8852_v16  }
0x1448   : > { %3455 = vperm.xlu0 %6224, %v6312_v47  }
0x144a   : > { %6221 = vset.pattern.permute.xlu1 %v8797_v13 }
0x144b   : > { %4369 = vperm.xlu1 %6221, %v8852_v16  }
0x144c   : > { %1563 = vperm.xlu0 %6224, %v6313_v56  }
0x144f   : > { %6222 = vset.pattern.permute.xlu1 %v8847_v23 }
0x1450   : > { %4333 = vperm.xlu1 %6222, %v8853_v60   ;;  %2516 = vperm.xlu0 %6224, %v6314_v45  }
0x1454   : > { %6223 = vset.pattern.permute.xlu1 %v8797_v13  ;;  %4402 = vperm.xlu0 %6224, %v8013_v17   ;;  %v8854_v13 = vmov 3   ;;  %v6317_v17 = vld [vmem:[%s8647_s2 + $0x8] sm:$0xff] }
0x1455   : > { %4373 = vperm.xlu1 %6223, %v8853_v60  }
0x1458   : > { %3463 = vperm.xlu0 %6224, %v6315_v52  }
0x1459   : > { %4377 = vperm.xlu1 %6223, %v8850_v14  }
0x145c   : > { %4410 = vperm.xlu0 %6224, %v8849_v29  }
0x145d   : > { %6225 = vset.pattern.permute.xlu1 %v8851_v25 }
0x145e   : > { %1555 = vperm.xlu1 %6225, %v6316_v57  }
0x1460   : > { %6227 = vset.pattern.permute.xlu0 %v8854_v13 }
0x1461   : > { %4587 = vperm.xlu0 %6227, %v6317_v17  }
0x1462   : > { %2504 = vperm.xlu1 %6225, %v6318_v0  }
0x1465   : > { %4599 = vperm.xlu0 %6227, %v6319_v20  }
0x1466   : > { %3451 = vperm.xlu1 %6225, %v6320_v51  }
0x1469   : > { %4607 = vperm.xlu0 %6227, %v6321_v58  }
0x146a   : > { %1559 = vperm.xlu1 %6225, %v6322_v24  }
0x146e   : > { %2512 = vperm.xlu1 %6225, %v6323_v4  }
0x1472   : > { %4398 = vperm.xlu1 %6225, %v8007_v18   ;;  %v6327_v18 = vld [vmem:[%s8647_s2 + $0x18] sm:$0xff] }
0x1476   : > { %3459 = vperm.xlu1 %6225, %v6324_v28  }
0x147a   : > { %4406 = vperm.xlu1 %6225, %v8848_v3  }
0x147e   : > { %6226 = vset.pattern.permute.xlu1 %v8854_v13 }
0x147f   : > { %4583 = vperm.xlu1 %6226, %v6325_v48  }
0x1483   : > { %4591 = vperm.xlu1 %6226, %v6326_v42  }
0x1487   : > { %4595 = vperm.xlu1 %6226, %v6327_v18  }
0x148b   : > { %4603 = vperm.xlu1 %6226, %v6328_v5  }
0x148f   : > { %4611 = vperm.xlu1 %6226, %v6329_v2  }
0x14a2   : > { %v4245_v35 = vpop.xlane.xlu1 %4244 }
0x14a3   : > { %v4246_v11 = vrot.slane %v4245_v35, 4 }
0x14a4   : > { %v4269_v21 = vpop.xlane.xlu0 %4268 }
0x14a5   : > { %v4247_v31 = vadd.f32 %v4246_v11, %v4245_v35  ;;  %v4270_v15 = vrot.slane %v4269_v21, 4 }
0x14a6   : > { %v4314_v26 = vpop.permute.xlu1 %4313 }
0x14a7   : > { %v4248_v6 = vrot.slane %v4247_v31, 2  ;;  %v4271_v44 = vadd.f32 %v4270_v15, %v4269_v21 }
0x14a9   : > { %v4272_v27 = vrot.slane %v4271_v44, 2  ;;  %v4249_v62 = vadd.f32 %v4248_v6, %v4247_v31 }
0x14aa   : > { %v4350_v1 = vpop.permute.xlu1 %4349 }
0x14ab   : > { %v4250_v61 = vrot.slane %v4249_v62, 1  ;;  %v4273_v33 = vadd.f32 %v4272_v27, %v4271_v44  ;;  %v5253_v27 = vld [vmem:[%s8651_s6 + $0xc8] sm:$0xff] }
0x14ac   : > { %v4310_v39 = vpop.permute.xlu0 %4309 }
0x14ad   : > { %v4251_v46 = vadd.f32 %v4250_v61, %v4249_v62  ;;  %v4274_v54 = vrot.slane %v4273_v33, 1  ;;  %v5254_v62 = vld [vmem:[%s8651_s6 + $0xd0] sm:$0xff]  ;;  %v5255_v61 = vld [vmem:[%s8651_s6 + $0xd8] sm:$0xff] }
0x14ae   : > { %v4354_v9 = vpop.permute.xlu1 %4353 }
0x14af   : > { %6010 = vpush %v4251_v46  ;;  %v4275_v43 = vadd.f32 %v4274_v54, %v4273_v33  ;;  %v4566_v33 = vld [vmem:[%s8652_s7] sm:$0xff]  ;;  %v482_v46 = vld [vmem:[%s8647_s2 + $0x48] sm:$0xff] }
0x14b0   : > { %5716 = vmatprep.mubr.msk.f32.mxu0 %vm824_vm2, %v4566_v33  ;;  %v481_v54 = vld [vmem:[%s8647_s2 + $0x40] sm:$0xff]  ;;  %4621 = vperm.xlu1 %6226, %v482_v46   ;;  %v4576_v33 = vld [vmem:[%s8652_s7 + $0x50] sm:$0xff]  ;;  %v4577_v46 = vld [vmem:[%s8652_s7 + $0x58] sm:$0xff] }
0x14b1   : > { %6012 = vpush %v4275_v43  ;;  %v4366_v55 = vpop.permute.xlu0 %4365  ;;  %4616 = vperm.xlu0 %6227, %v481_v54   ;;  %v484_v43 = vld [vmem:[%s8647_s2 + $0x58] sm:$0xff]  ;;  %v4578_v54 = vld [vmem:[%s8652_s7 + $0x60] sm:$0xff] }
0x14b3   : > { %v4318_v63 = vpop.permute.xlu1 %4317 }
0x14b4   : > { %4631 = vperm.xlu1 %6226, %v484_v43   ;;  %v4579_v43 = vld [vmem:[%s8652_s7 + $0x68] sm:$0xff] }
0x14b5   : > { %4626 = vperm.xlu0 %6227, %v483_v53   ;;  %v4580_v53 = vld [vmem:[%s8652_s7 + $0x70] sm:$0xff] }
0x14b6   : > { %v4326_v38 = vpop.permute.xlu0 %4325 }
0x14b7   : > { %v4322_v50 = vpop.permute.xlu1 %4321 }
0x14bc   : > { %v4358_v19 = vpop.permute.xlu1 %4357 }
0x14c0   : > { %v4362_v59 = vpop.permute.xlu1 %4361 }
0x14c5   : > { %v4330_v37 = vpop.permute.xlu1 %4329 }
0x14ca   : > { %v4370_v32 = vpop.permute.xlu1 %4369 }
0x14cf   : > { %v4334_v3 = vpop.permute.xlu1 %4333 }
0x14d4   : > { %v4374_v51 = vpop.permute.xlu1 %4373 }
0x14d8   : > { %v4378_v21 = vpop.permute.xlu1 %4377 }
0x14e0   : > { %s6011_s15 = spop %6010 }
0x14e1   : > { %s4279_s16 = smul.f32 0.00012207031, %s6011_s15 }
0x14e2   : > { %s6013_s17 = spop %6012 }
0x14e3   : > { %s4283_s21 = smul.f32 %s4279_s16, %s4279_s16  ;;  %v4290_v23 = vstv %s4279_s16 }
0x14e4   : > { %s4282_s22 = smul.f32 0.00012207031, %s6013_s17  ;;  %v4291_v29 = vsub.f32 %v8328_v36, %v4290_v23  ;;  %v4292_v14 = vsub.f32 %v8326_v10, %v4290_v23  ;;  %v4293_v25 = vsub.f32 %v8330_v40, %v4290_v23  ;;  %v4294_v16 = vsub.f32 %v8346_v41, %v4290_v23 }
0x14e5   : > { %v4295_v47 = vsub.f32 %v8354_v22, %v4290_v23  ;;  %v4296_v56 = vsub.f32 %v8370_v34, %v4290_v23  ;;  %v4297_v60 = vsub.f32 %v8372_v30, %v4290_v23  ;;  %v4298_v45 = vsub.f32 %v8380_v7, %v4290_v23  ;;  %v4338_v30 = vpop.permute.xlu0 %4337 }
0x14e6   : > { %s4284_s23 = ssub.f32 %s4282_s22, %s4283_s21 }
0x14e8   : > { %s4285_s27 = smax.f32 %s6341_s19, %s4284_s23 }
0x14e9   : > { %s4286_s28 = sadd.f32 1e-08, %s4285_s27 }
0x14eb   : > { %v4287_v12 = vstv %s4286_s28 }
0x14ec   : > { %6244 = vrsqrt.f32 %v4287_v12  ;;  %v486_v12 = vld [vmem:[%s8647_s2 + $0x68] sm:$0xff] }
0x14ed   : > { %4641 = vperm.xlu1 %6226, %v486_v12   ;;  %v4581_v12 = vld [vmem:[%s8652_s7 + $0x78] sm:$0xff] }
0x14f6   : > { %v6245_v8 = vpop.eup %6244 }
0x14f7   : > { %6014 = vpush %v6245_v8  ;;  %v488_v8 = vld [vmem:[%s8647_s2 + $0x78] sm:$0xff] }
0x14f8   : > { %4651 = vperm.xlu1 %6226, %v488_v8   ;;  %v5257_v8 = vld [vmem:[%s8651_s6 + $0xe8] sm:$0xff] }
0x1528   : > { %s6015_s24 = spop %6014 }
0x1529   : > { %v4299_v49 = vstv %s6015_s24 }
0x152a   : > { %v4300_v52 = vmul.f32 %v4299_v49, %v4291_v29  ;;  %v4301_v57 = vmul.f32 %v4299_v49, %v4292_v14  ;;  %v4302_v13 = vmul.f32 %v4299_v49, %v4293_v25  ;;  %v4303_v36 = vmul.f32 %v4299_v49, %v4294_v16 }
0x152b   : > { %v4304_v17 = vmul.f32 %v4299_v49, %v4295_v47  ;;  %v4305_v10 = vmul.f32 %v4299_v49, %v4296_v56  ;;  %v4306_v20 = vmul.f32 %v4299_v49, %v4297_v60  ;;  %v4307_v58 = vmul.f32 %v4299_v49, %v4298_v45 }
0x152c   : > { %v4340_v0 = vmul.f32 %v4310_v39, %v4300_v52  ;;  %v4341_v40 = vmul.f32 %v4314_v26, %v4301_v57  ;;  %v4342_v41 = vmul.f32 %v4318_v63, %v4302_v13  ;;  %v4343_v24 = vmul.f32 %v4322_v50, %v4303_v36  ;;  %v485_v26 = vld [vmem:[%s8647_s2 + $0x60] sm:$0xff]  ;;  %v1556_v63 = vpop.permute.xlu1 %1555 }
0x152d   : > { %v4344_v34 = vmul.f32 %v4326_v38, %v4304_v17  ;;  %v4345_v28 = vmul.f32 %v4330_v37, %v4305_v10  ;;  %v4346_v18 = vmul.f32 %v4334_v3, %v4306_v20  ;;  %v4347_v5 = vmul.f32 %v4338_v30, %v4307_v58  ;;  %4636 = vperm.xlu0 %6227, %v485_v26   ;;  %v5256_v26 = vld [vmem:[%s8651_s6 + $0xe0] sm:$0xff] }
0x152e   : > { %v4380_v22 = vadd.f32 %v4350_v1, %v4340_v0  ;;  %v4381_v4 = vadd.f32 %v4354_v9, %v4341_v40  ;;  %v4382_v48 = vadd.f32 %v4358_v19, %v4342_v41  ;;  %v4383_v7 = vadd.f32 %v4362_v59, %v4343_v24  ;;  %v487_v1 = vld [vmem:[%s8647_s2 + $0x70] sm:$0xff]  ;;  %v1552_v9 = vpop.permute.xlu0 %1551 }
0x152f   : > { %v4384_v35 = vadd.f32 %v4366_v55, %v4344_v34  ;;  %v4385_v11 = vadd.f32 %v4370_v32, %v4345_v28  ;;  %v4386_v31 = vadd.f32 %v4374_v51, %v4346_v18  ;;  %v4387_v15 = vadd.f32 %v4378_v21, %v4347_v5  ;;  %v4568_v21 = vld [vmem:[%s8652_s7 + $0x10] sm:$0xff] }
0x1530   : > { %v5878_v42 = vpack.c.bf16 %v4381_v4, %v4380_v22  ;;  %v5882_v2 = vpack.c.bf16 %v4383_v7, %v4382_v48  ;;  %v2505_v19 = vpop.permute.xlu1 %2504 }
0x1531   : > { %v5886_v6 = vpack.c.bf16 %v4385_v11, %v4384_v35  ;;  %v5890_v44 = vpack.c.bf16 %v4387_v15, %v4386_v31  ;;  %4646 = vperm.xlu0 %6227, %v487_v1   ;;  %v5938_v25 = vadd.f32 %v2505_v19, %v1552_v9  ;;  %v4567_v11 = vld [vmem:[%s8652_s7 + $0x8] sm:$0xff]  ;;  %v4569_v31 = vld [vmem:[%s8652_s7 + $0x18] sm:$0xff]  ;;  %v4570_v15 = vld [vmem:[%s8652_s7 + $0x20] sm:$0xff] }
0x1532   : > { %5879 = vmatprep.subr.bf16.mxu1 %v5878_v42  ;;  %v2509_v50 = vpop.permute.xlu0 %2508  ;;  %v5258_v1 = vld [vmem:[%s8651_s6 + $0xf0] sm:$0xff]  ;;  %v5259_v9 = vld [vmem:[%s8651_s6 + $0xf8] sm:$0xff] }
0x1533   : > { %5881 = vmatpush3.bf16.msra.mxu1 %v5878_v42  ;;  %v5934_v14 = vadd.f32 %v2509_v50, %v1556_v63  ;;  %v4959_v63 = vld [vmem:[%s8653_s8] sm:$0xff] }
0x1534   : > { %5883 = vmatprep.subr.bf16.mxu1 %v5882_v2  ;;  %v3452_v37 = vpop.permute.xlu1 %3451 }
0x1535   : > { %v5939_v56 = vadd.f32 %v5938_v25, %v3452_v37 }
0x1536   : > { %v3456_v59 = vpop.permute.xlu0 %3455 }
0x1537   : > { %5885 = vmatpush3.bf16.msra.mxu1 %v5882_v2  ;;  %v5935_v49 = vadd.f32 %v5934_v14, %v3456_v59 }
0x1538   : > { %5887 = vmatprep.subr.bf16.mxu1 %v5886_v6  ;;  %v1560_v32 = vpop.permute.xlu1 %1559 }
0x153a   : > { %v1564_v39 = vpop.permute.xlu0 %1563 }
0x153b   : > { %5889 = vmatpush3.bf16.msra.mxu1 %v5886_v6  ;;  %v4571_v6 = vld [vmem:[%s8652_s7 + $0x28] sm:$0xff] }
0x153c   : > { %5891 = vmatprep.subr.bf16.mxu1 %v5890_v44  ;;  %v2513_v23 = vpop.permute.xlu1 %2512 }
0x153d   : > { %v5946_v60 = vadd.f32 %v2513_v23, %v1560_v32 }
0x153e   : > { %v2517_v55 = vpop.permute.xlu0 %2516 }
0x153f   : > { %5893 = vmatpush3.bf16.msra.mxu1 %v5890_v44  ;;  %v5942_v16 = vadd.f32 %v2517_v55, %v1564_v39  ;;  %v4572_v44 = vld [vmem:[%s8652_s7 + $0x30] sm:$0xff] }
0x1540   : > { %v4399_v29 = vpop.permute.xlu1 %4398 }
0x1541   : > { %v5940_v57 = vadd.f32 %v5939_v56, %v4399_v29 }
0x1542   : > { %5697 = vmatmul.mubr.msk.f32.vlgmr.msra.gmra.mrb[4].mxu1 %vm668_vm1, %v5253_v27  ;;  %v4403_v3 = vpop.permute.xlu0 %4402  ;;  %v4573_v27 = vld [vmem:[%s8652_s7 + $0x38] sm:$0xff] }
0x1543   : > { %5699 = vmatprep.mubr.msk.f32.mxu1 %vm668_vm1, %v5254_v62  ;;  %v5936_v45 = vadd.f32 %v5935_v49, %v4403_v3  ;;  %v4574_v62 = vld [vmem:[%s8652_s7 + $0x40] sm:$0xff] }
0x1544   : > { %v3460_v47 = vpop.permute.xlu1 %3459 }
0x1545   : > { %v5947_v13 = vadd.f32 %v5946_v60, %v3460_v47 }
0x1546   : > { %5700 = vmatmul.mubr.msk.f32.gmra.mrb[6].mxu1 %vm668_vm1, %v5255_v61  ;;  %v3464_v38 = vpop.permute.xlu0 %3463  ;;  %v4575_v61 = vld [vmem:[%s8652_s7 + $0x48] sm:$0xff] }
0x1547   : > { %v5943_v52 = vadd.f32 %v5942_v16, %v3464_v38  ;;  %5702 = vmatprep.mubr.msk.f32.mxu1 %vm668_vm1, %v5256_v26 }
0x1548   : > { %v4407_v10 = vpop.permute.xlu1 %4406 }
0x1549   : > { %v5948_v41 = vadd.f32 %v5947_v13, %v4407_v10 }
0x154a   : > { %v4411_v36 = vpop.permute.xlu0 %4410  ;;  %5703 = vmatmul.mubr.msk.f32.gmra.mrb[20].mxu1 %vm668_vm1, %v5257_v8 }
0x154b   : > { %v5944_v51 = vadd.f32 %v5943_v52, %v4411_v36  ;;  %5705 = vmatprep.mubr.msk.f32.mxu1 %vm668_vm1, %v5258_v1 }
0x154c   : > { %v4584_v50 = vpop.permute.xlu1 %4583 }
0x154e   : > { %5706 = vmatmul.mubr.msk.f32.gmra.mrb[22].mxu1 %vm668_vm1, %v5259_v9  ;;  %v4588_v37 = vpop.permute.xlu0 %4587 }
0x154f   : > { %5772 = vmatprep.mubr.f32.mxu1 %v4959_v63 }
0x1550   : > { %v4592_v19 = vpop.permute.xlu1 %4591 }
0x1552   : > { %v4600_v32 = vpop.permute.xlu0 %4599 }
0x1554   : > { %v4596_v59 = vpop.permute.xlu1 %4595 }
0x1556   : > { %v4608_v16 = vpop.permute.xlu0 %4607 }
0x1558   : > { %v4604_v39 = vpop.permute.xlu1 %4603 }
0x155c   : > { %v4612_v25 = vpop.permute.xlu1 %4611 }
0x1615   : > { %v5698_v17 = vpop.f32.mrb[4].mxu1 }
0x1616   : > { %v5937_v0 = vadd.f32 %v5936_v45, %v5698_v17  ;;  %v4515_v40 = vpop.f32.mrb[5].mxu1  ;;  %v4622_v17 = vpop.permute.xlu1 %4621 }
0x1617   : > { %v5941_v20 = vadd.f32 %v5940_v57, %v4515_v40 }
0x1618   : > { %vm4555_vm9 = vcmp.ge.f32.partialorder %v5937_v0, 0.0  ;;  %v4559_v58 = vmul.f32 0.25, %v5937_v0 }
0x1619   : > { %vm4554_vm10 = vcmp.ge.f32.partialorder %v5941_v20, 0.0  ;;  %v4558_v24 = vmul.f32 0.25, %v5941_v20  ;;  %v5701_v22 = vpop.f32.mrb[6].mxu1 }
0x161a   : > { %v5945_v4 = vadd.f32 %v5944_v51, %v5701_v22  ;;  %v4525_v34 = vpop.f32.mrb[7].mxu1  ;;  %v4563_v28 = vsel %vm4555_vm9, %v5937_v0, %v4559_v58  ;;  %v4617_v0 = vpop.permute.xlu0 %4616 }
0x161b   : > { %v5949_v30 = vadd.f32 %v5948_v41, %v4525_v34  ;;  %v4562_v48 = vsel %vm4554_vm10, %v5941_v20, %v4558_v24 }
0x161c   : > { %vm4557_vm13 = vcmp.ge.f32.partialorder %v5945_v4, 0.0  ;;  %v4561_v7 = vmul.f32 0.25, %v5945_v4  ;;  %v5894_v42 = vpack.c.bf16 %v4563_v28, %v4562_v48  ;;  %v4632_v28 = vpop.permute.xlu1 %4631 }
0x161d   : > { %vm4556_vm14 = vcmp.ge.f32.partialorder %v5949_v30, 0.0  ;;  %v4560_v18 = vmul.f32 0.25, %v5949_v30 }
0x161e   : > { %5895 = vmatprep.subr.bf16.mxu0 %v5894_v42  ;;  %v4565_v5 = vsel %vm4557_vm13, %v5945_v4, %v4561_v7 }
0x161f   : > { %5897 = vmatpush3.bf16.msra.mxu0 %v5894_v42  ;;  %v4564_v2 = vsel %vm4556_vm14, %v5949_v30, %v4560_v18  ;;  %v4627_v18 = vpop.permute.xlu0 %4626 }
0x1620   : > { %v5898_v35 = vpack.c.bf16 %v4565_v5, %v4564_v2 }
0x1622   : > { %5899 = vmatprep.subr.bf16.mxu0 %v5898_v35 }
0x1623   : > { %5901 = vmatpush3.bf16.msra.mxu0 %v5898_v35 }
0x1626   : > { %5717 = vmatmul.mubr.msk.f32.vlgmr.msra.gmra.mrb[40].mxu0 %vm824_vm2, %v4567_v11 }
0x1627   : > { %5719 = vmatprep.mubr.msk.f32.mxu0 %vm824_vm2, %v4568_v21 }
0x162a   : > { %5720 = vmatmul.mubr.msk.f32.gmra.mrb[42].mxu0 %vm824_vm2, %v4569_v31 }
0x162b   : > { %5722 = vmatprep.mubr.msk.f32.mxu0 %vm824_vm2, %v4570_v15 }
0x162e   : > { %5723 = vmatmul.mubr.msk.f32.gmra.mrb[44].mxu0 %vm824_vm2, %v4571_v6 }
0x162f   : > { %5725 = vmatprep.mubr.msk.f32.mxu0 %vm824_vm2, %v4572_v44 }
0x1632   : > { %5726 = vmatmul.mubr.msk.f32.gmra.mrb[46].mxu0 %vm824_vm2, %v4573_v27 }
0x1633   : > { %5728 = vmatprep.mubr.msk.f32.mxu0 %vm824_vm2, %v4574_v62 }
0x1636   : > { %5729 = vmatmul.mubr.msk.f32.gmra.mrb[48].mxu0 %vm824_vm2, %v4575_v61 }
0x1637   : > { %5731 = vmatprep.mubr.msk.f32.mxu0 %vm824_vm2, %v4576_v33  ;;  %v4642_v33 = vpop.permute.xlu1 %4641 }
0x163a   : > { %5732 = vmatmul.mubr.msk.f32.gmra.mrb[50].mxu0 %vm824_vm2, %v4577_v46 }
0x163b   : > { %5734 = vmatprep.mubr.msk.f32.mxu0 %vm824_vm2, %v4578_v54 }
0x163e   : > { %5735 = vmatmul.mubr.msk.f32.gmra.mrb[52].mxu0 %vm824_vm2, %v4579_v43  ;;  %v4637_v43 = vpop.permute.xlu0 %4636 }
0x163f   : > { %5737 = vmatprep.mubr.msk.f32.mxu0 %vm824_vm2, %v4580_v53 }
0x1642   : > { %5738 = vmatmul.mubr.msk.f32.gmra.mrb[54].mxu0 %vm824_vm2, %v4581_v12 }
0x16f9   : > { %v5718_v55 = vpop.f32.mrb[40].mxu0 }
0x16fa   : > { %v4774_v23 = vadd.f32 %v5718_v55, %v4588_v37  ;;  %v4768_v3 = vpop.f32.mrb[41].mxu0 }
0x16fb   : > { %v4769_v29 = vadd.f32 %v4768_v3, %v4584_v50 }
0x16fc   : > { %v5285_v14 = vmul.f32 -1.442695, %v4774_v23 }
0x16fd   : > { %v5284_v38 = vmul.f32 -1.442695, %v4769_v29  ;;  %v5721_v49 = vpop.f32.mrb[42].mxu0 }
0x16fe   : > { %6246 = vpow2.f32 %v5285_v14  ;;  %v4784_v47 = vadd.f32 %v5721_v49, %v4596_v59  ;;  %v4778_v56 = vpop.f32.mrb[43].mxu0  ;;  %v4647_v14 = vpop.permute.xlu0 %4646  ;;  %v8855_v49 = vld [vmem:[#allocation2_spill] sm:$0xff] }
0x16ff   : > { %6248 = vpow2.f32 %v5284_v38  ;;  %v4779_v60 = vadd.f32 %v4778_v56, %v4592_v19 }
0x1700   : > { %v5287_v45 = vmul.f32 -1.442695, %v4784_v47 }
0x1701   : > { %v5286_v52 = vmul.f32 -1.442695, %v4779_v60  ;;  %v5724_v57 = vpop.f32.mrb[44].mxu0  ;;  %v8856_v60 = vld [vmem:[#allocation3_spill] sm:$0xff] }
0x1702   : > { %6250 = vpow2.f32 %v5287_v45  ;;  %v4794_v13 = vadd.f32 %v5724_v57, %v4604_v39  ;;  %v4788_v36 = vpop.f32.mrb[45].mxu0 }
0x1703   : > { %6252 = vpow2.f32 %v5286_v52  ;;  %v4789_v10 = vadd.f32 %v4788_v36, %v4600_v32  ;;  %v4652_v32 = vpop.permute.xlu1 %4651 }
0x1704   : > { %v5289_v40 = vmul.f32 -1.442695, %v4794_v13 }
0x1705   : > { %v5288_v20 = vmul.f32 -1.442695, %v4789_v10  ;;  %v5727_v51 = vpop.f32.mrb[46].mxu0 }
0x1706   : > { %6254 = vpow2.f32 %v5289_v40  ;;  %v4804_v58 = vadd.f32 %v5727_v51, %v4612_v25  ;;  %v4798_v41 = vpop.f32.mrb[47].mxu0 }
0x1707   : > { %6256 = vpow2.f32 %v5288_v20  ;;  %v4799_v24 = vadd.f32 %v4798_v41, %v4608_v16  ;;  %v8857_v20 = vld [vmem:[#allocation4_spill] sm:$0xff]  ;;  %v8858_v41 = vld [vmem:[#allocation5_spill] sm:$0xff] }
0x1708   : > { %v6247_v22 = vpop.eup %6246  ;;  %v5291_v4 = vmul.f32 -1.442695, %v4804_v58 }
0x1709   : > { %v6249_v34 = vpop.eup %6248  ;;  %v4896_v30 = vadd.f32 1.0, %v6247_v22  ;;  %v5290_v48 = vmul.f32 -1.442695, %v4799_v24  ;;  %v5730_v7 = vpop.f32.mrb[48].mxu0 }
0x170a   : > { %v4895_v42 = vadd.f32 1.0, %v6249_v34  ;;  %6258 = vpow2.f32 %v5291_v4  ;;  %v4814_v5 = vadd.f32 %v5730_v7, %v4622_v17  ;;  %v4808_v2 = vpop.f32.mrb[49].mxu0  ;;  %v8859_v7 = vld [vmem:[#allocation6_spill] sm:$0xff] }
0x170b   : > { %6260 = vrcp.f32 %v4896_v30  ;;  %v4809_v35 = vadd.f32 %v4808_v2, %v4617_v0 }
0x170c   : > { %v6251_v11 = vpop.eup %6250  ;;  %6262 = vrcp.f32 %v4895_v42  ;;  %v5293_v21 = vmul.f32 -1.442695, %v4814_v5  ;;  %v8860_v5 = vld [vmem:[#allocation7_spill] sm:$0xff] }
0x170d   : > { %v6253_v31 = vpop.eup %6252  ;;  %v4898_v15 = vadd.f32 1.0, %v6251_v11  ;;  %6264 = vpow2.f32 %v5290_v48  ;;  %v5292_v6 = vmul.f32 -1.442695, %v4809_v35  ;;  %v5733_v44 = vpop.f32.mrb[50].mxu0 }
0x170e   : > { %v4897_v27 = vadd.f32 1.0, %v6253_v31  ;;  %6266 = vpow2.f32 %v5293_v21  ;;  %v4824_v62 = vadd.f32 %v5733_v44, %v4632_v28  ;;  %v4818_v61 = vpop.f32.mrb[51].mxu0  ;;  %v8861_v44 = vld [vmem:[#allocation8_spill] sm:$0xff] }
0x170f   : > { %6268 = vrcp.f32 %v4898_v15  ;;  %v4819_v46 = vadd.f32 %v4818_v61, %v4627_v18 }
0x1710   : > { %v6255_v54 = vpop.eup %6254  ;;  %6270 = vrcp.f32 %v4897_v27  ;;  %v5295_v53 = vmul.f32 -1.442695, %v4824_v62 }
0x1711   : > { %v6257_v12 = vpop.eup %6256  ;;  %v4900_v26 = vadd.f32 1.0, %v6255_v54  ;;  %6272 = vpow2.f32 %v5292_v6  ;;  %v5294_v8 = vmul.f32 -1.442695, %v4819_v46  ;;  %v5736_v1 = vpop.f32.mrb[52].mxu0  ;;  %v8862_v46 = vld [vmem:[#allocation9_spill] sm:$0xff] }
0x1712   : > { %v4899_v9 = vadd.f32 1.0, %v6257_v12  ;;  %6274 = vpow2.f32 %v5295_v53  ;;  %v4834_v63 = vadd.f32 %v5736_v1, %v4642_v33  ;;  %v4828_v50 = vpop.f32.mrb[53].mxu0 }
0x1713   : > { %6276 = vrcp.f32 %v4900_v26  ;;  %v4829_v19 = vadd.f32 %v4828_v50, %v4637_v43 }
0x1714   : > { %v6259_v59 = vpop.eup %6258  ;;  %6278 = vrcp.f32 %v4899_v9  ;;  %v5297_v37 = vmul.f32 -1.442695, %v4834_v63 }
0x1715   : > { %v6261_v39 = vpop.eup %6260  ;;  %v4902_v55 = vadd.f32 1.0, %v6259_v59  ;;  %6280 = vpow2.f32 %v5294_v8  ;;  %v5296_v23 = vmul.f32 -1.442695, %v4829_v19  ;;  %v5739_v3 = vpop.f32.mrb[54].mxu0 }
0x1716   : > { %v6263_v29 = vpop.eup %6262  ;;  %6282 = vpow2.f32 %v5297_v37  ;;  %v4844_v25 = vadd.f32 %v5739_v3, %v4652_v32  ;;  %v4838_v38 = vpop.f32.mrb[55].mxu0  ;;  %v4944_v16 = vmul.f32 %v6261_v39, %v8855_v49 }
0x1717   : > { %v6265_v47 = vpop.eup %6264  ;;  %6284 = vrcp.f32 %v4902_v55  ;;  %v4839_v56 = vadd.f32 %v4838_v38, %v4647_v14  ;;  %v4943_v45 = vmul.f32 %v6263_v29, %v8856_v60 }
0x1718   : > { %v6267_v52 = vpop.eup %6266  ;;  %v4901_v57 = vadd.f32 1.0, %v6265_v47  ;;  %6286 = vpow2.f32 %v5296_v23  ;;  %v5299_v13 = vmul.f32 -1.442695, %v4844_v25 }
0x1719   : > { %v6269_v36 = vpop.eup %6268  ;;  %v4904_v17 = vadd.f32 1.0, %v6267_v52  ;;  %v5298_v10 = vmul.f32 -1.442695, %v4839_v56  ;;  %v5902_v0 = vpack.c.bf16 %v4944_v16, %v4943_v45  ;;  %v4960_v56 = vld [vmem:[%s8653_s8 + $0x8] sm:$0xff]  ;;  %v4962_v45 = vld [vmem:[%s8653_s8 + $0x18] sm:$0xff]  ;;  %v5704_v52 = vpop.f32.mrb[20].mxu1 }
0x171a   : > { %v6271_v40 = vpop.eup %6270  ;;  %6288 = vrcp.f32 %v4901_v57  ;;  %v4946_v51 = vmul.f32 %v6269_v36, %v8857_v20  ;;  %v4535_v57 = vpop.f32.mrb[21].mxu1 }
0x171b   : > { %v6273_v58 = vpop.eup %6272  ;;  %6290 = vrcp.f32 %v4904_v17  ;;  %5903 = vmatprep.subr.bf16.mxu1 %v5902_v0  ;;  %v4945_v24 = vmul.f32 %v6271_v40, %v8858_v41 }
0x171c   : > { %v6275_v22 = vpop.eup %6274  ;;  %v4903_v4 = vadd.f32 1.0, %v6273_v58  ;;  %6292 = vpow2.f32 %v5299_v13  ;;  %5905 = vmatpush3.bf16.msra.mxu1 %v5902_v0  ;;  %v5707_v13 = vpop.f32.mrb[22].mxu1 }
0x171d   : > { %v6277_v34 = vpop.eup %6276  ;;  %v4906_v28 = vadd.f32 1.0, %v6275_v22  ;;  %6294 = vpow2.f32 %v5298_v10  ;;  %v5906_v30 = vpack.c.bf16 %v4946_v51, %v4945_v24  ;;  %v4543_v36 = vpop.f32.mrb[23].mxu1 }
0x171e   : > { %v6279_v48 = vpop.eup %6278  ;;  %6296 = vrcp.f32 %v4903_v4  ;;  %v4948_v42 = vmul.f32 %v6277_v34, %v8859_v7 }
0x171f   : > { %v6281_v18 = vpop.eup %6280  ;;  %6298 = vrcp.f32 %v4906_v28  ;;  %5907 = vmatprep.subr.bf16.mxu1 %v5906_v30  ;;  %v4947_v2 = vmul.f32 %v6279_v48, %v8860_v5 }
0x1720   : > { %v6283_v35 = vpop.eup %6282  ;;  %v4905_v11 = vadd.f32 1.0, %v6281_v18  ;;  %5909 = vmatpush3.bf16.msra.mxu1 %v5906_v30 }
0x1721   : > { %v6285_v21 = vpop.eup %6284  ;;  %v4908_v31 = vadd.f32 1.0, %v6283_v35  ;;  %v5910_v15 = vpack.c.bf16 %v4948_v42, %v4947_v2 }
0x1722   : > { %v6287_v6 = vpop.eup %6286  ;;  %6300 = vrcp.f32 %v4905_v11  ;;  %v4950_v27 = vmul.f32 %v6285_v21, %v8861_v44 }
0x1723   : > { %6302 = vrcp.f32 %v4908_v31  ;;  %v4907_v62 = vadd.f32 1.0, %v6287_v6  ;;  %5911 = vmatprep.subr.bf16.mxu1 %v5910_v15 }
0x1724   : > { %v6289_v61 = vpop.eup %6288  ;;  %5913 = vmatpush3.bf16.msra.mxu1 %v5910_v15 }
0x1725   : > { %v6291_v33 = vpop.eup %6290  ;;  %6304 = vrcp.f32 %v4907_v62  ;;  %v4949_v54 = vmul.f32 %v6289_v61, %v8862_v46 }
0x1726   : > { %v6293_v43 = vpop.eup %6292  ;;  %v4952_v53 = vmul.f32 %v6291_v33, %v8855_v49 }
0x1727   : > { %v6295_v12 = vpop.eup %6294  ;;  %v4910_v26 = vadd.f32 1.0, %v6293_v43  ;;  %v5914_v8 = vpack.c.bf16 %v4950_v27, %v4949_v54 }
0x1728   : > { %v6297_v1 = vpop.eup %6296  ;;  %v4909_v9 = vadd.f32 1.0, %v6295_v12 }
0x1729   : > { %v6299_v63 = vpop.eup %6298  ;;  %6306 = vrcp.f32 %v4910_v26  ;;  %5915 = vmatprep.subr.bf16.mxu1 %v5914_v8  ;;  %v4951_v50 = vmul.f32 %v6297_v1, %v8856_v60  ;;  %v4961_v60 = vld [vmem:[%s8653_s8 + $0x10] sm:$0xff] }
0x172a   : > { %6308 = vrcp.f32 %v4909_v9  ;;  %5917 = vmatpush3.bf16.msra.mxu1 %v5914_v8  ;;  %v4954_v19 = vmul.f32 %v6299_v63, %v8857_v20 }
0x172b   : > { %v5918_v59 = vpack.c.bf16 %v4952_v53, %v4951_v50 }
0x172c   : > { %v6301_v37 = vpop.eup %6300 }
0x172d   : > { %v6303_v39 = vpop.eup %6302  ;;  %5919 = vmatprep.subr.bf16.mxu1 %v5918_v59  ;;  %v4953_v32 = vmul.f32 %v6301_v37, %v8858_v41 }
0x172e   : > { %5921 = vmatpush3.bf16.msra.mxu1 %v5918_v59  ;;  %v4956_v55 = vmul.f32 %v6303_v39, %v8859_v7 }
0x172f   : > { %v6305_v23 = vpop.eup %6304  ;;  %v5922_v3 = vpack.c.bf16 %v4954_v19, %v4953_v32 }
0x1730   : > { %v4955_v29 = vmul.f32 %v6305_v23, %v8860_v5 }
0x1731   : > { %5923 = vmatprep.subr.bf16.mxu1 %v5922_v3 }
0x1732   : > { %5925 = vmatpush3.bf16.msra.mxu1 %v5922_v3  ;;  %v5926_v14 = vpack.c.bf16 %v4956_v55, %v4955_v29 }
0x1733   : > { %v6307_v25 = vpop.eup %6306 }
0x1734   : > { %v6309_v38 = vpop.eup %6308  ;;  %5927 = vmatprep.subr.bf16.mxu1 %v5926_v14  ;;  %v4958_v49 = vmul.f32 %v6307_v25, %v8861_v44 }
0x1735   : > { %v4957_v16 = vmul.f32 %v6309_v38, %v8862_v46 }
0x1736   : > { %5929 = vmatpush3.bf16.msra.mxu1 %v5926_v14 }
0x1737   : > { %v5930_v47 = vpack.c.bf16 %v4958_v49, %v4957_v16 }
0x1739   : > { %5931 = vmatprep.subr.bf16.mxu1 %v5930_v47 }
0x173a   : > { %5933 = vmatpush3.bf16.msra.mxu1 %v5930_v47 }
0x173d   : > { %5773 = vmatmul.mubr.f32.vlgmr.msra.gmra.mrb[24].mxu1 %v4960_v56 }
0x173e   : > { %5775 = vmatprep.mubr.f32.mxu1 %v4961_v60 }
0x1741   : > { %5776 = vmatmul.mubr.f32.gmra.mrb[26].mxu1 %v4962_v45 }
0x1810   : > { %v5774_v17 = vpop.f32.mrb[24].mxu1 }
0x1811   : > { %v5029_v10 = vpop.f32.mrb[25].mxu1 }
0x1812   : > { %5048 = vrot.lane.b32.xlu0 %v5029_v10, %s6347_s20 }
0x1814   : > { %v5777_v0 = vpop.f32.mrb[26].mxu1 }
0x1815   : > { %v5039_v40 = vpop.f32.mrb[27].mxu1 }
0x1816   : > { %5050 = vrot.lane.b32.xlu1 %v5039_v40, %s6347_s20 }
0x1884   : > { %v5049_v20 = vpop.permute.xlu0 %5048 }
0x1885   : > { %v5052_v51 = vadd.f32 %v5774_v17, %v5049_v20 }
0x1887   : > { %5054 = vst [vmem:[%s332_s18] sm:$0xff] %v5052_v51 }
0x1888   : > { %v5051_v58 = vpop.permute.xlu1 %5050 }
0x1889   : > { %v5053_v41 = vadd.f32 %v5777_v0, %v5051_v58 }
0x188b   : > { %5055 = vst [vmem:[%s332_s18 + $0x8] sm:$0xff] %v5053_v41 }
0x188c PF: > { %s19_s30 = sadd.s32 1, %s6336_s30  }
0x188d   : > { %p16_p4 = scmp.ge.s32.totalorder %s19_s30, 4  }
0x188f   :  { %18 = sbr.rel (!%p16_p4) target bundleno = 1 (0x1), region = 95 }

</bundles_post_ra>
